<compile_context>
chip_gen: v7x
topology: tpu7x:2x2x1
jax: 0.10.0
libtpu: 0.0.40
codegen_flags: <defaults>
</compile_context>

<pallas_src>
import jax
import jax.numpy as jnp
from jax.experimental import pallas as pl
from jax.experimental.pallas import tpu as pltpu


def _round_up(n, m):
    return ((n + m - 1) // m) * m


def mlp_kernel(x_ref, w1_ref, b1_ref, w2_ref, b2_ref, w3_ref, b3_ref,
               real_ref, imag_ref):
    # Batch-major activations: x_ref is (TB, in_dim) f32.  Weights are stored
    # (in, out), biases (1, out); every layer is x @ W + b with f32
    # accumulation on the MXU.  Padded batch rows (edge block) are independent
    # and their output writes are masked off by Pallas.
    x = x_ref[...]
    h1 = jnp.tanh(jnp.dot(x, w1_ref[...], preferred_element_type=jnp.float32)
                  + b1_ref[...])
    h2 = jnp.tanh(jnp.dot(h1, w2_ref[...], preferred_element_type=jnp.float32)
                  + b2_ref[...])
    out = (jnp.dot(h2, w3_ref[...], preferred_element_type=jnp.float32)
           + b3_ref[...])                                # (TB, 2*out_dim)
    d = real_ref.shape[-1]
    real_ref[...] = out[:, :d]
    imag_ref[...] = out[:, d:]


def mlp_forward(p_in, params, *, max_tb=2048):
    """p_in: (B, input_dim) f32.  Returns complex64 (B, output_dim)."""
    B, in_dim = p_in.shape
    hid = params["w1"].shape[1]
    out2 = params["w3"].shape[1]              # 2 * output_dim (real | imag halves)
    out_dim = out2 // 2

    # Single grid step for typical B; cap the batch tile only to bound vreg
    # pressure at very large B (VMEM is never the limiter: even tb=2048
    # double-buffered is well under every generation's scoped VMEM budget).
    tb = min(_round_up(B, 128), max_tb)
    grid = (pl.cdiv(B, tb),)

    w1, b1 = params["w1"], params["b1"]
    w2, b2 = params["w2"], params["b2"]
    w3, b3 = params["w3"], params["b3"]

    # Weights/biases use a constant index_map -> stay VMEM-resident across steps.
    resident = lambda arr: pl.BlockSpec(arr.shape, lambda i: (0, 0))

    flops = 2 * B * (in_dim * hid + hid * hid + hid * out2)
    bytes_accessed = 4 * (p_in.size + 2 * B * out_dim
                          + w1.size + w2.size + w3.size
                          + b1.size + b2.size + b3.size)

    real, imag = pl.pallas_call(
        mlp_kernel,
        out_shape=(jax.ShapeDtypeStruct((B, out_dim), jnp.float32),
                   jax.ShapeDtypeStruct((B, out_dim), jnp.float32)),
        grid=grid,
        in_specs=[
            # Ragged last block: safe because contractions are over features,
            # never over batch; padded rows are dropped by masked writes.
            pl.BlockSpec((tb, in_dim), lambda i: (i, 0)),
            resident(w1), resident(b1),
            resident(w2), resident(b2),
            resident(w3), resident(b3),
        ],
        out_specs=(pl.BlockSpec((tb, out_dim), lambda i: (i, 0)),
                   pl.BlockSpec((tb, out_dim), lambda i: (i, 0))),
        compiler_params=pltpu.CompilerParams(
            # Don't shard a launch-bound 1-step grid across v7x's two TCs.
            dimension_semantics=("parallel",) if grid[0] > 1 else ("arbitrary",)),
        cost_estimate=pl.CostEstimate(
            flops=flops, transcendentals=2 * B * hid,
            bytes_accessed=bytes_accessed),
    )(p_in, w1, b1, w2, b2, w3, b3)

    # Single host-side op after the kernel.
    return jax.lax.complex(real, imag)


def mlp_result_complex_forward(n, x, p, params):
    # MLPResultComplex.forward(n, x, p): n and x are ignored; the MLP runs on p.
    del n, x
    return mlp_forward(p, params)


def init_params(key, input_dim, hidden_dim, output_dim):
    """nn.Linear-equivalent init.  Weights are stored (in, out) — the transpose
    of PyTorch's (out, in) — so the kernel runs x @ W with no transposes; biases
    are (1, out).  The output layer width is 2*output_dim (real | imag halves),
    as in MLPComplex."""
    ks = jax.random.split(key, 6)

    def linear(kw, kb, fan_in, fan_out):
        bound = 1.0 / jnp.sqrt(fan_in)
        w = jax.random.uniform(kw, (fan_in, fan_out), jnp.float32, -bound, bound)
        b = jax.random.uniform(kb, (1, fan_out), jnp.float32, -bound, bound)
        return w, b

    w1, b1 = linear(ks[0], ks[1], input_dim, hidden_dim)
    w2, b2 = linear(ks[2], ks[3], hidden_dim, hidden_dim)
    w3, b3 = linear(ks[4], ks[5], hidden_dim, 2 * output_dim)
    return {"w1": w1, "b1": b1, "w2": w2, "b2": b2, "w3": w3, "b3": b3}


def reference_forward(p_in, params):
    hi = jax.lax.Precision.HIGHEST
    h1 = jnp.tanh(jnp.dot(p_in, params["w1"], precision=hi) + params["b1"])
    h2 = jnp.tanh(jnp.dot(h1, params["w2"], precision=hi) + params["b2"])
    out = jnp.dot(h2, params["w3"], precision=hi) + params["b3"]
    d = out.shape[1] // 2
    return jax.lax.complex(out[:, :d], out[:, d:])


if __name__ == "__main__":
    # MLPResultComplex(input_dim=16, output_dim=4, hidden_dim=32, layer_num=2,
    #                  batch_norm=False); forward(n, x, p) uses only p.
    # TODO(synk): batch_norm=True branch (nn.BatchNorm1d with running stats) not implemented.
    B, INPUT_DIM, HIDDEN_DIM, OUTPUT_DIM = 1000, 16, 32, 4

    key = jax.random.PRNGKey(0)
    kn, kx, kp, kw = jax.random.split(key, 4)
    n = jax.random.normal(kn, (B,), jnp.float32)                    # ignored by forward
    x_unused = jax.random.normal(kx, (B, INPUT_DIM), jnp.float32)   # ignored by forward
    p = jax.random.normal(kp, (B, INPUT_DIM), jnp.float32)
    params = init_params(kw, INPUT_DIM, HIDDEN_DIM, OUTPUT_DIM)

    fwd = jax.jit(mlp_result_complex_forward)
    out = jax.block_until_ready(fwd(n, x_unused, p, params))

    ref = reference_forward(p, params)
    assert out.shape == (B, OUTPUT_DIM)
    assert out.dtype == jnp.complex64
    # All-f32 operands with f32 accumulation -> tight agreement with reference.
    assert jnp.allclose(out, ref, atol=1e-3, rtol=1e-3), "mismatch vs JAX reference"

    print("KERNEL_OK")
</pallas_src>

<mosaic_0001>
module attributes {stable_mosaic.version = 11 : i64} {
  func.func @mlp_kernel(%arg0: i32, %arg1: memref<1024x16xf32, #tpu.memory_space<vmem>>, %arg2: memref<16x32xf32, #tpu.memory_space<vmem>>, %arg3: memref<1x32xf32, #tpu.memory_space<vmem>>, %arg4: memref<32x32xf32, #tpu.memory_space<vmem>>, %arg5: memref<1x32xf32, #tpu.memory_space<vmem>>, %arg6: memref<32x8xf32, #tpu.memory_space<vmem>>, %arg7: memref<1x8xf32, #tpu.memory_space<vmem>>, %arg8: memref<1024x4xf32, #tpu.memory_space<vmem>>, %arg9: memref<1024x4xf32, #tpu.memory_space<vmem>>) attributes {dimension_semantics = [#tpu.dimension_semantics<arbitrary>], iteration_bounds = array<i64: 1>, scalar_prefetch = 0 : i64, scratch_operands = 0 : i64, tpu.core_type = #tpu.core_type<tc>, window_params = [{transform_indices = @transform_0, window_bounds = array<i64: 1024, 16>}, {pipeline_mode = #tpu.pipeline_mode<synchronous>, transform_indices = @transform_1, window_bounds = array<i64: 16, 32>}, {pipeline_mode = #tpu.pipeline_mode<synchronous>, transform_indices = @transform_2, window_bounds = array<i64: 1, 32>}, {pipeline_mode = #tpu.pipeline_mode<synchronous>, transform_indices = @transform_3, window_bounds = array<i64: 32, 32>}, {pipeline_mode = #tpu.pipeline_mode<synchronous>, transform_indices = @transform_4, window_bounds = array<i64: 1, 32>}, {pipeline_mode = #tpu.pipeline_mode<synchronous>, transform_indices = @transform_5, window_bounds = array<i64: 32, 8>}, {pipeline_mode = #tpu.pipeline_mode<synchronous>, transform_indices = @transform_6, window_bounds = array<i64: 1, 8>}, {transform_indices = @transform_7, window_bounds = array<i64: 1024, 4>}, {transform_indices = @transform_8, window_bounds = array<i64: 1024, 4>}]} {
    %c0 = arith.constant 0 : index
    %c0_0 = arith.constant 0 : index
    %0 = vector.load %arg1[%c0, %c0_0] : memref<1024x16xf32, #tpu.memory_space<vmem>>, vector<1024x16xf32>
    %c0_1 = arith.constant 0 : index
    %c0_2 = arith.constant 0 : index
    %1 = vector.load %arg2[%c0_1, %c0_2] : memref<16x32xf32, #tpu.memory_space<vmem>>, vector<16x32xf32>
    %cst = arith.constant dense<0.000000e+00> : vector<1024x32xf32>
    %2 = tpu.matmul %0, %1, %cst {dimension_numbers = #tpu.dot_dimension_numbers<[1], [0], [0], [1], [0, 0, 1, 1], [], []>} : vector<1024x16xf32>, vector<16x32xf32>, vector<1024x32xf32> -> vector<1024x32xf32>
    %c0_3 = arith.constant 0 : index
    %c0_4 = arith.constant 0 : index
    %3 = vector.load %arg3[%c0_3, %c0_4] : memref<1x32xf32, #tpu.memory_space<vmem>>, vector<1x32xf32>
    %4 = vector.broadcast %3 : vector<1x32xf32> to vector<1024x32xf32>
    %5 = arith.addf %2, %4 : vector<1024x32xf32>
    %6 = math.tanh %5 : vector<1024x32xf32>
    %c0_5 = arith.constant 0 : index
    %c0_6 = arith.constant 0 : index
    %7 = vector.load %arg4[%c0_5, %c0_6] : memref<32x32xf32, #tpu.memory_space<vmem>>, vector<32x32xf32>
    %cst_7 = arith.constant dense<0.000000e+00> : vector<1024x32xf32>
    %8 = tpu.matmul %6, %7, %cst_7 {dimension_numbers = #tpu.dot_dimension_numbers<[1], [0], [0], [1], [0, 0, 1, 1], [], []>} : vector<1024x32xf32>, vector<32x32xf32>, vector<1024x32xf32> -> vector<1024x32xf32>
    %c0_8 = arith.constant 0 : index
    %c0_9 = arith.constant 0 : index
    %9 = vector.load %arg5[%c0_8, %c0_9] : memref<1x32xf32, #tpu.memory_space<vmem>>, vector<1x32xf32>
    %10 = vector.broadcast %9 : vector<1x32xf32> to vector<1024x32xf32>
    %11 = arith.addf %8, %10 : vector<1024x32xf32>
    %12 = math.tanh %11 : vector<1024x32xf32>
    %c0_10 = arith.constant 0 : index
    %c0_11 = arith.constant 0 : index
    %13 = vector.load %arg6[%c0_10, %c0_11] : memref<32x8xf32, #tpu.memory_space<vmem>>, vector<32x8xf32>
    %cst_12 = arith.constant dense<0.000000e+00> : vector<1024x8xf32>
    %14 = tpu.matmul %12, %13, %cst_12 {dimension_numbers = #tpu.dot_dimension_numbers<[1], [0], [0], [1], [0, 0, 1, 1], [], []>} : vector<1024x32xf32>, vector<32x8xf32>, vector<1024x8xf32> -> vector<1024x8xf32>
    %c0_13 = arith.constant 0 : index
    %c0_14 = arith.constant 0 : index
    %15 = vector.load %arg7[%c0_13, %c0_14] : memref<1x8xf32, #tpu.memory_space<vmem>>, vector<1x8xf32>
    %16 = vector.broadcast %15 : vector<1x8xf32> to vector<1024x8xf32>
    %17 = arith.addf %14, %16 : vector<1024x8xf32>
    %18 = vector.extract_strided_slice %17 {offsets = [0, 0], sizes = [1024, 4], strides = [1, 1]} : vector<1024x8xf32> to vector<1024x4xf32>
    %c0_15 = arith.constant 0 : index
    %c0_16 = arith.constant 0 : index
    %19 = vector.load %arg8[%c0_15, %c0_16] : memref<1024x4xf32, #tpu.memory_space<vmem>>, vector<1024x4xf32>
    tpu.vector_store %arg8[%c0_15, %c0_16], %18 {strides = array<i32>} : memref<1024x4xf32, #tpu.memory_space<vmem>>, vector<1024x4xf32>,
    %20 = vector.extract_strided_slice %17 {offsets = [0, 4], sizes = [1024, 4], strides = [1, 1]} : vector<1024x8xf32> to vector<1024x4xf32>
    %c0_17 = arith.constant 0 : index
    %c0_18 = arith.constant 0 : index
    %21 = vector.load %arg9[%c0_17, %c0_18] : memref<1024x4xf32, #tpu.memory_space<vmem>>, vector<1024x4xf32>
    tpu.vector_store %arg9[%c0_17, %c0_18], %20 {strides = array<i32>} : memref<1024x4xf32, #tpu.memory_space<vmem>>, vector<1024x4xf32>,
    return
  }
  func.func @transform_0(%arg0: i32) -> (i32, i32) {
    %c0_i32 = arith.constant 0 : i32
    %c0_i32_0 = arith.constant 0 : i32
    return %arg0, %c0_i32 : i32, i32
  }
  func.func @transform_1(%arg0: i32) -> (i32, i32) {
    %c0_i32 = arith.constant 0 : i32
    %c0_i32_0 = arith.constant 0 : i32
    %c0_i32_1 = arith.constant 0 : i32
    return %c0_i32, %c0_i32_0 : i32, i32
  }
  func.func @transform_2(%arg0: i32) -> (i32, i32) {
    %c0_i32 = arith.constant 0 : i32
    %c0_i32_0 = arith.constant 0 : i32
    %c0_i32_1 = arith.constant 0 : i32
    return %c0_i32, %c0_i32_0 : i32, i32
  }
  func.func @transform_3(%arg0: i32) -> (i32, i32) {
    %c0_i32 = arith.constant 0 : i32
    %c0_i32_0 = arith.constant 0 : i32
    %c0_i32_1 = arith.constant 0 : i32
    return %c0_i32, %c0_i32_0 : i32, i32
  }
  func.func @transform_4(%arg0: i32) -> (i32, i32) {
    %c0_i32 = arith.constant 0 : i32
    %c0_i32_0 = arith.constant 0 : i32
    %c0_i32_1 = arith.constant 0 : i32
    return %c0_i32, %c0_i32_0 : i32, i32
  }
  func.func @transform_5(%arg0: i32) -> (i32, i32) {
    %c0_i32 = arith.constant 0 : i32
    %c0_i32_0 = arith.constant 0 : i32
    %c0_i32_1 = arith.constant 0 : i32
    return %c0_i32, %c0_i32_0 : i32, i32
  }
  func.func @transform_6(%arg0: i32) -> (i32, i32) {
    %c0_i32 = arith.constant 0 : i32
    %c0_i32_0 = arith.constant 0 : i32
    %c0_i32_1 = arith.constant 0 : i32
    return %c0_i32, %c0_i32_0 : i32, i32
  }
  func.func @transform_7(%arg0: i32) -> (i32, i32) {
    %c0_i32 = arith.constant 0 : i32
    %c0_i32_0 = arith.constant 0 : i32
    return %arg0, %c0_i32 : i32, i32
  }
  func.func @transform_8(%arg0: i32) -> (i32, i32) {
    %c0_i32 = arith.constant 0 : i32
    %c0_i32_0 = arith.constant 0 : i32
    return %arg0, %c0_i32 : i32, i32
  }
}

</mosaic_0001>

<bundles_post_ra>
// kernel: custom-call
= control target key start
LH: loop header
LB: loop body
LE: loop exit
PB: predicated region body
PF: predicated region fallthrough
CT: control target
= control target key end

     0   :  { %s3137_s0 = inlined_call_operand.vmem [shape: f32[1000,4], index: 0, kind: input, shape index: {}]   ;;  %s3138_s2 = inlined_call_operand.vmem [shape: c64[1000,4], index: 2, kind: output, shape index: {}]   ;;  %s3139_s1 = inlined_call_operand.vmem [shape: f32[1000,4], index: 1, kind: input, shape index: {}]  }
   0x1   :  { %v5_v0 = vld [vmem:[%s3137_s0] sm:$0xff]  ;;  %v1125_v1 = vld [vmem:[%s3137_s0 + $0x8] sm:$0xff]  ;;  %v1127_v2 = vld [vmem:[%s3137_s0 + $0x10] sm:$0xff] }
   0x2   :  { %6 = vst [vmem:[%s3138_s2] sm:$0xff] %v5_v0  ;;  %1126 = vst [vmem:[%s3138_s2 + $0x8] sm:$0xff] %v1125_v1  ;;  %v1129_v3 = vld [vmem:[%s3137_s0 + $0x18] sm:$0xff]  ;;  %v1131_v4 = vld [vmem:[%s3137_s0 + $0x20] sm:$0xff] }
   0x3   :  { %1128 = vst [vmem:[%s3138_s2 + $0x10] sm:$0xff] %v1127_v2  ;;  %v1133_v5 = vld [vmem:[%s3137_s0 + $0x28] sm:$0xff]  ;;  %1130 = vst [vmem:[%s3138_s2 + $0x18] sm:$0xff] %v1129_v3  ;;  %v1135_v6 = vld [vmem:[%s3137_s0 + $0x30] sm:$0xff] }
   0x4   :  { %1132 = vst [vmem:[%s3138_s2 + $0x20] sm:$0xff] %v1131_v4  ;;  %1134 = vst [vmem:[%s3138_s2 + $0x28] sm:$0xff] %v1133_v5  ;;  %v1137_v7 = vld [vmem:[%s3137_s0 + $0x38] sm:$0xff]  ;;  %v1139_v8 = vld [vmem:[%s3137_s0 + $0x40] sm:$0xff] }
   0x5   :  { %1136 = vst [vmem:[%s3138_s2 + $0x30] sm:$0xff] %v1135_v6  ;;  %1138 = vst [vmem:[%s3138_s2 + $0x38] sm:$0xff] %v1137_v7  ;;  %v1141_v9 = vld [vmem:[%s3137_s0 + $0x48] sm:$0xff]  ;;  %v1143_v10 = vld [vmem:[%s3137_s0 + $0x50] sm:$0xff] }
   0x6   :  { %1140 = vst [vmem:[%s3138_s2 + $0x40] sm:$0xff] %v1139_v8  ;;  %v1145_v11 = vld [vmem:[%s3137_s0 + $0x58] sm:$0xff]  ;;  %1142 = vst [vmem:[%s3138_s2 + $0x48] sm:$0xff] %v1141_v9  ;;  %v1147_v12 = vld [vmem:[%s3137_s0 + $0x60] sm:$0xff] }
   0x7   :  { %1144 = vst [vmem:[%s3138_s2 + $0x50] sm:$0xff] %v1143_v10  ;;  %1146 = vst [vmem:[%s3138_s2 + $0x58] sm:$0xff] %v1145_v11  ;;  %v1149_v13 = vld [vmem:[%s3137_s0 + $0x68] sm:$0xff]  ;;  %v1151_v14 = vld [vmem:[%s3137_s0 + $0x70] sm:$0xff] }
   0x8   :  { %1148 = vst [vmem:[%s3138_s2 + $0x60] sm:$0xff] %v1147_v12  ;;  %1150 = vst [vmem:[%s3138_s2 + $0x68] sm:$0xff] %v1149_v13  ;;  %v1153_v15 = vld [vmem:[%s3137_s0 + $0x78] sm:$0xff]  ;;  %v1155_v16 = vld [vmem:[%s3137_s0 + $0x80] sm:$0xff] }
   0x9   :  { %1152 = vst [vmem:[%s3138_s2 + $0x70] sm:$0xff] %v1151_v14  ;;  %v1157_v17 = vld [vmem:[%s3137_s0 + $0x88] sm:$0xff]  ;;  %1154 = vst [vmem:[%s3138_s2 + $0x78] sm:$0xff] %v1153_v15  ;;  %v1159_v18 = vld [vmem:[%s3137_s0 + $0x90] sm:$0xff] }
   0xa   :  { %1156 = vst [vmem:[%s3138_s2 + $0x80] sm:$0xff] %v1155_v16  ;;  %1158 = vst [vmem:[%s3138_s2 + $0x88] sm:$0xff] %v1157_v17  ;;  %v1161_v19 = vld [vmem:[%s3137_s0 + $0x98] sm:$0xff]  ;;  %v1163_v20 = vld [vmem:[%s3137_s0 + $0xa0] sm:$0xff] }
   0xb   :  { %1160 = vst [vmem:[%s3138_s2 + $0x90] sm:$0xff] %v1159_v18  ;;  %1162 = vst [vmem:[%s3138_s2 + $0x98] sm:$0xff] %v1161_v19  ;;  %v1165_v21 = vld [vmem:[%s3137_s0 + $0xa8] sm:$0xff]  ;;  %v1167_v22 = vld [vmem:[%s3137_s0 + $0xb0] sm:$0xff] }
   0xc   :  { %1164 = vst [vmem:[%s3138_s2 + $0xa0] sm:$0xff] %v1163_v20  ;;  %v1169_v23 = vld [vmem:[%s3137_s0 + $0xb8] sm:$0xff]  ;;  %1166 = vst [vmem:[%s3138_s2 + $0xa8] sm:$0xff] %v1165_v21  ;;  %v1171_v24 = vld [vmem:[%s3137_s0 + $0xc0] sm:$0xff] }
   0xd   :  { %1168 = vst [vmem:[%s3138_s2 + $0xb0] sm:$0xff] %v1167_v22  ;;  %1170 = vst [vmem:[%s3138_s2 + $0xb8] sm:$0xff] %v1169_v23  ;;  %v1173_v25 = vld [vmem:[%s3137_s0 + $0xc8] sm:$0xff]  ;;  %v1175_v26 = vld [vmem:[%s3137_s0 + $0xd0] sm:$0xff] }
   0xe   :  { %1172 = vst [vmem:[%s3138_s2 + $0xc0] sm:$0xff] %v1171_v24  ;;  %1174 = vst [vmem:[%s3138_s2 + $0xc8] sm:$0xff] %v1173_v25  ;;  %v1177_v27 = vld [vmem:[%s3137_s0 + $0xd8] sm:$0xff]  ;;  %v1179_v28 = vld [vmem:[%s3137_s0 + $0xe0] sm:$0xff] }
   0xf   :  { %1176 = vst [vmem:[%s3138_s2 + $0xd0] sm:$0xff] %v1175_v26  ;;  %v1181_v29 = vld [vmem:[%s3137_s0 + $0xe8] sm:$0xff]  ;;  %1178 = vst [vmem:[%s3138_s2 + $0xd8] sm:$0xff] %v1177_v27  ;;  %v1183_v30 = vld [vmem:[%s3137_s0 + $0xf0] sm:$0xff] }
  0x10   :  { %1180 = vst [vmem:[%s3138_s2 + $0xe0] sm:$0xff] %v1179_v28  ;;  %1182 = vst [vmem:[%s3138_s2 + $0xe8] sm:$0xff] %v1181_v29  ;;  %v1185_v31 = vld [vmem:[%s3137_s0 + $0xf8] sm:$0xff]  ;;  %v1187_v32 = vld [vmem:[%s3137_s0 + $0x100] sm:$0xff] }
  0x11   :  { %1184 = vst [vmem:[%s3138_s2 + $0xf0] sm:$0xff] %v1183_v30  ;;  %1186 = vst [vmem:[%s3138_s2 + $0xf8] sm:$0xff] %v1185_v31  ;;  %v1189_v33 = vld [vmem:[%s3137_s0 + $0x108] sm:$0xff]  ;;  %v1191_v34 = vld [vmem:[%s3137_s0 + $0x110] sm:$0xff] }
  0x12   :  { %1188 = vst [vmem:[%s3138_s2 + $0x100] sm:$0xff] %v1187_v32  ;;  %v1193_v35 = vld [vmem:[%s3137_s0 + $0x118] sm:$0xff]  ;;  %1190 = vst [vmem:[%s3138_s2 + $0x108] sm:$0xff] %v1189_v33  ;;  %v1195_v36 = vld [vmem:[%s3137_s0 + $0x120] sm:$0xff] }
  0x13   :  { %1192 = vst [vmem:[%s3138_s2 + $0x110] sm:$0xff] %v1191_v34  ;;  %1194 = vst [vmem:[%s3138_s2 + $0x118] sm:$0xff] %v1193_v35  ;;  %v1197_v37 = vld [vmem:[%s3137_s0 + $0x128] sm:$0xff]  ;;  %v1199_v38 = vld [vmem:[%s3137_s0 + $0x130] sm:$0xff] }
  0x14   :  { %1196 = vst [vmem:[%s3138_s2 + $0x120] sm:$0xff] %v1195_v36  ;;  %1198 = vst [vmem:[%s3138_s2 + $0x128] sm:$0xff] %v1197_v37  ;;  %v1201_v39 = vld [vmem:[%s3137_s0 + $0x138] sm:$0xff]  ;;  %v1203_v40 = vld [vmem:[%s3137_s0 + $0x140] sm:$0xff] }
  0x15   :  { %1200 = vst [vmem:[%s3138_s2 + $0x130] sm:$0xff] %v1199_v38  ;;  %v1205_v41 = vld [vmem:[%s3137_s0 + $0x148] sm:$0xff]  ;;  %1202 = vst [vmem:[%s3138_s2 + $0x138] sm:$0xff] %v1201_v39  ;;  %v1207_v42 = vld [vmem:[%s3137_s0 + $0x150] sm:$0xff] }
  0x16   :  { %1204 = vst [vmem:[%s3138_s2 + $0x140] sm:$0xff] %v1203_v40  ;;  %1206 = vst [vmem:[%s3138_s2 + $0x148] sm:$0xff] %v1205_v41  ;;  %v1209_v43 = vld [vmem:[%s3137_s0 + $0x158] sm:$0xff]  ;;  %v1211_v44 = vld [vmem:[%s3137_s0 + $0x160] sm:$0xff] }
  0x17   :  { %1208 = vst [vmem:[%s3138_s2 + $0x150] sm:$0xff] %v1207_v42  ;;  %1210 = vst [vmem:[%s3138_s2 + $0x158] sm:$0xff] %v1209_v43  ;;  %v1213_v45 = vld [vmem:[%s3137_s0 + $0x168] sm:$0xff]  ;;  %v1215_v46 = vld [vmem:[%s3137_s0 + $0x170] sm:$0xff] }
  0x18   :  { %1212 = vst [vmem:[%s3138_s2 + $0x160] sm:$0xff] %v1211_v44  ;;  %v1217_v47 = vld [vmem:[%s3137_s0 + $0x178] sm:$0xff]  ;;  %1214 = vst [vmem:[%s3138_s2 + $0x168] sm:$0xff] %v1213_v45  ;;  %v1219_v48 = vld [vmem:[%s3137_s0 + $0x180] sm:$0xff] }
  0x19   :  { %1216 = vst [vmem:[%s3138_s2 + $0x170] sm:$0xff] %v1215_v46  ;;  %1218 = vst [vmem:[%s3138_s2 + $0x178] sm:$0xff] %v1217_v47  ;;  %v1221_v49 = vld [vmem:[%s3137_s0 + $0x188] sm:$0xff]  ;;  %v1223_v50 = vld [vmem:[%s3137_s0 + $0x190] sm:$0xff] }
  0x1a   :  { %1220 = vst [vmem:[%s3138_s2 + $0x180] sm:$0xff] %v1219_v48  ;;  %1222 = vst [vmem:[%s3138_s2 + $0x188] sm:$0xff] %v1221_v49  ;;  %v1225_v51 = vld [vmem:[%s3137_s0 + $0x198] sm:$0xff]  ;;  %v1227_v52 = vld [vmem:[%s3137_s0 + $0x1a0] sm:$0xff] }
  0x1b   :  { %1224 = vst [vmem:[%s3138_s2 + $0x190] sm:$0xff] %v1223_v50  ;;  %v1229_v53 = vld [vmem:[%s3137_s0 + $0x1a8] sm:$0xff]  ;;  %1226 = vst [vmem:[%s3138_s2 + $0x198] sm:$0xff] %v1225_v51  ;;  %v1231_v54 = vld [vmem:[%s3137_s0 + $0x1b0] sm:$0xff] }
  0x1c   :  { %1228 = vst [vmem:[%s3138_s2 + $0x1a0] sm:$0xff] %v1227_v52  ;;  %1230 = vst [vmem:[%s3138_s2 + $0x1a8] sm:$0xff] %v1229_v53  ;;  %v1233_v55 = vld [vmem:[%s3137_s0 + $0x1b8] sm:$0xff]  ;;  %v1235_v56 = vld [vmem:[%s3137_s0 + $0x1c0] sm:$0xff] }
  0x1d   :  { %1232 = vst [vmem:[%s3138_s2 + $0x1b0] sm:$0xff] %v1231_v54  ;;  %1234 = vst [vmem:[%s3138_s2 + $0x1b8] sm:$0xff] %v1233_v55  ;;  %v1237_v57 = vld [vmem:[%s3137_s0 + $0x1c8] sm:$0xff]  ;;  %v1239_v58 = vld [vmem:[%s3137_s0 + $0x1d0] sm:$0xff] }
  0x1e   :  { %1236 = vst [vmem:[%s3138_s2 + $0x1c0] sm:$0xff] %v1235_v56  ;;  %v1241_v59 = vld [vmem:[%s3137_s0 + $0x1d8] sm:$0xff]  ;;  %1238 = vst [vmem:[%s3138_s2 + $0x1c8] sm:$0xff] %v1237_v57  ;;  %v1243_v60 = vld [vmem:[%s3137_s0 + $0x1e0] sm:$0xff] }
  0x1f   :  { %1240 = vst [vmem:[%s3138_s2 + $0x1d0] sm:$0xff] %v1239_v58  ;;  %1242 = vst [vmem:[%s3138_s2 + $0x1d8] sm:$0xff] %v1241_v59  ;;  %v1245_v61 = vld [vmem:[%s3137_s0 + $0x1e8] sm:$0xff]  ;;  %v1247_v62 = vld [vmem:[%s3137_s0 + $0x1f0] sm:$0xff] }
  0x20   :  { %1244 = vst [vmem:[%s3138_s2 + $0x1e0] sm:$0xff] %v1243_v60  ;;  %1246 = vst [vmem:[%s3138_s2 + $0x1e8] sm:$0xff] %v1245_v61  ;;  %v1249_v63 = vld [vmem:[%s3137_s0 + $0x1f8] sm:$0xff]  ;;  %v1251_v0 = vld [vmem:[%s3137_s0 + $0x200] sm:$0xff] }
  0x21   :  { %1248 = vst [vmem:[%s3138_s2 + $0x1f0] sm:$0xff] %v1247_v62  ;;  %v1253_v1 = vld [vmem:[%s3137_s0 + $0x208] sm:$0xff]  ;;  %1250 = vst [vmem:[%s3138_s2 + $0x1f8] sm:$0xff] %v1249_v63  ;;  %v1255_v2 = vld [vmem:[%s3137_s0 + $0x210] sm:$0xff] }
  0x22   :  { %1252 = vst [vmem:[%s3138_s2 + $0x200] sm:$0xff] %v1251_v0  ;;  %1254 = vst [vmem:[%s3138_s2 + $0x208] sm:$0xff] %v1253_v1  ;;  %v1257_v3 = vld [vmem:[%s3137_s0 + $0x218] sm:$0xff]  ;;  %v1259_v4 = vld [vmem:[%s3137_s0 + $0x220] sm:$0xff] }
  0x23   :  { %1256 = vst [vmem:[%s3138_s2 + $0x210] sm:$0xff] %v1255_v2  ;;  %1258 = vst [vmem:[%s3138_s2 + $0x218] sm:$0xff] %v1257_v3  ;;  %v1261_v5 = vld [vmem:[%s3137_s0 + $0x228] sm:$0xff]  ;;  %v1263_v6 = vld [vmem:[%s3137_s0 + $0x230] sm:$0xff] }
  0x24   :  { %1260 = vst [vmem:[%s3138_s2 + $0x220] sm:$0xff] %v1259_v4  ;;  %v1265_v7 = vld [vmem:[%s3137_s0 + $0x238] sm:$0xff]  ;;  %1262 = vst [vmem:[%s3138_s2 + $0x228] sm:$0xff] %v1261_v5  ;;  %v1267_v8 = vld [vmem:[%s3137_s0 + $0x240] sm:$0xff] }
  0x25   :  { %1264 = vst [vmem:[%s3138_s2 + $0x230] sm:$0xff] %v1263_v6  ;;  %1266 = vst [vmem:[%s3138_s2 + $0x238] sm:$0xff] %v1265_v7  ;;  %v1269_v9 = vld [vmem:[%s3137_s0 + $0x248] sm:$0xff]  ;;  %v1271_v10 = vld [vmem:[%s3137_s0 + $0x250] sm:$0xff] }
  0x26   :  { %1268 = vst [vmem:[%s3138_s2 + $0x240] sm:$0xff] %v1267_v8  ;;  %1270 = vst [vmem:[%s3138_s2 + $0x248] sm:$0xff] %v1269_v9  ;;  %v1273_v11 = vld [vmem:[%s3137_s0 + $0x258] sm:$0xff]  ;;  %v1275_v12 = vld [vmem:[%s3137_s0 + $0x260] sm:$0xff] }
  0x27   :  { %1272 = vst [vmem:[%s3138_s2 + $0x250] sm:$0xff] %v1271_v10  ;;  %v1277_v13 = vld [vmem:[%s3137_s0 + $0x268] sm:$0xff]  ;;  %1274 = vst [vmem:[%s3138_s2 + $0x258] sm:$0xff] %v1273_v11  ;;  %v1279_v14 = vld [vmem:[%s3137_s0 + $0x270] sm:$0xff] }
  0x28   :  { %1276 = vst [vmem:[%s3138_s2 + $0x260] sm:$0xff] %v1275_v12  ;;  %1278 = vst [vmem:[%s3138_s2 + $0x268] sm:$0xff] %v1277_v13  ;;  %v1281_v15 = vld [vmem:[%s3137_s0 + $0x278] sm:$0xff]  ;;  %v1283_v16 = vld [vmem:[%s3137_s0 + $0x280] sm:$0xff] }
  0x29   :  { %1280 = vst [vmem:[%s3138_s2 + $0x270] sm:$0xff] %v1279_v14  ;;  %1282 = vst [vmem:[%s3138_s2 + $0x278] sm:$0xff] %v1281_v15  ;;  %v1285_v17 = vld [vmem:[%s3137_s0 + $0x288] sm:$0xff]  ;;  %v1287_v18 = vld [vmem:[%s3137_s0 + $0x290] sm:$0xff] }
  0x2a   :  { %1284 = vst [vmem:[%s3138_s2 + $0x280] sm:$0xff] %v1283_v16  ;;  %v1289_v19 = vld [vmem:[%s3137_s0 + $0x298] sm:$0xff]  ;;  %1286 = vst [vmem:[%s3138_s2 + $0x288] sm:$0xff] %v1285_v17  ;;  %v1291_v20 = vld [vmem:[%s3137_s0 + $0x2a0] sm:$0xff] }
  0x2b   :  { %1288 = vst [vmem:[%s3138_s2 + $0x290] sm:$0xff] %v1287_v18  ;;  %1290 = vst [vmem:[%s3138_s2 + $0x298] sm:$0xff] %v1289_v19  ;;  %v1293_v21 = vld [vmem:[%s3137_s0 + $0x2a8] sm:$0xff]  ;;  %v1295_v22 = vld [vmem:[%s3137_s0 + $0x2b0] sm:$0xff] }
  0x2c   :  { %1292 = vst [vmem:[%s3138_s2 + $0x2a0] sm:$0xff] %v1291_v20  ;;  %1294 = vst [vmem:[%s3138_s2 + $0x2a8] sm:$0xff] %v1293_v21  ;;  %v1297_v23 = vld [vmem:[%s3137_s0 + $0x2b8] sm:$0xff]  ;;  %v1299_v24 = vld [vmem:[%s3137_s0 + $0x2c0] sm:$0xff] }
  0x2d   :  { %1296 = vst [vmem:[%s3138_s2 + $0x2b0] sm:$0xff] %v1295_v22  ;;  %v1301_v25 = vld [vmem:[%s3137_s0 + $0x2c8] sm:$0xff]  ;;  %1298 = vst [vmem:[%s3138_s2 + $0x2b8] sm:$0xff] %v1297_v23  ;;  %v1303_v26 = vld [vmem:[%s3137_s0 + $0x2d0] sm:$0xff] }
  0x2e   :  { %1300 = vst [vmem:[%s3138_s2 + $0x2c0] sm:$0xff] %v1299_v24  ;;  %1302 = vst [vmem:[%s3138_s2 + $0x2c8] sm:$0xff] %v1301_v25  ;;  %v1305_v27 = vld [vmem:[%s3137_s0 + $0x2d8] sm:$0xff]  ;;  %v1307_v28 = vld [vmem:[%s3137_s0 + $0x2e0] sm:$0xff] }
  0x2f   :  { %1304 = vst [vmem:[%s3138_s2 + $0x2d0] sm:$0xff] %v1303_v26  ;;  %1306 = vst [vmem:[%s3138_s2 + $0x2d8] sm:$0xff] %v1305_v27  ;;  %v1309_v29 = vld [vmem:[%s3137_s0 + $0x2e8] sm:$0xff]  ;;  %v1311_v30 = vld [vmem:[%s3137_s0 + $0x2f0] sm:$0xff] }
  0x30   :  { %1308 = vst [vmem:[%s3138_s2 + $0x2e0] sm:$0xff] %v1307_v28  ;;  %v1313_v31 = vld [vmem:[%s3137_s0 + $0x2f8] sm:$0xff]  ;;  %1310 = vst [vmem:[%s3138_s2 + $0x2e8] sm:$0xff] %v1309_v29  ;;  %v1315_v32 = vld [vmem:[%s3137_s0 + $0x300] sm:$0xff] }
  0x31   :  { %1312 = vst [vmem:[%s3138_s2 + $0x2f0] sm:$0xff] %v1311_v30  ;;  %1314 = vst [vmem:[%s3138_s2 + $0x2f8] sm:$0xff] %v1313_v31  ;;  %v1317_v33 = vld [vmem:[%s3137_s0 + $0x308] sm:$0xff]  ;;  %v1319_v34 = vld [vmem:[%s3137_s0 + $0x310] sm:$0xff] }
  0x32   :  { %1316 = vst [vmem:[%s3138_s2 + $0x300] sm:$0xff] %v1315_v32  ;;  %1318 = vst [vmem:[%s3138_s2 + $0x308] sm:$0xff] %v1317_v33  ;;  %v1321_v35 = vld [vmem:[%s3137_s0 + $0x318] sm:$0xff]  ;;  %v1323_v36 = vld [vmem:[%s3137_s0 + $0x320] sm:$0xff] }
  0x33   :  { %1320 = vst [vmem:[%s3138_s2 + $0x310] sm:$0xff] %v1319_v34  ;;  %v1325_v37 = vld [vmem:[%s3137_s0 + $0x328] sm:$0xff]  ;;  %1322 = vst [vmem:[%s3138_s2 + $0x318] sm:$0xff] %v1321_v35  ;;  %v1327_v38 = vld [vmem:[%s3137_s0 + $0x330] sm:$0xff] }
  0x34   :  { %1324 = vst [vmem:[%s3138_s2 + $0x320] sm:$0xff] %v1323_v36  ;;  %1326 = vst [vmem:[%s3138_s2 + $0x328] sm:$0xff] %v1325_v37  ;;  %v1329_v39 = vld [vmem:[%s3137_s0 + $0x338] sm:$0xff]  ;;  %v1331_v40 = vld [vmem:[%s3137_s0 + $0x340] sm:$0xff] }
  0x35   :  { %1328 = vst [vmem:[%s3138_s2 + $0x330] sm:$0xff] %v1327_v38  ;;  %1330 = vst [vmem:[%s3138_s2 + $0x338] sm:$0xff] %v1329_v39  ;;  %v1333_v41 = vld [vmem:[%s3137_s0 + $0x348] sm:$0xff]  ;;  %v1335_v42 = vld [vmem:[%s3137_s0 + $0x350] sm:$0xff] }
  0x36   :  { %1332 = vst [vmem:[%s3138_s2 + $0x340] sm:$0xff] %v1331_v40  ;;  %v1337_v43 = vld [vmem:[%s3137_s0 + $0x358] sm:$0xff]  ;;  %1334 = vst [vmem:[%s3138_s2 + $0x348] sm:$0xff] %v1333_v41  ;;  %v1339_v44 = vld [vmem:[%s3137_s0 + $0x360] sm:$0xff] }
  0x37   :  { %1336 = vst [vmem:[%s3138_s2 + $0x350] sm:$0xff] %v1335_v42  ;;  %1338 = vst [vmem:[%s3138_s2 + $0x358] sm:$0xff] %v1337_v43  ;;  %v1341_v45 = vld [vmem:[%s3137_s0 + $0x368] sm:$0xff]  ;;  %v1343_v46 = vld [vmem:[%s3137_s0 + $0x370] sm:$0xff] }
  0x38   :  { %1340 = vst [vmem:[%s3138_s2 + $0x360] sm:$0xff] %v1339_v44  ;;  %1342 = vst [vmem:[%s3138_s2 + $0x368] sm:$0xff] %v1341_v45  ;;  %v1345_v47 = vld [vmem:[%s3137_s0 + $0x378] sm:$0xff]  ;;  %v1347_v48 = vld [vmem:[%s3137_s0 + $0x380] sm:$0xff] }
  0x39   :  { %1344 = vst [vmem:[%s3138_s2 + $0x370] sm:$0xff] %v1343_v46  ;;  %v1349_v49 = vld [vmem:[%s3137_s0 + $0x388] sm:$0xff]  ;;  %1346 = vst [vmem:[%s3138_s2 + $0x378] sm:$0xff] %v1345_v47  ;;  %v1351_v50 = vld [vmem:[%s3137_s0 + $0x390] sm:$0xff] }
  0x3a   :  { %1348 = vst [vmem:[%s3138_s2 + $0x380] sm:$0xff] %v1347_v48  ;;  %1350 = vst [vmem:[%s3138_s2 + $0x388] sm:$0xff] %v1349_v49  ;;  %v1353_v51 = vld [vmem:[%s3137_s0 + $0x398] sm:$0xff]  ;;  %v1355_v52 = vld [vmem:[%s3137_s0 + $0x3a0] sm:$0xff] }
  0x3b   :  { %1352 = vst [vmem:[%s3138_s2 + $0x390] sm:$0xff] %v1351_v50  ;;  %1354 = vst [vmem:[%s3138_s2 + $0x398] sm:$0xff] %v1353_v51  ;;  %v1357_v53 = vld [vmem:[%s3137_s0 + $0x3a8] sm:$0xff]  ;;  %v1359_v54 = vld [vmem:[%s3137_s0 + $0x3b0] sm:$0xff] }
  0x3c   :  { %1356 = vst [vmem:[%s3138_s2 + $0x3a0] sm:$0xff] %v1355_v52  ;;  %v1361_v55 = vld [vmem:[%s3137_s0 + $0x3b8] sm:$0xff]  ;;  %1358 = vst [vmem:[%s3138_s2 + $0x3a8] sm:$0xff] %v1357_v53  ;;  %v1363_v56 = vld [vmem:[%s3137_s0 + $0x3c0] sm:$0xff] }
  0x3d   :  { %1360 = vst [vmem:[%s3138_s2 + $0x3b0] sm:$0xff] %v1359_v54  ;;  %1362 = vst [vmem:[%s3138_s2 + $0x3b8] sm:$0xff] %v1361_v55  ;;  %v1365_v57 = vld [vmem:[%s3137_s0 + $0x3c8] sm:$0xff]  ;;  %v1367_v58 = vld [vmem:[%s3137_s0 + $0x3d0] sm:$0xff] }
  0x3e   :  { %1364 = vst [vmem:[%s3138_s2 + $0x3c0] sm:$0xff] %v1363_v56  ;;  %1366 = vst [vmem:[%s3138_s2 + $0x3c8] sm:$0xff] %v1365_v57  ;;  %v1369_v59 = vld [vmem:[%s3137_s0 + $0x3d8] sm:$0xff]  ;;  %v1371_v60 = vld [vmem:[%s3137_s0 + $0x3e0] sm:$0xff] }
  0x3f   :  { %1368 = vst [vmem:[%s3138_s2 + $0x3d0] sm:$0xff] %v1367_v58  ;;  %v503_v61 = vld [vmem:[%s3139_s1] sm:$0xff]  ;;  %1370 = vst [vmem:[%s3138_s2 + $0x3d8] sm:$0xff] %v1369_v59  ;;  %v1374_v62 = vld [vmem:[%s3139_s1 + $0x8] sm:$0xff] }
  0x40   :  { %1372 = vst [vmem:[%s3138_s2 + $0x3e0] sm:$0xff] %v1371_v60  ;;  %1373 = vst [vmem:[%s3138_s2 + $0x3e8] sm:$0xff] %v503_v61  ;;  %v1376_v63 = vld [vmem:[%s3139_s1 + $0x10] sm:$0xff]  ;;  %v1378_v0 = vld [vmem:[%s3139_s1 + $0x18] sm:$0xff] }
  0x41   :  { %1375 = vst [vmem:[%s3138_s2 + $0x3f0] sm:$0xff] %v1374_v62  ;;  %1377 = vst [vmem:[%s3138_s2 + $0x3f8] sm:$0xff] %v1376_v63  ;;  %v1380_v1 = vld [vmem:[%s3139_s1 + $0x20] sm:$0xff]  ;;  %v1382_v2 = vld [vmem:[%s3139_s1 + $0x28] sm:$0xff] }
  0x42   :  { %1379 = vst [vmem:[%s3138_s2 + $0x400] sm:$0xff] %v1378_v0  ;;  %v1384_v3 = vld [vmem:[%s3139_s1 + $0x30] sm:$0xff]  ;;  %1381 = vst [vmem:[%s3138_s2 + $0x408] sm:$0xff] %v1380_v1  ;;  %v1386_v4 = vld [vmem:[%s3139_s1 + $0x38] sm:$0xff] }
  0x43   :  { %1383 = vst [vmem:[%s3138_s2 + $0x410] sm:$0xff] %v1382_v2  ;;  %1385 = vst [vmem:[%s3138_s2 + $0x418] sm:$0xff] %v1384_v3  ;;  %v1388_v5 = vld [vmem:[%s3139_s1 + $0x40] sm:$0xff]  ;;  %v1390_v6 = vld [vmem:[%s3139_s1 + $0x48] sm:$0xff] }
  0x44   :  { %1387 = vst [vmem:[%s3138_s2 + $0x420] sm:$0xff] %v1386_v4  ;;  %1389 = vst [vmem:[%s3138_s2 + $0x428] sm:$0xff] %v1388_v5  ;;  %v1392_v7 = vld [vmem:[%s3139_s1 + $0x50] sm:$0xff]  ;;  %v1394_v8 = vld [vmem:[%s3139_s1 + $0x58] sm:$0xff] }
  0x45   :  { %1391 = vst [vmem:[%s3138_s2 + $0x430] sm:$0xff] %v1390_v6  ;;  %v1396_v9 = vld [vmem:[%s3139_s1 + $0x60] sm:$0xff]  ;;  %1393 = vst [vmem:[%s3138_s2 + $0x438] sm:$0xff] %v1392_v7  ;;  %v1398_v10 = vld [vmem:[%s3139_s1 + $0x68] sm:$0xff] }
  0x46   :  { %1395 = vst [vmem:[%s3138_s2 + $0x440] sm:$0xff] %v1394_v8  ;;  %1397 = vst [vmem:[%s3138_s2 + $0x448] sm:$0xff] %v1396_v9  ;;  %v1400_v11 = vld [vmem:[%s3139_s1 + $0x70] sm:$0xff]  ;;  %v1402_v12 = vld [vmem:[%s3139_s1 + $0x78] sm:$0xff] }
  0x47   :  { %1399 = vst [vmem:[%s3138_s2 + $0x450] sm:$0xff] %v1398_v10  ;;  %1401 = vst [vmem:[%s3138_s2 + $0x458] sm:$0xff] %v1400_v11  ;;  %v1404_v13 = vld [vmem:[%s3139_s1 + $0x80] sm:$0xff]  ;;  %v1406_v14 = vld [vmem:[%s3139_s1 + $0x88] sm:$0xff] }
  0x48   :  { %1403 = vst [vmem:[%s3138_s2 + $0x460] sm:$0xff] %v1402_v12  ;;  %v1408_v15 = vld [vmem:[%s3139_s1 + $0x90] sm:$0xff]  ;;  %1405 = vst [vmem:[%s3138_s2 + $0x468] sm:$0xff] %v1404_v13  ;;  %v1410_v16 = vld [vmem:[%s3139_s1 + $0x98] sm:$0xff] }
  0x49   :  { %1407 = vst [vmem:[%s3138_s2 + $0x470] sm:$0xff] %v1406_v14  ;;  %1409 = vst [vmem:[%s3138_s2 + $0x478] sm:$0xff] %v1408_v15  ;;  %v1412_v17 = vld [vmem:[%s3139_s1 + $0xa0] sm:$0xff]  ;;  %v1414_v18 = vld [vmem:[%s3139_s1 + $0xa8] sm:$0xff] }
  0x4a   :  { %1411 = vst [vmem:[%s3138_s2 + $0x480] sm:$0xff] %v1410_v16  ;;  %1413 = vst [vmem:[%s3138_s2 + $0x488] sm:$0xff] %v1412_v17  ;;  %v1416_v19 = vld [vmem:[%s3139_s1 + $0xb0] sm:$0xff]  ;;  %v1418_v20 = vld [vmem:[%s3139_s1 + $0xb8] sm:$0xff] }
  0x4b   :  { %1415 = vst [vmem:[%s3138_s2 + $0x490] sm:$0xff] %v1414_v18  ;;  %v1420_v21 = vld [vmem:[%s3139_s1 + $0xc0] sm:$0xff]  ;;  %1417 = vst [vmem:[%s3138_s2 + $0x498] sm:$0xff] %v1416_v19  ;;  %v1422_v22 = vld [vmem:[%s3139_s1 + $0xc8] sm:$0xff] }
  0x4c   :  { %1419 = vst [vmem:[%s3138_s2 + $0x4a0] sm:$0xff] %v1418_v20  ;;  %1421 = vst [vmem:[%s3138_s2 + $0x4a8] sm:$0xff] %v1420_v21  ;;  %v1424_v23 = vld [vmem:[%s3139_s1 + $0xd0] sm:$0xff]  ;;  %v1426_v24 = vld [vmem:[%s3139_s1 + $0xd8] sm:$0xff] }
  0x4d   :  { %1423 = vst [vmem:[%s3138_s2 + $0x4b0] sm:$0xff] %v1422_v22  ;;  %1425 = vst [vmem:[%s3138_s2 + $0x4b8] sm:$0xff] %v1424_v23  ;;  %v1428_v25 = vld [vmem:[%s3139_s1 + $0xe0] sm:$0xff]  ;;  %v1430_v26 = vld [vmem:[%s3139_s1 + $0xe8] sm:$0xff] }
  0x4e   :  { %1427 = vst [vmem:[%s3138_s2 + $0x4c0] sm:$0xff] %v1426_v24  ;;  %v1432_v27 = vld [vmem:[%s3139_s1 + $0xf0] sm:$0xff]  ;;  %1429 = vst [vmem:[%s3138_s2 + $0x4c8] sm:$0xff] %v1428_v25  ;;  %v1434_v28 = vld [vmem:[%s3139_s1 + $0xf8] sm:$0xff] }
  0x4f   :  { %1431 = vst [vmem:[%s3138_s2 + $0x4d0] sm:$0xff] %v1430_v26  ;;  %1433 = vst [vmem:[%s3138_s2 + $0x4d8] sm:$0xff] %v1432_v27  ;;  %v1436_v29 = vld [vmem:[%s3139_s1 + $0x100] sm:$0xff]  ;;  %v1438_v30 = vld [vmem:[%s3139_s1 + $0x108] sm:$0xff] }
  0x50   :  { %1435 = vst [vmem:[%s3138_s2 + $0x4e0] sm:$0xff] %v1434_v28  ;;  %1437 = vst [vmem:[%s3138_s2 + $0x4e8] sm:$0xff] %v1436_v29  ;;  %v1440_v31 = vld [vmem:[%s3139_s1 + $0x110] sm:$0xff]  ;;  %v1442_v32 = vld [vmem:[%s3139_s1 + $0x118] sm:$0xff] }
  0x51   :  { %1439 = vst [vmem:[%s3138_s2 + $0x4f0] sm:$0xff] %v1438_v30  ;;  %v1444_v33 = vld [vmem:[%s3139_s1 + $0x120] sm:$0xff]  ;;  %1441 = vst [vmem:[%s3138_s2 + $0x4f8] sm:$0xff] %v1440_v31  ;;  %v1446_v34 = vld [vmem:[%s3139_s1 + $0x128] sm:$0xff] }
  0x52   :  { %1443 = vst [vmem:[%s3138_s2 + $0x500] sm:$0xff] %v1442_v32  ;;  %1445 = vst [vmem:[%s3138_s2 + $0x508] sm:$0xff] %v1444_v33  ;;  %v1448_v35 = vld [vmem:[%s3139_s1 + $0x130] sm:$0xff]  ;;  %v1450_v36 = vld [vmem:[%s3139_s1 + $0x138] sm:$0xff] }
  0x53   :  { %1447 = vst [vmem:[%s3138_s2 + $0x510] sm:$0xff] %v1446_v34  ;;  %1449 = vst [vmem:[%s3138_s2 + $0x518] sm:$0xff] %v1448_v35  ;;  %v1452_v37 = vld [vmem:[%s3139_s1 + $0x140] sm:$0xff]  ;;  %v1454_v38 = vld [vmem:[%s3139_s1 + $0x148] sm:$0xff] }
  0x54   :  { %1451 = vst [vmem:[%s3138_s2 + $0x520] sm:$0xff] %v1450_v36  ;;  %v1456_v39 = vld [vmem:[%s3139_s1 + $0x150] sm:$0xff]  ;;  %1453 = vst [vmem:[%s3138_s2 + $0x528] sm:$0xff] %v1452_v37  ;;  %v1458_v40 = vld [vmem:[%s3139_s1 + $0x158] sm:$0xff] }
  0x55   :  { %1455 = vst [vmem:[%s3138_s2 + $0x530] sm:$0xff] %v1454_v38  ;;  %1457 = vst [vmem:[%s3138_s2 + $0x538] sm:$0xff] %v1456_v39  ;;  %v1460_v41 = vld [vmem:[%s3139_s1 + $0x160] sm:$0xff]  ;;  %v1462_v42 = vld [vmem:[%s3139_s1 + $0x168] sm:$0xff] }
  0x56   :  { %1459 = vst [vmem:[%s3138_s2 + $0x540] sm:$0xff] %v1458_v40  ;;  %1461 = vst [vmem:[%s3138_s2 + $0x548] sm:$0xff] %v1460_v41  ;;  %v1464_v43 = vld [vmem:[%s3139_s1 + $0x170] sm:$0xff]  ;;  %v1466_v44 = vld [vmem:[%s3139_s1 + $0x178] sm:$0xff] }
  0x57   :  { %1463 = vst [vmem:[%s3138_s2 + $0x550] sm:$0xff] %v1462_v42  ;;  %v1468_v45 = vld [vmem:[%s3139_s1 + $0x180] sm:$0xff]  ;;  %1465 = vst [vmem:[%s3138_s2 + $0x558] sm:$0xff] %v1464_v43  ;;  %v1470_v46 = vld [vmem:[%s3139_s1 + $0x188] sm:$0xff] }
  0x58   :  { %1467 = vst [vmem:[%s3138_s2 + $0x560] sm:$0xff] %v1466_v44  ;;  %1469 = vst [vmem:[%s3138_s2 + $0x568] sm:$0xff] %v1468_v45  ;;  %v1472_v47 = vld [vmem:[%s3139_s1 + $0x190] sm:$0xff]  ;;  %v1474_v48 = vld [vmem:[%s3139_s1 + $0x198] sm:$0xff] }
  0x59   :  { %1471 = vst [vmem:[%s3138_s2 + $0x570] sm:$0xff] %v1470_v46  ;;  %1473 = vst [vmem:[%s3138_s2 + $0x578] sm:$0xff] %v1472_v47  ;;  %v1476_v49 = vld [vmem:[%s3139_s1 + $0x1a0] sm:$0xff]  ;;  %v1478_v50 = vld [vmem:[%s3139_s1 + $0x1a8] sm:$0xff] }
  0x5a   :  { %1475 = vst [vmem:[%s3138_s2 + $0x580] sm:$0xff] %v1474_v48  ;;  %v1480_v51 = vld [vmem:[%s3139_s1 + $0x1b0] sm:$0xff]  ;;  %1477 = vst [vmem:[%s3138_s2 + $0x588] sm:$0xff] %v1476_v49  ;;  %v1482_v52 = vld [vmem:[%s3139_s1 + $0x1b8] sm:$0xff] }
  0x5b   :  { %1479 = vst [vmem:[%s3138_s2 + $0x590] sm:$0xff] %v1478_v50  ;;  %1481 = vst [vmem:[%s3138_s2 + $0x598] sm:$0xff] %v1480_v51  ;;  %v1484_v53 = vld [vmem:[%s3139_s1 + $0x1c0] sm:$0xff]  ;;  %v1486_v54 = vld [vmem:[%s3139_s1 + $0x1c8] sm:$0xff] }
  0x5c   :  { %1483 = vst [vmem:[%s3138_s2 + $0x5a0] sm:$0xff] %v1482_v52  ;;  %1485 = vst [vmem:[%s3138_s2 + $0x5a8] sm:$0xff] %v1484_v53  ;;  %v1488_v55 = vld [vmem:[%s3139_s1 + $0x1d0] sm:$0xff]  ;;  %v1490_v56 = vld [vmem:[%s3139_s1 + $0x1d8] sm:$0xff] }
  0x5d   :  { %1487 = vst [vmem:[%s3138_s2 + $0x5b0] sm:$0xff] %v1486_v54  ;;  %v1492_v57 = vld [vmem:[%s3139_s1 + $0x1e0] sm:$0xff]  ;;  %1489 = vst [vmem:[%s3138_s2 + $0x5b8] sm:$0xff] %v1488_v55  ;;  %v1494_v58 = vld [vmem:[%s3139_s1 + $0x1e8] sm:$0xff] }
  0x5e   :  { %1491 = vst [vmem:[%s3138_s2 + $0x5c0] sm:$0xff] %v1490_v56  ;;  %1493 = vst [vmem:[%s3138_s2 + $0x5c8] sm:$0xff] %v1492_v57  ;;  %v1496_v59 = vld [vmem:[%s3139_s1 + $0x1f0] sm:$0xff]  ;;  %v1498_v60 = vld [vmem:[%s3139_s1 + $0x1f8] sm:$0xff] }
  0x5f   :  { %1495 = vst [vmem:[%s3138_s2 + $0x5d0] sm:$0xff] %v1494_v58  ;;  %1497 = vst [vmem:[%s3138_s2 + $0x5d8] sm:$0xff] %v1496_v59  ;;  %v1500_v61 = vld [vmem:[%s3139_s1 + $0x200] sm:$0xff]  ;;  %v1502_v62 = vld [vmem:[%s3139_s1 + $0x208] sm:$0xff] }
  0x60   :  { %1499 = vst [vmem:[%s3138_s2 + $0x5e0] sm:$0xff] %v1498_v60  ;;  %v1504_v63 = vld [vmem:[%s3139_s1 + $0x210] sm:$0xff]  ;;  %1501 = vst [vmem:[%s3138_s2 + $0x5e8] sm:$0xff] %v1500_v61  ;;  %v1506_v0 = vld [vmem:[%s3139_s1 + $0x218] sm:$0xff] }
  0x61   :  { %1503 = vst [vmem:[%s3138_s2 + $0x5f0] sm:$0xff] %v1502_v62  ;;  %1505 = vst [vmem:[%s3138_s2 + $0x5f8] sm:$0xff] %v1504_v63  ;;  %v1508_v1 = vld [vmem:[%s3139_s1 + $0x220] sm:$0xff]  ;;  %v1510_v2 = vld [vmem:[%s3139_s1 + $0x228] sm:$0xff] }
  0x62   :  { %1507 = vst [vmem:[%s3138_s2 + $0x600] sm:$0xff] %v1506_v0  ;;  %1509 = vst [vmem:[%s3138_s2 + $0x608] sm:$0xff] %v1508_v1  ;;  %v1512_v3 = vld [vmem:[%s3139_s1 + $0x230] sm:$0xff]  ;;  %v1514_v4 = vld [vmem:[%s3139_s1 + $0x238] sm:$0xff] }
  0x63   :  { %1511 = vst [vmem:[%s3138_s2 + $0x610] sm:$0xff] %v1510_v2  ;;  %v1516_v5 = vld [vmem:[%s3139_s1 + $0x240] sm:$0xff]  ;;  %1513 = vst [vmem:[%s3138_s2 + $0x618] sm:$0xff] %v1512_v3  ;;  %v1518_v6 = vld [vmem:[%s3139_s1 + $0x248] sm:$0xff] }
  0x64   :  { %1515 = vst [vmem:[%s3138_s2 + $0x620] sm:$0xff] %v1514_v4  ;;  %1517 = vst [vmem:[%s3138_s2 + $0x628] sm:$0xff] %v1516_v5  ;;  %v1520_v7 = vld [vmem:[%s3139_s1 + $0x250] sm:$0xff]  ;;  %v1522_v8 = vld [vmem:[%s3139_s1 + $0x258] sm:$0xff] }
  0x65   :  { %1519 = vst [vmem:[%s3138_s2 + $0x630] sm:$0xff] %v1518_v6  ;;  %1521 = vst [vmem:[%s3138_s2 + $0x638] sm:$0xff] %v1520_v7  ;;  %v1524_v9 = vld [vmem:[%s3139_s1 + $0x260] sm:$0xff]  ;;  %v1526_v10 = vld [vmem:[%s3139_s1 + $0x268] sm:$0xff] }
  0x66   :  { %1523 = vst [vmem:[%s3138_s2 + $0x640] sm:$0xff] %v1522_v8  ;;  %v1528_v11 = vld [vmem:[%s3139_s1 + $0x270] sm:$0xff]  ;;  %1525 = vst [vmem:[%s3138_s2 + $0x648] sm:$0xff] %v1524_v9  ;;  %v1530_v12 = vld [vmem:[%s3139_s1 + $0x278] sm:$0xff] }
  0x67   :  { %1527 = vst [vmem:[%s3138_s2 + $0x650] sm:$0xff] %v1526_v10  ;;  %1529 = vst [vmem:[%s3138_s2 + $0x658] sm:$0xff] %v1528_v11  ;;  %v1532_v13 = vld [vmem:[%s3139_s1 + $0x280] sm:$0xff]  ;;  %v1534_v14 = vld [vmem:[%s3139_s1 + $0x288] sm:$0xff] }
  0x68   :  { %1531 = vst [vmem:[%s3138_s2 + $0x660] sm:$0xff] %v1530_v12  ;;  %1533 = vst [vmem:[%s3138_s2 + $0x668] sm:$0xff] %v1532_v13  ;;  %v1536_v15 = vld [vmem:[%s3139_s1 + $0x290] sm:$0xff]  ;;  %v1538_v16 = vld [vmem:[%s3139_s1 + $0x298] sm:$0xff] }
  0x69   :  { %1535 = vst [vmem:[%s3138_s2 + $0x670] sm:$0xff] %v1534_v14  ;;  %v1540_v17 = vld [vmem:[%s3139_s1 + $0x2a0] sm:$0xff]  ;;  %1537 = vst [vmem:[%s3138_s2 + $0x678] sm:$0xff] %v1536_v15  ;;  %v1542_v18 = vld [vmem:[%s3139_s1 + $0x2a8] sm:$0xff] }
  0x6a   :  { %1539 = vst [vmem:[%s3138_s2 + $0x680] sm:$0xff] %v1538_v16  ;;  %1541 = vst [vmem:[%s3138_s2 + $0x688] sm:$0xff] %v1540_v17  ;;  %v1544_v19 = vld [vmem:[%s3139_s1 + $0x2b0] sm:$0xff]  ;;  %v1546_v20 = vld [vmem:[%s3139_s1 + $0x2b8] sm:$0xff] }
  0x6b   :  { %1543 = vst [vmem:[%s3138_s2 + $0x690] sm:$0xff] %v1542_v18  ;;  %1545 = vst [vmem:[%s3138_s2 + $0x698] sm:$0xff] %v1544_v19  ;;  %v1548_v21 = vld [vmem:[%s3139_s1 + $0x2c0] sm:$0xff]  ;;  %v1550_v22 = vld [vmem:[%s3139_s1 + $0x2c8] sm:$0xff] }
  0x6c   :  { %1547 = vst [vmem:[%s3138_s2 + $0x6a0] sm:$0xff] %v1546_v20  ;;  %v1552_v23 = vld [vmem:[%s3139_s1 + $0x2d0] sm:$0xff]  ;;  %1549 = vst [vmem:[%s3138_s2 + $0x6a8] sm:$0xff] %v1548_v21  ;;  %v1554_v24 = vld [vmem:[%s3139_s1 + $0x2d8] sm:$0xff] }
  0x6d   :  { %1551 = vst [vmem:[%s3138_s2 + $0x6b0] sm:$0xff] %v1550_v22  ;;  %1553 = vst [vmem:[%s3138_s2 + $0x6b8] sm:$0xff] %v1552_v23  ;;  %v1556_v25 = vld [vmem:[%s3139_s1 + $0x2e0] sm:$0xff]  ;;  %v1558_v26 = vld [vmem:[%s3139_s1 + $0x2e8] sm:$0xff] }
  0x6e   :  { %1555 = vst [vmem:[%s3138_s2 + $0x6c0] sm:$0xff] %v1554_v24  ;;  %1557 = vst [vmem:[%s3138_s2 + $0x6c8] sm:$0xff] %v1556_v25  ;;  %v1560_v27 = vld [vmem:[%s3139_s1 + $0x2f0] sm:$0xff]  ;;  %v1562_v28 = vld [vmem:[%s3139_s1 + $0x2f8] sm:$0xff] }
  0x6f   :  { %1559 = vst [vmem:[%s3138_s2 + $0x6d0] sm:$0xff] %v1558_v26  ;;  %v1564_v29 = vld [vmem:[%s3139_s1 + $0x300] sm:$0xff]  ;;  %1561 = vst [vmem:[%s3138_s2 + $0x6d8] sm:$0xff] %v1560_v27  ;;  %v1566_v30 = vld [vmem:[%s3139_s1 + $0x308] sm:$0xff] }
  0x70   :  { %1563 = vst [vmem:[%s3138_s2 + $0x6e0] sm:$0xff] %v1562_v28  ;;  %1565 = vst [vmem:[%s3138_s2 + $0x6e8] sm:$0xff] %v1564_v29  ;;  %v1568_v31 = vld [vmem:[%s3139_s1 + $0x310] sm:$0xff]  ;;  %v1570_v32 = vld [vmem:[%s3139_s1 + $0x318] sm:$0xff] }
  0x71   :  { %1567 = vst [vmem:[%s3138_s2 + $0x6f0] sm:$0xff] %v1566_v30  ;;  %1569 = vst [vmem:[%s3138_s2 + $0x6f8] sm:$0xff] %v1568_v31  ;;  %v1572_v33 = vld [vmem:[%s3139_s1 + $0x320] sm:$0xff]  ;;  %v1574_v34 = vld [vmem:[%s3139_s1 + $0x328] sm:$0xff] }
  0x72   :  { %1571 = vst [vmem:[%s3138_s2 + $0x700] sm:$0xff] %v1570_v32  ;;  %v1576_v35 = vld [vmem:[%s3139_s1 + $0x330] sm:$0xff]  ;;  %1573 = vst [vmem:[%s3138_s2 + $0x708] sm:$0xff] %v1572_v33  ;;  %v1578_v36 = vld [vmem:[%s3139_s1 + $0x338] sm:$0xff] }
  0x73   :  { %1575 = vst [vmem:[%s3138_s2 + $0x710] sm:$0xff] %v1574_v34  ;;  %1577 = vst [vmem:[%s3138_s2 + $0x718] sm:$0xff] %v1576_v35  ;;  %v1580_v37 = vld [vmem:[%s3139_s1 + $0x340] sm:$0xff]  ;;  %v1582_v38 = vld [vmem:[%s3139_s1 + $0x348] sm:$0xff] }
  0x74   :  { %1579 = vst [vmem:[%s3138_s2 + $0x720] sm:$0xff] %v1578_v36  ;;  %1581 = vst [vmem:[%s3138_s2 + $0x728] sm:$0xff] %v1580_v37  ;;  %v1584_v39 = vld [vmem:[%s3139_s1 + $0x350] sm:$0xff]  ;;  %v1586_v40 = vld [vmem:[%s3139_s1 + $0x358] sm:$0xff] }
  0x75   :  { %1583 = vst [vmem:[%s3138_s2 + $0x730] sm:$0xff] %v1582_v38  ;;  %v1588_v41 = vld [vmem:[%s3139_s1 + $0x360] sm:$0xff]  ;;  %1585 = vst [vmem:[%s3138_s2 + $0x738] sm:$0xff] %v1584_v39  ;;  %v1590_v42 = vld [vmem:[%s3139_s1 + $0x368] sm:$0xff] }
  0x76   :  { %1587 = vst [vmem:[%s3138_s2 + $0x740] sm:$0xff] %v1586_v40  ;;  %1589 = vst [vmem:[%s3138_s2 + $0x748] sm:$0xff] %v1588_v41  ;;  %v1592_v43 = vld [vmem:[%s3139_s1 + $0x370] sm:$0xff]  ;;  %v1594_v44 = vld [vmem:[%s3139_s1 + $0x378] sm:$0xff] }
  0x77   :  { %1591 = vst [vmem:[%s3138_s2 + $0x750] sm:$0xff] %v1590_v42  ;;  %1593 = vst [vmem:[%s3138_s2 + $0x758] sm:$0xff] %v1592_v43  ;;  %v1596_v45 = vld [vmem:[%s3139_s1 + $0x380] sm:$0xff]  ;;  %v1598_v46 = vld [vmem:[%s3139_s1 + $0x388] sm:$0xff] }
  0x78   :  { %1595 = vst [vmem:[%s3138_s2 + $0x760] sm:$0xff] %v1594_v44  ;;  %v1600_v47 = vld [vmem:[%s3139_s1 + $0x390] sm:$0xff]  ;;  %1597 = vst [vmem:[%s3138_s2 + $0x768] sm:$0xff] %v1596_v45  ;;  %v1602_v48 = vld [vmem:[%s3139_s1 + $0x398] sm:$0xff] }
  0x79   :  { %1599 = vst [vmem:[%s3138_s2 + $0x770] sm:$0xff] %v1598_v46  ;;  %1601 = vst [vmem:[%s3138_s2 + $0x778] sm:$0xff] %v1600_v47  ;;  %v1604_v49 = vld [vmem:[%s3139_s1 + $0x3a0] sm:$0xff]  ;;  %v1606_v50 = vld [vmem:[%s3139_s1 + $0x3a8] sm:$0xff] }
  0x7a   :  { %1603 = vst [vmem:[%s3138_s2 + $0x780] sm:$0xff] %v1602_v48  ;;  %1605 = vst [vmem:[%s3138_s2 + $0x788] sm:$0xff] %v1604_v49  ;;  %v1608_v51 = vld [vmem:[%s3139_s1 + $0x3b0] sm:$0xff]  ;;  %v1610_v52 = vld [vmem:[%s3139_s1 + $0x3b8] sm:$0xff] }
  0x7b   :  { %1607 = vst [vmem:[%s3138_s2 + $0x790] sm:$0xff] %v1606_v50  ;;  %v1612_v53 = vld [vmem:[%s3139_s1 + $0x3c0] sm:$0xff]  ;;  %1609 = vst [vmem:[%s3138_s2 + $0x798] sm:$0xff] %v1608_v51  ;;  %v1614_v54 = vld [vmem:[%s3139_s1 + $0x3c8] sm:$0xff] }
  0x7c   :  { %1611 = vst [vmem:[%s3138_s2 + $0x7a0] sm:$0xff] %v1610_v52  ;;  %1613 = vst [vmem:[%s3138_s2 + $0x7a8] sm:$0xff] %v1612_v53  ;;  %v1616_v55 = vld [vmem:[%s3139_s1 + $0x3d0] sm:$0xff]  ;;  %v1618_v56 = vld [vmem:[%s3139_s1 + $0x3d8] sm:$0xff] }
  0x7d   :  { %1615 = vst [vmem:[%s3138_s2 + $0x7b0] sm:$0xff] %v1614_v54  ;;  %1617 = vst [vmem:[%s3138_s2 + $0x7b8] sm:$0xff] %v1616_v55  ;;  %v1620_v57 = vld [vmem:[%s3139_s1 + $0x3e0] sm:$0xff] }
  0x7e   :  { %1619 = vst [vmem:[%s3138_s2 + $0x7c0] sm:$0xff] %v1618_v56  ;;  %1621 = vst [vmem:[%s3138_s2 + $0x7c8] sm:$0xff] %v1620_v57 }

// kernel: mlp_result_complex_forward.1
= control target key start
LH: loop header
LB: loop body
LE: loop exit
PB: predicated region body
PF: predicated region fallthrough
CT: control target
= control target key end

     0   :  { %vm165_vm0 = vcmask 130048   ;;  %vm1394_vm1 = vcmask 261120   ;;  %vm3712_vm2 = vcmask 31744   ;;  %s7469_s24 = smov 124   ;;  %s10052_s0 = inlined_call_operand.vmem [shape: f32[1000,16], index: 0, kind: input, shape index: {}]   ;;  %s10053_s1 = inlined_call_operand.vmem [shape: f32[16,32], index: 1, kind: input, shape index: {}]   ;;  %s10054_s2 = inlined_call_operand.vmem [shape: f32[1,32], index: 2, kind: input, shape index: {}]   ;;  %s10055_s3 = inlined_call_operand.vmem [shape: f32[32,32], index: 3, kind: input, shape index: {}]   ;;  %s10056_s4 = inlined_call_operand.vmem [shape: f32[1,32], index: 4, kind: input, shape index: {}]   ;;  %s10057_s5 = inlined_call_operand.vmem [shape: f32[32,8], index: 5, kind: input, shape index: {}]   ;;  %s10058_s6 = inlined_call_operand.vmem [shape: f32[1,8], index: 6, kind: input, shape index: {}]   ;;  %s10059_s7 = inlined_call_operand.vmem [shape: f32[1000,4], index: 7, kind: output, shape index: {0}]   ;;  %s10060_s8 = inlined_call_operand.vmem [shape: f32[1000,4], index: 8, kind: output, shape index: {1}]  }
   0x1   :  { %v156_v0 = vld [vmem:[%s10053_s1] sm:$0xff]  ;;  %v157_v1 = vld [vmem:[%s10053_s1 + $0x8] sm:$0xff]  ;;  %v30_v5 = vld [vmem:[%s10052_s0 + $0x10] sm:$0xff] }
   0x2   :  { %v28_v2 = vld [vmem:[%s10052_s0] sm:$0xff]  ;;  %v6930_v3 = vpack.c.bf16 %v157_v1, %v156_v0  ;;  %v29_v4 = vld [vmem:[%s10052_s0 + $0x8] sm:$0xff]  ;;  %v31_v6 = vld [vmem:[%s10052_s0 + $0x18] sm:$0xff] }
   0x3   :  { %6338 = vmatprep.mubr.msk.f32.mxu0 %vm165_vm0, %v28_v2  ;;  %v32_v7 = vld [vmem:[%s10052_s0 + $0x20] sm:$0xff]  ;;  %v33_v8 = vld [vmem:[%s10052_s0 + $0x28] sm:$0xff]  ;;  %v34_v9 = vld [vmem:[%s10052_s0 + $0x30] sm:$0xff] }
   0x4   :  { %6931 = vmatprep.subr.bf16.mxu0 %v6930_v3  ;;  %6950 = vmatprep.subr.bf16.mxu1 %v6930_v3  ;;  %v35_v10 = vld [vmem:[%s10052_s0 + $0x38] sm:$0xff]  ;;  %v36_v11 = vld [vmem:[%s10052_s0 + $0x40] sm:$0xff]  ;;  %v93_v13 = vld [vmem:[%s10052_s0 + $0x208] sm:$0xff] }
   0x5   :  { %6933 = vmatpush3.bf16.msra.mxu0 %v6930_v3  ;;  %6951 = vmatpush3.bf16.msra.mxu1 %v6930_v3  ;;  %v92_v12 = vld [vmem:[%s10052_s0 + $0x200] sm:$0xff]  ;;  %v1384_v15 = vld [vmem:[%s10055_s3 + $0x8] sm:$0xff]  ;;  %v94_v17 = vld [vmem:[%s10052_s0 + $0x210] sm:$0xff] }
   0x6   :  { %6434 = vmatprep.mubr.msk.f32.mxu1 %vm165_vm0, %v92_v12  ;;  %v1383_v14 = vld [vmem:[%s10055_s3] sm:$0xff]  ;;  %v37_v18 = vld [vmem:[%s10052_s0 + $0x48] sm:$0xff]  ;;  %v95_v19 = vld [vmem:[%s10052_s0 + $0x218] sm:$0xff] }
   0x7   :  { %v6934_v16 = vpack.c.bf16 %v1384_v15, %v1383_v14  ;;  %v38_v20 = vld [vmem:[%s10052_s0 + $0x50] sm:$0xff]  ;;  %v96_v21 = vld [vmem:[%s10052_s0 + $0x220] sm:$0xff]  ;;  %v39_v22 = vld [vmem:[%s10052_s0 + $0x58] sm:$0xff] }
   0x8   :  { %6339 = vmatmul.mubr.msk.f32.vlgmr.msra.gmra.mrb[0].mxu0 %vm165_vm0, %v29_v4  ;;  %6435 = vmatmul.mubr.msk.f32.vlgmr.msra.gmra.mrb[0].mxu1 %vm165_vm0, %v93_v13  ;;  %v97_v23 = vld [vmem:[%s10052_s0 + $0x228] sm:$0xff]  ;;  %v40_v24 = vld [vmem:[%s10052_s0 + $0x60] sm:$0xff]  ;;  %v98_v25 = vld [vmem:[%s10052_s0 + $0x230] sm:$0xff] }
   0x9   :  { %6341 = vmatprep.mubr.msk.f32.mxu0 %vm165_vm0, %v30_v5  ;;  %6437 = vmatprep.mubr.msk.f32.mxu1 %vm165_vm0, %v94_v17  ;;  %v41_v26 = vld [vmem:[%s10052_s0 + $0x68] sm:$0xff]  ;;  %v99_v27 = vld [vmem:[%s10052_s0 + $0x238] sm:$0xff]  ;;  %v42_v28 = vld [vmem:[%s10052_s0 + $0x70] sm:$0xff] }
   0xa   :  { %6935 = vmatprep.subr.bf16.mxu1 %v6934_v16  ;;  %v100_v29 = vld [vmem:[%s10052_s0 + $0x240] sm:$0xff]  ;;  %v43_v30 = vld [vmem:[%s10052_s0 + $0x78] sm:$0xff]  ;;  %v101_v31 = vld [vmem:[%s10052_s0 + $0x248] sm:$0xff] }
   0xb   :  { %6937 = vmatpush3.bf16.msra.mxu1 %v6934_v16  ;;  %v44_v32 = vld [vmem:[%s10052_s0 + $0x80] sm:$0xff]  ;;  %v102_v33 = vld [vmem:[%s10052_s0 + $0x250] sm:$0xff]  ;;  %v1386_v35 = vld [vmem:[%s10055_s3 + $0x18] sm:$0xff] }
   0xc   :  { %6342 = vmatmul.mubr.msk.f32.gmra.mrb[2].mxu0 %vm165_vm0, %v31_v6  ;;  %6438 = vmatmul.mubr.msk.f32.gmra.mrb[2].mxu1 %vm165_vm0, %v95_v19  ;;  %v1385_v34 = vld [vmem:[%s10055_s3 + $0x10] sm:$0xff]  ;;  %v45_v37 = vld [vmem:[%s10052_s0 + $0x88] sm:$0xff]  ;;  %v103_v38 = vld [vmem:[%s10052_s0 + $0x258] sm:$0xff] }
   0xd   :  { %6344 = vmatprep.mubr.msk.f32.mxu0 %vm165_vm0, %v32_v7  ;;  %6440 = vmatprep.mubr.msk.f32.mxu1 %vm165_vm0, %v96_v21  ;;  %v6938_v36 = vpack.c.bf16 %v1386_v35, %v1385_v34  ;;  %v46_v39 = vld [vmem:[%s10052_s0 + $0x90] sm:$0xff]  ;;  %v104_v40 = vld [vmem:[%s10052_s0 + $0x260] sm:$0xff]  ;;  %v47_v41 = vld [vmem:[%s10052_s0 + $0x98] sm:$0xff] }
   0xe   :  { %v105_v42 = vld [vmem:[%s10052_s0 + $0x268] sm:$0xff]  ;;  %v48_v43 = vld [vmem:[%s10052_s0 + $0xa0] sm:$0xff]  ;;  %v106_v44 = vld [vmem:[%s10052_s0 + $0x270] sm:$0xff] }
   0xf   :  { %6939 = vmatprep.subr.bf16.mxu1 %v6938_v36  ;;  %v49_v45 = vld [vmem:[%s10052_s0 + $0xa8] sm:$0xff]  ;;  %v107_v46 = vld [vmem:[%s10052_s0 + $0x278] sm:$0xff]  ;;  %v50_v47 = vld [vmem:[%s10052_s0 + $0xb0] sm:$0xff] }
  0x10   :  { %6345 = vmatmul.mubr.msk.f32.gmra.mrb[4].mxu0 %vm165_vm0, %v33_v8  ;;  %6441 = vmatmul.mubr.msk.f32.gmra.mrb[4].mxu1 %vm165_vm0, %v97_v23  ;;  %v108_v48 = vld [vmem:[%s10052_s0 + $0x280] sm:$0xff]  ;;  %v51_v49 = vld [vmem:[%s10052_s0 + $0xb8] sm:$0xff]  ;;  %v109_v50 = vld [vmem:[%s10052_s0 + $0x288] sm:$0xff] }
  0x11   :  { %6347 = vmatprep.mubr.msk.f32.mxu0 %vm165_vm0, %v34_v9  ;;  %6443 = vmatprep.mubr.msk.f32.mxu1 %vm165_vm0, %v98_v25  ;;  %v52_v51 = vld [vmem:[%s10052_s0 + $0xc0] sm:$0xff]  ;;  %v110_v52 = vld [vmem:[%s10052_s0 + $0x290] sm:$0xff]  ;;  %v53_v53 = vld [vmem:[%s10052_s0 + $0xc8] sm:$0xff] }
  0x12   :  { %6941 = vmatpush3.bf16.msra.mxu1 %v6938_v36  ;;  %v111_v54 = vld [vmem:[%s10052_s0 + $0x298] sm:$0xff]  ;;  %v54_v55 = vld [vmem:[%s10052_s0 + $0xd0] sm:$0xff]  ;;  %v112_v56 = vld [vmem:[%s10052_s0 + $0x2a0] sm:$0xff] }
  0x13   :  { %v55_v57 = vld [vmem:[%s10052_s0 + $0xd8] sm:$0xff]  ;;  %v113_v58 = vld [vmem:[%s10052_s0 + $0x2a8] sm:$0xff]  ;;  %v56_v59 = vld [vmem:[%s10052_s0 + $0xe0] sm:$0xff] }
  0x14   :  { %6348 = vmatmul.mubr.msk.f32.gmra.mrb[6].mxu0 %vm165_vm0, %v35_v10  ;;  %6444 = vmatmul.mubr.msk.f32.gmra.mrb[6].mxu1 %vm165_vm0, %v99_v27  ;;  %v114_v60 = vld [vmem:[%s10052_s0 + $0x2b0] sm:$0xff]  ;;  %v57_v61 = vld [vmem:[%s10052_s0 + $0xe8] sm:$0xff]  ;;  %v115_v62 = vld [vmem:[%s10052_s0 + $0x2b8] sm:$0xff] }
  0x15   :  { %6350 = vmatprep.mubr.msk.f32.mxu0 %vm165_vm0, %v36_v11  ;;  %6446 = vmatprep.mubr.msk.f32.mxu1 %vm165_vm0, %v100_v29  ;;  %v58_v63 = vld [vmem:[%s10052_s0 + $0xf0] sm:$0xff]  ;;  %v116_v0 = vld [vmem:[%s10052_s0 + $0x2c0] sm:$0xff]  ;;  %v59_v1 = vld [vmem:[%s10052_s0 + $0xf8] sm:$0xff] }
  0x16   :  { %v117_v2 = vld [vmem:[%s10052_s0 + $0x2c8] sm:$0xff]  ;;  %v60_v3 = vld [vmem:[%s10052_s0 + $0x100] sm:$0xff]  ;;  %v118_v4 = vld [vmem:[%s10052_s0 + $0x2d0] sm:$0xff] }
  0x17   :  { %v61_v5 = vld [vmem:[%s10052_s0 + $0x108] sm:$0xff]  ;;  %v119_v6 = vld [vmem:[%s10052_s0 + $0x2d8] sm:$0xff]  ;;  %v62_v7 = vld [vmem:[%s10052_s0 + $0x110] sm:$0xff] }
  0x18   :  { %6351 = vmatmul.mubr.msk.f32.gmra.mrb[8].mxu0 %vm165_vm0, %v37_v18  ;;  %6447 = vmatmul.mubr.msk.f32.gmra.mrb[8].mxu1 %vm165_vm0, %v101_v31  ;;  %v120_v8 = vld [vmem:[%s10052_s0 + $0x2e0] sm:$0xff]  ;;  %v63_v9 = vld [vmem:[%s10052_s0 + $0x118] sm:$0xff]  ;;  %v121_v10 = vld [vmem:[%s10052_s0 + $0x2e8] sm:$0xff] }
  0x19   :  { %6353 = vmatprep.mubr.msk.f32.mxu0 %vm165_vm0, %v38_v20  ;;  %6449 = vmatprep.mubr.msk.f32.mxu1 %vm165_vm0, %v102_v33  ;;  %v64_v11 = vld [vmem:[%s10052_s0 + $0x120] sm:$0xff]  ;;  %v122_v12 = vld [vmem:[%s10052_s0 + $0x2f0] sm:$0xff]  ;;  %v65_v13 = vld [vmem:[%s10052_s0 + $0x128] sm:$0xff] }
  0x1a   :  { %v123_v14 = vld [vmem:[%s10052_s0 + $0x2f8] sm:$0xff]  ;;  %v66_v15 = vld [vmem:[%s10052_s0 + $0x130] sm:$0xff]  ;;  %v124_v16 = vld [vmem:[%s10052_s0 + $0x300] sm:$0xff] }
  0x1b   :  { %v67_v17 = vld [vmem:[%s10052_s0 + $0x138] sm:$0xff]  ;;  %v125_v18 = vld [vmem:[%s10052_s0 + $0x308] sm:$0xff]  ;;  %v68_v19 = vld [vmem:[%s10052_s0 + $0x140] sm:$0xff] }
  0x1c   :  { %6354 = vmatmul.mubr.msk.f32.gmra.mrb[10].mxu0 %vm165_vm0, %v39_v22  ;;  %6450 = vmatmul.mubr.msk.f32.gmra.mrb[10].mxu1 %vm165_vm0, %v103_v38  ;;  %v126_v20 = vld [vmem:[%s10052_s0 + $0x310] sm:$0xff]  ;;  %v69_v21 = vld [vmem:[%s10052_s0 + $0x148] sm:$0xff]  ;;  %v127_v22 = vld [vmem:[%s10052_s0 + $0x318] sm:$0xff] }
  0x1d   :  { %6356 = vmatprep.mubr.msk.f32.mxu0 %vm165_vm0, %v40_v24  ;;  %6452 = vmatprep.mubr.msk.f32.mxu1 %vm165_vm0, %v104_v40  ;;  %v70_v23 = vld [vmem:[%s10052_s0 + $0x150] sm:$0xff]  ;;  %v128_v24 = vld [vmem:[%s10052_s0 + $0x320] sm:$0xff]  ;;  %v71_v25 = vld [vmem:[%s10052_s0 + $0x158] sm:$0xff] }
  0x1e   :  { %v72_v27 = vld [vmem:[%s10052_s0 + $0x160] sm:$0xff]  ;;  %v73_v29 = vld [vmem:[%s10052_s0 + $0x168] sm:$0xff]  ;;  %v74_v31 = vld [vmem:[%s10052_s0 + $0x170] sm:$0xff] }
  0x1f   :  { %v75_v33 = vld [vmem:[%s10052_s0 + $0x178] sm:$0xff]  ;;  %v133_v34 = vld [vmem:[%s10052_s0 + $0x348] sm:$0xff]  ;;  %v76_v35 = vld [vmem:[%s10052_s0 + $0x180] sm:$0xff] }
  0x20   :  { %6357 = vmatmul.mubr.msk.f32.gmra.mrb[12].mxu0 %vm165_vm0, %v41_v26  ;;  %6453 = vmatmul.mubr.msk.f32.gmra.mrb[12].mxu1 %vm165_vm0, %v105_v42  ;;  %v129_v26 = vld [vmem:[%s10052_s0 + $0x328] sm:$0xff]  ;;  %v134_v36 = vld [vmem:[%s10052_s0 + $0x350] sm:$0xff]  ;;  %v135_v38 = vld [vmem:[%s10052_s0 + $0x358] sm:$0xff] }
  0x21   :  { %6359 = vmatprep.mubr.msk.f32.mxu0 %vm165_vm0, %v42_v28  ;;  %6455 = vmatprep.mubr.msk.f32.mxu1 %vm165_vm0, %v106_v44  ;;  %v130_v28 = vld [vmem:[%s10052_s0 + $0x330] sm:$0xff]  ;;  %v136_v40 = vld [vmem:[%s10052_s0 + $0x360] sm:$0xff]  ;;  %v137_v42 = vld [vmem:[%s10052_s0 + $0x368] sm:$0xff] }
  0x22   :  { %v138_v44 = vld [vmem:[%s10052_s0 + $0x370] sm:$0xff] }
  0x24   :  { %6360 = vmatmul.mubr.msk.f32.gmra.mrb[14].mxu0 %vm165_vm0, %v43_v30  ;;  %6456 = vmatmul.mubr.msk.f32.gmra.mrb[14].mxu1 %vm165_vm0, %v107_v46  ;;  %v131_v30 = vld [vmem:[%s10052_s0 + $0x338] sm:$0xff] }
  0x25   :  { %6362 = vmatprep.mubr.msk.f32.mxu0 %vm165_vm0, %v44_v32  ;;  %6458 = vmatprep.mubr.msk.f32.mxu1 %vm165_vm0, %v108_v48  ;;  %v132_v32 = vld [vmem:[%s10052_s0 + $0x340] sm:$0xff]  ;;  %v139_v46 = vld [vmem:[%s10052_s0 + $0x378] sm:$0xff] }
  0x26   :  { %v140_v48 = vld [vmem:[%s10052_s0 + $0x380] sm:$0xff] }
  0x28   :  { %6363 = vmatmul.mubr.msk.f32.gmra.mrb[16].mxu0 %vm165_vm0, %v45_v37  ;;  %6459 = vmatmul.mubr.msk.f32.gmra.mrb[16].mxu1 %vm165_vm0, %v109_v50  ;;  %v77_v37 = vld [vmem:[%s10052_s0 + $0x188] sm:$0xff] }
  0x29   :  { %6365 = vmatprep.mubr.msk.f32.mxu0 %vm165_vm0, %v46_v39  ;;  %6461 = vmatprep.mubr.msk.f32.mxu1 %vm165_vm0, %v110_v52  ;;  %v78_v39 = vld [vmem:[%s10052_s0 + $0x190] sm:$0xff]  ;;  %v141_v50 = vld [vmem:[%s10052_s0 + $0x388] sm:$0xff] }
  0x2a   :  { %v142_v52 = vld [vmem:[%s10052_s0 + $0x390] sm:$0xff] }
  0x2c   :  { %6366 = vmatmul.mubr.msk.f32.gmra.mrb[18].mxu0 %vm165_vm0, %v47_v41  ;;  %6462 = vmatmul.mubr.msk.f32.gmra.mrb[18].mxu1 %vm165_vm0, %v111_v54  ;;  %v79_v41 = vld [vmem:[%s10052_s0 + $0x198] sm:$0xff] }
  0x2d   :  { %6368 = vmatprep.mubr.msk.f32.mxu0 %vm165_vm0, %v48_v43  ;;  %6464 = vmatprep.mubr.msk.f32.mxu1 %vm165_vm0, %v112_v56  ;;  %v80_v43 = vld [vmem:[%s10052_s0 + $0x1a0] sm:$0xff]  ;;  %v143_v54 = vld [vmem:[%s10052_s0 + $0x398] sm:$0xff] }
  0x2e   :  { %v144_v56 = vld [vmem:[%s10052_s0 + $0x3a0] sm:$0xff] }
  0x30   :  { %6369 = vmatmul.mubr.msk.f32.gmra.mrb[20].mxu0 %vm165_vm0, %v49_v45  ;;  %6465 = vmatmul.mubr.msk.f32.gmra.mrb[20].mxu1 %vm165_vm0, %v113_v58  ;;  %v81_v45 = vld [vmem:[%s10052_s0 + $0x1a8] sm:$0xff] }
  0x31   :  { %6371 = vmatprep.mubr.msk.f32.mxu0 %vm165_vm0, %v50_v47  ;;  %6467 = vmatprep.mubr.msk.f32.mxu1 %vm165_vm0, %v114_v60  ;;  %v82_v47 = vld [vmem:[%s10052_s0 + $0x1b0] sm:$0xff]  ;;  %v145_v58 = vld [vmem:[%s10052_s0 + $0x3a8] sm:$0xff] }
  0x32   :  { %v146_v60 = vld [vmem:[%s10052_s0 + $0x3b0] sm:$0xff] }
  0x34   :  { %6372 = vmatmul.mubr.msk.f32.gmra.mrb[22].mxu0 %vm165_vm0, %v51_v49  ;;  %6468 = vmatmul.mubr.msk.f32.gmra.mrb[22].mxu1 %vm165_vm0, %v115_v62  ;;  %v83_v49 = vld [vmem:[%s10052_s0 + $0x1b8] sm:$0xff] }
  0x35   :  { %6374 = vmatprep.mubr.msk.f32.mxu0 %vm165_vm0, %v52_v51  ;;  %6470 = vmatprep.mubr.msk.f32.mxu1 %vm165_vm0, %v116_v0  ;;  %v84_v51 = vld [vmem:[%s10052_s0 + $0x1c0] sm:$0xff]  ;;  %v147_v62 = vld [vmem:[%s10052_s0 + $0x3b8] sm:$0xff] }
  0x36   :  { %v148_v0 = vld [vmem:[%s10052_s0 + $0x3c0] sm:$0xff] }
  0x38   :  { %6375 = vmatmul.mubr.msk.f32.gmra.mrb[24].mxu0 %vm165_vm0, %v53_v53  ;;  %6471 = vmatmul.mubr.msk.f32.gmra.mrb[24].mxu1 %vm165_vm0, %v117_v2  ;;  %v85_v53 = vld [vmem:[%s10052_s0 + $0x1c8] sm:$0xff] }
  0x39   :  { %6377 = vmatprep.mubr.msk.f32.mxu0 %vm165_vm0, %v54_v55  ;;  %6473 = vmatprep.mubr.msk.f32.mxu1 %vm165_vm0, %v118_v4  ;;  %v86_v55 = vld [vmem:[%s10052_s0 + $0x1d0] sm:$0xff]  ;;  %v149_v2 = vld [vmem:[%s10052_s0 + $0x3c8] sm:$0xff]  ;;  %v151_v4 = vld [vmem:[%s10052_s0 + $0x3d8] sm:$0xff] }
  0x3c   :  { %6378 = vmatmul.mubr.msk.f32.gmra.mrb[26].mxu0 %vm165_vm0, %v55_v57  ;;  %6474 = vmatmul.mubr.msk.f32.gmra.mrb[26].mxu1 %vm165_vm0, %v119_v6  ;;  %v87_v57 = vld [vmem:[%s10052_s0 + $0x1d8] sm:$0xff]  ;;  %v153_v6 = vld [vmem:[%s10052_s0 + $0x3e8] sm:$0xff] }
  0x3d   :  { %6380 = vmatprep.mubr.msk.f32.mxu0 %vm165_vm0, %v56_v59  ;;  %6476 = vmatprep.mubr.msk.f32.mxu1 %vm165_vm0, %v120_v8  ;;  %v88_v59 = vld [vmem:[%s10052_s0 + $0x1e0] sm:$0xff]  ;;  %v155_v8 = vld [vmem:[%s10052_s0 + $0x3f8] sm:$0xff] }
  0x40   :  { %6381 = vmatmul.mubr.msk.f32.gmra.mrb[28].mxu0 %vm165_vm0, %v57_v61  ;;  %6477 = vmatmul.mubr.msk.f32.gmra.mrb[28].mxu1 %vm165_vm0, %v121_v10  ;;  %v89_v61 = vld [vmem:[%s10052_s0 + $0x1e8] sm:$0xff] }
  0x41   :  { %6383 = vmatprep.mubr.msk.f32.mxu0 %vm165_vm0, %v58_v63  ;;  %6479 = vmatprep.mubr.msk.f32.mxu1 %vm165_vm0, %v122_v12  ;;  %v90_v63 = vld [vmem:[%s10052_s0 + $0x1f0] sm:$0xff]  ;;  %v2613_v10 = vld [vmem:[%s10057_s5 + $0x8] sm:$0xff]  ;;  %v8054_v12 = vld [vmem:[%s10054_s2] ss:$0 sm:$0xff] }
  0x44   :  { %6384 = vmatmul.mubr.msk.f32.gmra.mrb[30].mxu0 %vm165_vm0, %v59_v1  ;;  %6480 = vmatmul.mubr.msk.f32.gmra.mrb[30].mxu1 %vm165_vm0, %v123_v14  ;;  %v91_v1 = vld [vmem:[%s10052_s0 + $0x1f8] sm:$0xff] }
  0x45   :  { %6386 = vmatprep.mubr.msk.f32.mxu0 %vm165_vm0, %v60_v3  ;;  %6482 = vmatprep.mubr.msk.f32.mxu1 %vm165_vm0, %v124_v16  ;;  %v150_v3 = vld [vmem:[%s10052_s0 + $0x3d0] sm:$0xff] }
  0x48   :  { %6387 = vmatmul.mubr.msk.f32.gmra.mrb[32].mxu0 %vm165_vm0, %v61_v5  ;;  %6483 = vmatmul.mubr.msk.f32.gmra.mrb[32].mxu1 %vm165_vm0, %v125_v18  ;;  %v152_v5 = vld [vmem:[%s10052_s0 + $0x3e0] sm:$0xff] }
  0x49   :  { %6389 = vmatprep.mubr.msk.f32.mxu0 %vm165_vm0, %v62_v7  ;;  %6485 = vmatprep.mubr.msk.f32.mxu1 %vm165_vm0, %v126_v20  ;;  %v154_v7 = vld [vmem:[%s10052_s0 + $0x3f0] sm:$0xff] }
  0x4c   :  { %6390 = vmatmul.mubr.msk.f32.gmra.mrb[34].mxu0 %vm165_vm0, %v63_v9  ;;  %6486 = vmatmul.mubr.msk.f32.gmra.mrb[34].mxu1 %vm165_vm0, %v127_v22  ;;  %v2612_v9 = vld [vmem:[%s10057_s5] sm:$0xff] }
  0x4d   :  { %6392 = vmatprep.mubr.msk.f32.mxu0 %vm165_vm0, %v64_v11  ;;  %6488 = vmatprep.mubr.msk.f32.mxu1 %vm165_vm0, %v128_v24  ;;  %v6942_v11 = vpack.c.bf16 %v2613_v10, %v2612_v9 }
  0x4f   :  { %6943 = vmatprep.subr.bf16.mxu0 %v6942_v11 }
  0x50   :  { %6393 = vmatmul.mubr.msk.f32.gmra.mrb[36].mxu0 %vm165_vm0, %v65_v13  ;;  %6489 = vmatmul.mubr.msk.f32.gmra.mrb[36].mxu1 %vm165_vm0, %v129_v26 }
  0x51   :  { %6395 = vmatprep.mubr.msk.f32.mxu0 %vm165_vm0, %v66_v15  ;;  %6491 = vmatprep.mubr.msk.f32.mxu1 %vm165_vm0, %v130_v28 }
  0x52   :  { %6945 = vmatpush3.bf16.msra.mxu0 %v6942_v11 }
  0x54   :  { %6396 = vmatmul.mubr.msk.f32.gmra.mrb[38].mxu0 %vm165_vm0, %v67_v17  ;;  %6492 = vmatmul.mubr.msk.f32.gmra.mrb[38].mxu1 %vm165_vm0, %v131_v30 }
  0x55   :  { %6398 = vmatprep.mubr.msk.f32.mxu0 %vm165_vm0, %v68_v19  ;;  %6494 = vmatprep.mubr.msk.f32.mxu1 %vm165_vm0, %v132_v32 }
  0x58   :  { %6399 = vmatmul.mubr.msk.f32.gmra.mrb[40].mxu0 %vm165_vm0, %v69_v21  ;;  %6495 = vmatmul.mubr.msk.f32.gmra.mrb[40].mxu1 %vm165_vm0, %v133_v34 }
  0x59   :  { %6401 = vmatprep.mubr.msk.f32.mxu0 %vm165_vm0, %v70_v23  ;;  %6497 = vmatprep.mubr.msk.f32.mxu1 %vm165_vm0, %v134_v36 }
  0x5c   :  { %6402 = vmatmul.mubr.msk.f32.gmra.mrb[42].mxu0 %vm165_vm0, %v71_v25  ;;  %6498 = vmatmul.mubr.msk.f32.gmra.mrb[42].mxu1 %vm165_vm0, %v135_v38 }
  0x5d   :  { %6404 = vmatprep.mubr.msk.f32.mxu0 %vm165_vm0, %v72_v27  ;;  %6500 = vmatprep.mubr.msk.f32.mxu1 %vm165_vm0, %v136_v40 }
  0x60   :  { %6405 = vmatmul.mubr.msk.f32.gmra.mrb[44].mxu0 %vm165_vm0, %v73_v29  ;;  %6501 = vmatmul.mubr.msk.f32.gmra.mrb[44].mxu1 %vm165_vm0, %v137_v42 }
  0x61   :  { %6407 = vmatprep.mubr.msk.f32.mxu0 %vm165_vm0, %v74_v31  ;;  %6503 = vmatprep.mubr.msk.f32.mxu1 %vm165_vm0, %v138_v44 }
  0x64   :  { %6408 = vmatmul.mubr.msk.f32.gmra.mrb[46].mxu0 %vm165_vm0, %v75_v33  ;;  %6504 = vmatmul.mubr.msk.f32.gmra.mrb[46].mxu1 %vm165_vm0, %v139_v46 }
  0x65   :  { %6410 = vmatprep.mubr.msk.f32.mxu0 %vm165_vm0, %v76_v35  ;;  %6506 = vmatprep.mubr.msk.f32.mxu1 %vm165_vm0, %v140_v48 }
  0x68   :  { %6411 = vmatmul.mubr.msk.f32.gmra.mrb[48].mxu0 %vm165_vm0, %v77_v37  ;;  %6507 = vmatmul.mubr.msk.f32.gmra.mrb[48].mxu1 %vm165_vm0, %v141_v50 }
  0x69   :  { %6413 = vmatprep.mubr.msk.f32.mxu0 %vm165_vm0, %v78_v39  ;;  %6509 = vmatprep.mubr.msk.f32.mxu1 %vm165_vm0, %v142_v52 }
  0x6c   :  { %6414 = vmatmul.mubr.msk.f32.gmra.mrb[50].mxu0 %vm165_vm0, %v79_v41  ;;  %6510 = vmatmul.mubr.msk.f32.gmra.mrb[50].mxu1 %vm165_vm0, %v143_v54 }
  0x6d   :  { %6416 = vmatprep.mubr.msk.f32.mxu0 %vm165_vm0, %v80_v43  ;;  %6512 = vmatprep.mubr.msk.f32.mxu1 %vm165_vm0, %v144_v56 }
  0x70   :  { %6417 = vmatmul.mubr.msk.f32.gmra.mrb[52].mxu0 %vm165_vm0, %v81_v45  ;;  %6513 = vmatmul.mubr.msk.f32.gmra.mrb[52].mxu1 %vm165_vm0, %v145_v58 }
  0x71   :  { %6419 = vmatprep.mubr.msk.f32.mxu0 %vm165_vm0, %v82_v47  ;;  %6515 = vmatprep.mubr.msk.f32.mxu1 %vm165_vm0, %v146_v60 }
  0x74   :  { %6420 = vmatmul.mubr.msk.f32.gmra.mrb[54].mxu0 %vm165_vm0, %v83_v49  ;;  %6516 = vmatmul.mubr.msk.f32.gmra.mrb[54].mxu1 %vm165_vm0, %v147_v62 }
  0x75   :  { %6422 = vmatprep.mubr.msk.f32.mxu0 %vm165_vm0, %v84_v51  ;;  %6518 = vmatprep.mubr.msk.f32.mxu1 %vm165_vm0, %v148_v0 }
  0x78   :  { %6423 = vmatmul.mubr.msk.f32.gmra.mrb[56].mxu0 %vm165_vm0, %v85_v53  ;;  %6519 = vmatmul.mubr.msk.f32.gmra.mrb[56].mxu1 %vm165_vm0, %v149_v2 }
  0x79   :  { %6425 = vmatprep.mubr.msk.f32.mxu0 %vm165_vm0, %v86_v55  ;;  %6521 = vmatprep.mubr.msk.f32.mxu1 %vm165_vm0, %v150_v3 }
  0x7c   :  { %6426 = vmatmul.mubr.msk.f32.gmra.mrb[58].mxu0 %vm165_vm0, %v87_v57  ;;  %6522 = vmatmul.mubr.msk.f32.gmra.mrb[58].mxu1 %vm165_vm0, %v151_v4 }
  0x7d   :  { %6428 = vmatprep.mubr.msk.f32.mxu0 %vm165_vm0, %v88_v59  ;;  %6524 = vmatprep.mubr.msk.f32.mxu1 %vm165_vm0, %v152_v5 }
  0x80   :  { %6429 = vmatmul.mubr.msk.f32.gmra.mrb[60].mxu0 %vm165_vm0, %v89_v61  ;;  %6525 = vmatmul.mubr.msk.f32.gmra.mrb[60].mxu1 %vm165_vm0, %v153_v6 }
  0x81   :  { %6431 = vmatprep.mubr.msk.f32.mxu0 %vm165_vm0, %v90_v63  ;;  %6527 = vmatprep.mubr.msk.f32.mxu1 %vm165_vm0, %v154_v7 }
  0x84   :  { %6432 = vmatmul.mubr.msk.f32.gmra.mrb[62].mxu0 %vm165_vm0, %v91_v1  ;;  %6528 = vmatmul.mubr.msk.f32.gmra.mrb[62].mxu1 %vm165_vm0, %v155_v8 }
  0xdb   :  { %v6340_v13 = vpop.f32.mrb[0].mxu0  ;;  %v8062_v26 = vpop.f32.mrb[0].mxu1 }
  0xdc   :  { %v622_v14 = vadd.f32 %v6340_v13, %v8054_v12  ;;  %v616_v15 = vpop.f32.mrb[1].mxu0  ;;  %v8065_v29 = vpop.f32.mrb[1].mxu1 }
  0xdd   :  { %v617_v16 = vadd.f32 %v8054_v12, %v616_v15 }
  0xdf   :  { %6953 = vtanh.f32 %v617_v16  ;;  %v6343_v17 = vpop.f32.mrb[2].mxu0  ;;  %v8070_v34 = vpop.f32.mrb[2].mxu1 }
  0xe0   :  { %6955 = vtanh.f32 %v622_v14  ;;  %v632_v18 = vadd.f32 %v6343_v17, %v8054_v12  ;;  %v626_v19 = vpop.f32.mrb[3].mxu0  ;;  %v8073_v37 = vpop.f32.mrb[3].mxu1 }
  0xe1   :  { %v627_v20 = vadd.f32 %v8054_v12, %v626_v19 }
  0xe3   :  { %6957 = vtanh.f32 %v627_v20  ;;  %v6346_v21 = vpop.f32.mrb[4].mxu0  ;;  %v8078_v42 = vpop.f32.mrb[4].mxu1 }
  0xe4   :  { %6959 = vtanh.f32 %v632_v18  ;;  %v642_v22 = vadd.f32 %v6346_v21, %v8054_v12  ;;  %v636_v23 = vpop.f32.mrb[5].mxu0  ;;  %v8081_v45 = vpop.f32.mrb[5].mxu1 }
  0xe5   :  { %v637_v24 = vadd.f32 %v8054_v12, %v636_v23 }
  0xe7   :  { %6961 = vtanh.f32 %v637_v24  ;;  %v6349_v25 = vpop.f32.mrb[6].mxu0  ;;  %v8086_v50 = vpop.f32.mrb[6].mxu1 }
  0xe8   :  { %6963 = vtanh.f32 %v642_v22  ;;  %v652_v27 = vadd.f32 %v6349_v25, %v8054_v12  ;;  %v646_v28 = vpop.f32.mrb[7].mxu0  ;;  %v8089_v53 = vpop.f32.mrb[7].mxu1 }
  0xe9   :  { %v6954_v30 = vpop.eup %6953  ;;  %v647_v31 = vadd.f32 %v8054_v12, %v646_v28 }
  0xea   :  { %v6956_v32 = vpop.eup %6955  ;;  %6538 = vmatprep.mubr.msk.f32.mxu1 %vm1394_vm1, %v6954_v30 }
  0xeb   :  { %6965 = vtanh.f32 %v647_v31  ;;  %v6352_v33 = vpop.f32.mrb[8].mxu0  ;;  %6539 = vmatmul.mubr.msk.f32.vlgmr.msra.gmra.mrb[64].mxu1 %vm1394_vm1, %v6956_v32  ;;  %v8094_v58 = vpop.f32.mrb[8].mxu1 }
  0xec   :  { %6967 = vtanh.f32 %v652_v27  ;;  %v662_v35 = vadd.f32 %v6352_v33, %v8054_v12  ;;  %v656_v36 = vpop.f32.mrb[9].mxu0  ;;  %v8097_v61 = vpop.f32.mrb[9].mxu1 }
  0xed   :  { %v6958_v38 = vpop.eup %6957  ;;  %v657_v39 = vadd.f32 %v8054_v12, %v656_v36 }
  0xee   :  { %v6960_v40 = vpop.eup %6959  ;;  %6541 = vmatprep.mubr.msk.f32.mxu1 %vm1394_vm1, %v6958_v38 }
  0xef   :  { %6969 = vtanh.f32 %v657_v39  ;;  %v6355_v41 = vpop.f32.mrb[10].mxu0  ;;  %6542 = vmatmul.mubr.msk.f32.gmra.mrb[66].mxu1 %vm1394_vm1, %v6960_v40  ;;  %v8102_v2 = vpop.f32.mrb[10].mxu1 }
  0xf0   :  { %6971 = vtanh.f32 %v662_v35  ;;  %v672_v43 = vadd.f32 %v6355_v41, %v8054_v12  ;;  %v666_v44 = vpop.f32.mrb[11].mxu0  ;;  %v8105_v5 = vpop.f32.mrb[11].mxu1 }
  0xf1   :  { %v6962_v46 = vpop.eup %6961  ;;  %v667_v47 = vadd.f32 %v8054_v12, %v666_v44  ;;  %v2614_v44 = vld [vmem:[%s10057_s5 + $0x10] sm:$0xff] }
  0xf2   :  { %v6964_v48 = vpop.eup %6963  ;;  %6544 = vmatprep.mubr.msk.f32.mxu1 %vm1394_vm1, %v6962_v46  ;;  %v2615_v46 = vld [vmem:[%s10057_s5 + $0x18] sm:$0xff] }
  0xf3   :  { %6973 = vtanh.f32 %v667_v47  ;;  %v6358_v49 = vpop.f32.mrb[12].mxu0  ;;  %6545 = vmatmul.mubr.msk.f32.gmra.mrb[68].mxu1 %vm1394_vm1, %v6964_v48  ;;  %v8110_v10 = vpop.f32.mrb[12].mxu1 }
  0xf4   :  { %6975 = vtanh.f32 %v672_v43  ;;  %v682_v51 = vadd.f32 %v6358_v49, %v8054_v12  ;;  %v676_v52 = vpop.f32.mrb[13].mxu0  ;;  %v8113_v14 = vpop.f32.mrb[13].mxu1  ;;  %v6946_v49 = vpack.c.bf16 %v2615_v46, %v2614_v44 }
  0xf5   :  { %v6966_v54 = vpop.eup %6965  ;;  %v677_v55 = vadd.f32 %v8054_v12, %v676_v52 }
  0xf6   :  { %v6968_v56 = vpop.eup %6967  ;;  %6547 = vmatprep.mubr.msk.f32.mxu1 %vm1394_vm1, %v6966_v54  ;;  %6947 = vmatprep.subr.bf16.mxu0 %v6946_v49 }
  0xf7   :  { %6977 = vtanh.f32 %v677_v55  ;;  %v6361_v57 = vpop.f32.mrb[14].mxu0  ;;  %6548 = vmatmul.mubr.msk.f32.gmra.mrb[70].mxu1 %vm1394_vm1, %v6968_v56  ;;  %v8118_v19 = vpop.f32.mrb[14].mxu1  ;;  %6949 = vmatpush3.bf16.msra.mxu0 %v6946_v49 }
  0xf8   :  { %6979 = vtanh.f32 %v682_v51  ;;  %v692_v59 = vadd.f32 %v6361_v57, %v8054_v12  ;;  %v686_v60 = vpop.f32.mrb[15].mxu0  ;;  %v8121_v22 = vpop.f32.mrb[15].mxu1 }
  0xf9   :  { %v6970_v62 = vpop.eup %6969  ;;  %v687_v63 = vadd.f32 %v8054_v12, %v686_v60 }
  0xfa   :  { %v6972_v0 = vpop.eup %6971  ;;  %6550 = vmatprep.mubr.msk.f32.mxu1 %vm1394_vm1, %v6970_v62 }
  0xfb   :  { %6981 = vtanh.f32 %v687_v63  ;;  %v6364_v1 = vpop.f32.mrb[16].mxu0  ;;  %6551 = vmatmul.mubr.msk.f32.gmra.mrb[72].mxu1 %vm1394_vm1, %v6972_v0  ;;  %v8126_v28 = vpop.f32.mrb[16].mxu1 }
  0xfc   :  { %6983 = vtanh.f32 %v692_v59  ;;  %v702_v3 = vadd.f32 %v6364_v1, %v8054_v12  ;;  %v696_v4 = vpop.f32.mrb[17].mxu0  ;;  %v8129_v32 = vpop.f32.mrb[17].mxu1 }
  0xfd   :  { %v6974_v6 = vpop.eup %6973  ;;  %v697_v7 = vadd.f32 %v8054_v12, %v696_v4 }
  0xfe   :  { %v6976_v8 = vpop.eup %6975  ;;  %6553 = vmatprep.mubr.msk.f32.mxu1 %vm1394_vm1, %v6974_v6 }
  0xff   :  { %6985 = vtanh.f32 %v697_v7  ;;  %v6367_v9 = vpop.f32.mrb[18].mxu0  ;;  %6554 = vmatmul.mubr.msk.f32.gmra.mrb[74].mxu1 %vm1394_vm1, %v6976_v8  ;;  %v8134_v39 = vpop.f32.mrb[18].mxu1 }
 0x100   :  { %6987 = vtanh.f32 %v702_v3  ;;  %v712_v11 = vadd.f32 %v6367_v9, %v8054_v12  ;;  %v706_v13 = vpop.f32.mrb[19].mxu0  ;;  %v8137_v43 = vpop.f32.mrb[19].mxu1 }
 0x101   :  { %v6978_v15 = vpop.eup %6977  ;;  %v707_v16 = vadd.f32 %v8054_v12, %v706_v13 }
 0x102   :  { %v6980_v17 = vpop.eup %6979  ;;  %6556 = vmatprep.mubr.msk.f32.mxu1 %vm1394_vm1, %v6978_v15 }
 0x103   :  { %6989 = vtanh.f32 %v707_v16  ;;  %v6370_v18 = vpop.f32.mrb[20].mxu0  ;;  %6557 = vmatmul.mubr.msk.f32.gmra.mrb[76].mxu1 %vm1394_vm1, %v6980_v17  ;;  %v8148_v54 = vpop.f32.mrb[20].mxu1 }
 0x104   :  { %6991 = vtanh.f32 %v712_v11  ;;  %v722_v20 = vadd.f32 %v6370_v18, %v8054_v12  ;;  %v716_v21 = vpop.f32.mrb[21].mxu0  ;;  %v8151_v57 = vpop.f32.mrb[21].mxu1 }
 0x105   :  { %v6982_v23 = vpop.eup %6981  ;;  %v717_v24 = vadd.f32 %v8054_v12, %v716_v21 }
 0x106   :  { %v6984_v25 = vpop.eup %6983  ;;  %6559 = vmatprep.mubr.msk.f32.mxu1 %vm1394_vm1, %v6982_v23 }
 0x107   :  { %6993 = vtanh.f32 %v717_v24  ;;  %v6373_v27 = vpop.f32.mrb[22].mxu0  ;;  %6560 = vmatmul.mubr.msk.f32.gmra.mrb[78].mxu1 %vm1394_vm1, %v6984_v25  ;;  %v8156_v0 = vpop.f32.mrb[22].mxu1 }
 0x108   :  { %6995 = vtanh.f32 %v722_v20  ;;  %v732_v30 = vadd.f32 %v6373_v27, %v8054_v12  ;;  %v726_v31 = vpop.f32.mrb[23].mxu0  ;;  %v8159_v4 = vpop.f32.mrb[23].mxu1 }
 0x109   :  { %v6986_v33 = vpop.eup %6985  ;;  %v727_v35 = vadd.f32 %v8054_v12, %v726_v31 }
 0x10a   :  { %v6988_v36 = vpop.eup %6987  ;;  %6562 = vmatprep.mubr.msk.f32.mxu1 %vm1394_vm1, %v6986_v33 }
 0x10b   :  { %6997 = vtanh.f32 %v727_v35  ;;  %v6376_v38 = vpop.f32.mrb[24].mxu0  ;;  %6563 = vmatmul.mubr.msk.f32.gmra.mrb[80].mxu1 %vm1394_vm1, %v6988_v36  ;;  %v8164_v11 = vpop.f32.mrb[24].mxu1 }
 0x10c   :  { %6999 = vtanh.f32 %v732_v30  ;;  %v742_v40 = vadd.f32 %v6376_v38, %v8054_v12  ;;  %v736_v41 = vpop.f32.mrb[25].mxu0  ;;  %v8167_v16 = vpop.f32.mrb[25].mxu1 }
 0x10d   :  { %v6990_v47 = vpop.eup %6989  ;;  %v737_v48 = vadd.f32 %v8054_v12, %v736_v41 }
 0x10e   :  { %v6992_v51 = vpop.eup %6991  ;;  %6565 = vmatprep.mubr.msk.f32.mxu1 %vm1394_vm1, %v6990_v47 }
 0x10f   :  { %7001 = vtanh.f32 %v737_v48  ;;  %v6379_v52 = vpop.f32.mrb[26].mxu0  ;;  %6566 = vmatmul.mubr.msk.f32.gmra.mrb[82].mxu1 %vm1394_vm1, %v6992_v51  ;;  %v8172_v23 = vpop.f32.mrb[26].mxu1 }
 0x110   :  { %7003 = vtanh.f32 %v742_v40  ;;  %v752_v55 = vadd.f32 %v6379_v52, %v8054_v12  ;;  %v746_v56 = vpop.f32.mrb[27].mxu0  ;;  %v8175_v27 = vpop.f32.mrb[27].mxu1 }
 0x111   :  { %v6994_v59 = vpop.eup %6993  ;;  %v747_v60 = vadd.f32 %v8054_v12, %v746_v56 }
 0x112   :  { %v6996_v62 = vpop.eup %6995  ;;  %6568 = vmatprep.mubr.msk.f32.mxu1 %vm1394_vm1, %v6994_v59 }
 0x113   :  { %7005 = vtanh.f32 %v747_v60  ;;  %v6382_v63 = vpop.f32.mrb[28].mxu0  ;;  %6569 = vmatmul.mubr.msk.f32.gmra.mrb[84].mxu1 %vm1394_vm1, %v6996_v62  ;;  %v8180_v36 = vpop.f32.mrb[28].mxu1 }
 0x114   :  { %7007 = vtanh.f32 %v752_v55  ;;  %v762_v1 = vadd.f32 %v6382_v63, %v8054_v12  ;;  %v756_v3 = vpop.f32.mrb[29].mxu0  ;;  %v8183_v41 = vpop.f32.mrb[29].mxu1 }
 0x115   :  { %v6998_v6 = vpop.eup %6997  ;;  %v757_v7 = vadd.f32 %v8054_v12, %v756_v3 }
 0x116   :  { %v7000_v8 = vpop.eup %6999  ;;  %6571 = vmatprep.mubr.msk.f32.mxu1 %vm1394_vm1, %v6998_v6 }
 0x117   :  { %7009 = vtanh.f32 %v757_v7  ;;  %v6385_v9 = vpop.f32.mrb[30].mxu0  ;;  %6572 = vmatmul.mubr.msk.f32.gmra.mrb[86].mxu1 %vm1394_vm1, %v7000_v8  ;;  %v8188_v49 = vpop.f32.mrb[30].mxu1 }
 0x118   :  { %7011 = vtanh.f32 %v762_v1  ;;  %v772_v13 = vadd.f32 %v6385_v9, %v8054_v12  ;;  %v766_v15 = vpop.f32.mrb[31].mxu0  ;;  %v8191_v55 = vpop.f32.mrb[31].mxu1 }
 0x119   :  { %v7002_v17 = vpop.eup %7001  ;;  %v767_v18 = vadd.f32 %v8054_v12, %v766_v15 }
 0x11a   :  { %v7004_v20 = vpop.eup %7003  ;;  %6574 = vmatprep.mubr.msk.f32.mxu1 %vm1394_vm1, %v7002_v17 }
 0x11b   :  { %7013 = vtanh.f32 %v767_v18  ;;  %v6388_v21 = vpop.f32.mrb[32].mxu0  ;;  %6575 = vmatmul.mubr.msk.f32.gmra.mrb[88].mxu1 %vm1394_vm1, %v7004_v20  ;;  %v8196_v63 = vpop.f32.mrb[32].mxu1 }
 0x11c   :  { %7015 = vtanh.f32 %v772_v13  ;;  %v782_v24 = vadd.f32 %v6388_v21, %v8054_v12  ;;  %v776_v25 = vpop.f32.mrb[33].mxu0  ;;  %v8199_v6 = vpop.f32.mrb[33].mxu1 }
 0x11d   :  { %v7006_v30 = vpop.eup %7005  ;;  %v777_v31 = vadd.f32 %v8054_v12, %v776_v25 }
 0x11e   :  { %v7008_v33 = vpop.eup %7007  ;;  %6577 = vmatprep.mubr.msk.f32.mxu1 %vm1394_vm1, %v7006_v30 }
 0x11f   :  { %7017 = vtanh.f32 %v777_v31  ;;  %v6391_v35 = vpop.f32.mrb[34].mxu0  ;;  %6578 = vmatmul.mubr.msk.f32.gmra.mrb[90].mxu1 %vm1394_vm1, %v7008_v33  ;;  %v8204_v15 = vpop.f32.mrb[34].mxu1 }
 0x120   :  { %7019 = vtanh.f32 %v782_v24  ;;  %v792_v38 = vadd.f32 %v6391_v35, %v8054_v12  ;;  %v786_v40 = vpop.f32.mrb[35].mxu0  ;;  %v8207_v20 = vpop.f32.mrb[35].mxu1 }
 0x121   :  { %v7010_v44 = vpop.eup %7009  ;;  %v787_v46 = vadd.f32 %v8054_v12, %v786_v40 }
 0x122   :  { %v7012_v47 = vpop.eup %7011  ;;  %6580 = vmatprep.mubr.msk.f32.mxu1 %vm1394_vm1, %v7010_v44 }
 0x123   :  { %7021 = vtanh.f32 %v787_v46  ;;  %v6394_v48 = vpop.f32.mrb[36].mxu0  ;;  %6581 = vmatmul.mubr.msk.f32.gmra.mrb[92].mxu1 %vm1394_vm1, %v7012_v47  ;;  %v8212_v31 = vpop.f32.mrb[36].mxu1 }
 0x124   :  { %7023 = vtanh.f32 %v792_v38  ;;  %v802_v51 = vadd.f32 %v6394_v48, %v8054_v12  ;;  %v796_v52 = vpop.f32.mrb[37].mxu0  ;;  %v8215_v38 = vpop.f32.mrb[37].mxu1 }
 0x125   :  { %v7014_v56 = vpop.eup %7013  ;;  %v797_v59 = vadd.f32 %v8054_v12, %v796_v52 }
 0x126   :  { %v7016_v60 = vpop.eup %7015  ;;  %6583 = vmatprep.mubr.msk.f32.mxu1 %vm1394_vm1, %v7014_v56 }
 0x127   :  { %7025 = vtanh.f32 %v797_v59  ;;  %v6397_v62 = vpop.f32.mrb[38].mxu0  ;;  %6584 = vmatmul.mubr.msk.f32.gmra.mrb[94].mxu1 %vm1394_vm1, %v7016_v60  ;;  %v8220_v48 = vpop.f32.mrb[38].mxu1 }
 0x128   :  { %7027 = vtanh.f32 %v802_v51  ;;  %v812_v1 = vadd.f32 %v6397_v62, %v8054_v12  ;;  %v806_v3 = vpop.f32.mrb[39].mxu0  ;;  %v8223_v56 = vpop.f32.mrb[39].mxu1 }
 0x129   :  { %v7018_v7 = vpop.eup %7017  ;;  %v807_v8 = vadd.f32 %v8054_v12, %v806_v3 }
 0x12a   :  { %v7020_v9 = vpop.eup %7019  ;;  %6586 = vmatprep.mubr.msk.f32.mxu1 %vm1394_vm1, %v7018_v7 }
 0x12b   :  { %7029 = vtanh.f32 %v807_v8  ;;  %v6400_v13 = vpop.f32.mrb[40].mxu0  ;;  %6587 = vmatmul.mubr.msk.f32.gmra.mrb[96].mxu1 %vm1394_vm1, %v7020_v9  ;;  %v8228_v3 = vpop.f32.mrb[40].mxu1 }
 0x12c   :  { %7031 = vtanh.f32 %v812_v1  ;;  %v822_v17 = vadd.f32 %v6400_v13, %v8054_v12  ;;  %v816_v18 = vpop.f32.mrb[41].mxu0  ;;  %v8231_v9 = vpop.f32.mrb[41].mxu1 }
 0x12d   :  { %v7022_v21 = vpop.eup %7021  ;;  %v817_v24 = vadd.f32 %v8054_v12, %v816_v18 }
 0x12e   :  { %v7024_v25 = vpop.eup %7023  ;;  %6589 = vmatprep.mubr.msk.f32.mxu1 %vm1394_vm1, %v7022_v21 }
 0x12f   :  { %7033 = vtanh.f32 %v817_v24  ;;  %v6403_v30 = vpop.f32.mrb[42].mxu0  ;;  %6590 = vmatmul.mubr.msk.f32.gmra.mrb[98].mxu1 %vm1394_vm1, %v7024_v25  ;;  %v8236_v24 = vpop.f32.mrb[42].mxu1 }
 0x130   :  { %7035 = vtanh.f32 %v822_v17  ;;  %v832_v33 = vadd.f32 %v6403_v30, %v8054_v12  ;;  %v826_v35 = vpop.f32.mrb[43].mxu0 }
 0x131   :  { %v7026_v40 = vpop.eup %7025  ;;  %v827_v44 = vadd.f32 %v8054_v12, %v826_v35 }
 0x132   :  { %v7028_v46 = vpop.eup %7027  ;;  %6592 = vmatprep.mubr.msk.f32.mxu1 %vm1394_vm1, %v7026_v40 }
 0x133   :  { %7037 = vtanh.f32 %v827_v44  ;;  %v6406_v47 = vpop.f32.mrb[44].mxu0  ;;  %6593 = vmatmul.mubr.msk.f32.gmra.mrb[100].mxu1 %vm1394_vm1, %v7028_v46 }
 0x134   :  { %7039 = vtanh.f32 %v832_v33  ;;  %v842_v51 = vadd.f32 %v6406_v47, %v8054_v12  ;;  %v836_v52 = vpop.f32.mrb[45].mxu0  ;;  %v8239_v33 = vpop.f32.mrb[43].mxu1 }
 0x135   :  { %v7030_v59 = vpop.eup %7029  ;;  %v837_v60 = vadd.f32 %v8054_v12, %v836_v52  ;;  %v8244_v47 = vpop.f32.mrb[44].mxu1 }
 0x136   :  { %v7032_v62 = vpop.eup %7031  ;;  %6595 = vmatprep.mubr.msk.f32.mxu1 %vm1394_vm1, %v7030_v59  ;;  %v8247_v59 = vpop.f32.mrb[45].mxu1 }
 0x137   :  { %7041 = vtanh.f32 %v837_v60  ;;  %v6409_v1 = vpop.f32.mrb[46].mxu0  ;;  %6596 = vmatmul.mubr.msk.f32.gmra.mrb[102].mxu1 %vm1394_vm1, %v7032_v62 }
 0x138   :  { %7043 = vtanh.f32 %v842_v51  ;;  %v852_v7 = vadd.f32 %v6409_v1, %v8054_v12  ;;  %v846_v8 = vpop.f32.mrb[47].mxu0 }
 0x139   :  { %v7034_v13 = vpop.eup %7033  ;;  %v847_v17 = vadd.f32 %v8054_v12, %v846_v8  ;;  %v8252_v8 = vpop.f32.mrb[46].mxu1 }
 0x13a   :  { %v7036_v18 = vpop.eup %7035  ;;  %6598 = vmatprep.mubr.msk.f32.mxu1 %vm1394_vm1, %v7034_v13 }
 0x13b   :  { %7045 = vtanh.f32 %v847_v17  ;;  %v6412_v21 = vpop.f32.mrb[48].mxu0  ;;  %6599 = vmatmul.mubr.msk.f32.gmra.mrb[104].mxu1 %vm1394_vm1, %v7036_v18  ;;  %v8255_v18 = vpop.f32.mrb[47].mxu1 }
 0x13c   :  { %7047 = vtanh.f32 %v852_v7  ;;  %v862_v25 = vadd.f32 %v6412_v21, %v8054_v12  ;;  %v856_v30 = vpop.f32.mrb[49].mxu0 }
 0x13d   :  { %v7038_v35 = vpop.eup %7037  ;;  %v857_v40 = vadd.f32 %v8054_v12, %v856_v30 }
 0x13e   :  { %v7040_v44 = vpop.eup %7039  ;;  %6601 = vmatprep.mubr.msk.f32.mxu1 %vm1394_vm1, %v7038_v35 }
 0x13f   :  { %7049 = vtanh.f32 %v857_v40  ;;  %v6415_v46 = vpop.f32.mrb[50].mxu0  ;;  %6602 = vmatmul.mubr.msk.f32.gmra.mrb[106].mxu1 %vm1394_vm1, %v7040_v44  ;;  %v8260_v40 = vpop.f32.mrb[48].mxu1 }
 0x140   :  { %7051 = vtanh.f32 %v862_v25  ;;  %v872_v51 = vadd.f32 %v6415_v46, %v8054_v12  ;;  %v866_v52 = vpop.f32.mrb[51].mxu0 }
 0x141   :  { %v7042_v60 = vpop.eup %7041  ;;  %v867_v62 = vadd.f32 %v8054_v12, %v866_v52 }
 0x142   :  { %v7044_v1 = vpop.eup %7043  ;;  %6604 = vmatprep.mubr.msk.f32.mxu1 %vm1394_vm1, %v7042_v60 }
 0x143   :  { %7053 = vtanh.f32 %v867_v62  ;;  %v6418_v7 = vpop.f32.mrb[52].mxu0  ;;  %6605 = vmatmul.mubr.msk.f32.gmra.mrb[108].mxu1 %vm1394_vm1, %v7044_v1 }
 0x144   :  { %7055 = vtanh.f32 %v872_v51  ;;  %v882_v13 = vadd.f32 %v6418_v7, %v8054_v12  ;;  %v876_v17 = vpop.f32.mrb[53].mxu0  ;;  %v8263_v51 = vpop.f32.mrb[49].mxu1 }
 0x145   :  { %v7046_v21 = vpop.eup %7045  ;;  %v877_v25 = vadd.f32 %v8054_v12, %v876_v17  ;;  %v8268_v7 = vpop.f32.mrb[50].mxu1 }
 0x146   :  { %v7048_v30 = vpop.eup %7047  ;;  %6607 = vmatprep.mubr.msk.f32.mxu1 %vm1394_vm1, %v7046_v21  ;;  %10061 = vst [vmem:[#allocation4_spill] sm:$0xff] %v8268_v7  ;;  %v8271_v21 = vpop.f32.mrb[51].mxu1 }
 0x147   :  { %7057 = vtanh.f32 %v877_v25  ;;  %v6421_v35 = vpop.f32.mrb[54].mxu0  ;;  %6608 = vmatmul.mubr.msk.f32.gmra.mrb[110].mxu1 %vm1394_vm1, %v7048_v30  ;;  %10062 = vst [vmem:[#allocation5_spill] sm:$0xff] %v8271_v21 }
 0x148   :  { %7059 = vtanh.f32 %v882_v13  ;;  %v892_v44 = vadd.f32 %v6421_v35, %v8054_v12  ;;  %v886_v46 = vpop.f32.mrb[55].mxu0 }
 0x149   :  { %v7050_v52 = vpop.eup %7049  ;;  %v887_v60 = vadd.f32 %v8054_v12, %v886_v46 }
 0x14a   :  { %v7052_v62 = vpop.eup %7051  ;;  %6610 = vmatprep.mubr.msk.f32.mxu1 %vm1394_vm1, %v7050_v52  ;;  %v8276_v52 = vpop.f32.mrb[52].mxu1 }
 0x14b   :  { %7061 = vtanh.f32 %v887_v60  ;;  %v6424_v1 = vpop.f32.mrb[56].mxu0  ;;  %6611 = vmatmul.mubr.msk.f32.gmra.mrb[112].mxu1 %vm1394_vm1, %v7052_v62  ;;  %10063 = vst [vmem:[#allocation6_spill] sm:$0xff] %v8276_v52  ;;  %v8279_v62 = vpop.f32.mrb[53].mxu1 }
 0x14c   :  { %7063 = vtanh.f32 %v892_v44  ;;  %v902_v13 = vadd.f32 %v6424_v1, %v8054_v12  ;;  %v896_v17 = vpop.f32.mrb[57].mxu0  ;;  %10064 = vst [vmem:[#allocation7_spill] sm:$0xff] %v8279_v62 }
 0x14d   :  { %v7054_v25 = vpop.eup %7053  ;;  %v897_v30 = vadd.f32 %v8054_v12, %v896_v17 }
 0x14e   :  { %v7056_v35 = vpop.eup %7055  ;;  %6613 = vmatprep.mubr.msk.f32.mxu1 %vm1394_vm1, %v7054_v25  ;;  %v8284_v25 = vpop.f32.mrb[54].mxu1 }
 0x14f   :  { %7065 = vtanh.f32 %v897_v30  ;;  %v6427_v46 = vpop.f32.mrb[58].mxu0  ;;  %6614 = vmatmul.mubr.msk.f32.gmra.mrb[114].mxu1 %vm1394_vm1, %v7056_v35  ;;  %10065 = vst [vmem:[#allocation8_spill] sm:$0xff] %v8284_v25  ;;  %v8287_v35 = vpop.f32.mrb[55].mxu1  ;;  %v937_v25 = vadd.f32 %v8054_v12, %v8065_v29  ;;  %v947_v29 = vadd.f32 %v8054_v12, %v8073_v37 }
 0x150   :  { %7067 = vtanh.f32 %v902_v13  ;;  %v912_v44 = vadd.f32 %v6427_v46, %v8054_v12  ;;  %v906_v60 = vpop.f32.mrb[59].mxu0  ;;  %10066 = vst [vmem:[#allocation9_spill] sm:$0xff] %v8287_v35 }
 0x151   :  { %v7058_v1 = vpop.eup %7057  ;;  %v907_v7 = vadd.f32 %v8054_v12, %v906_v60 }
 0x152   :  { %v7060_v21 = vpop.eup %7059  ;;  %6616 = vmatprep.mubr.msk.f32.mxu1 %vm1394_vm1, %v7058_v1 }
 0x153   :  { %7069 = vtanh.f32 %v907_v7  ;;  %v6430_v17 = vpop.f32.mrb[60].mxu0  ;;  %6617 = vmatmul.mubr.msk.f32.gmra.mrb[116].mxu1 %vm1394_vm1, %v7060_v21  ;;  %v8292_v7 = vpop.f32.mrb[56].mxu1 }
 0x154   :  { %7071 = vtanh.f32 %v912_v44  ;;  %v922_v13 = vadd.f32 %v6430_v17, %v8054_v12  ;;  %v916_v30 = vpop.f32.mrb[61].mxu0  ;;  %v8295_v1 = vpop.f32.mrb[57].mxu1 }
 0x155   :  { %v7062_v46 = vpop.eup %7061  ;;  %v917_v52 = vadd.f32 %v8054_v12, %v916_v30 }
 0x156   :  { %v7064_v62 = vpop.eup %7063  ;;  %6619 = vmatprep.mubr.msk.f32.mxu1 %vm1394_vm1, %v7062_v46 }
 0x157   :  { %7073 = vtanh.f32 %v917_v52  ;;  %v6433_v60 = vpop.f32.mrb[62].mxu0  ;;  %6620 = vmatmul.mubr.msk.f32.gmra.mrb[118].mxu1 %vm1394_vm1, %v7064_v62  ;;  %v8302_v52 = vpop.f32.mrb[58].mxu1  ;;  %v942_v62 = vadd.f32 %v8062_v26, %v8054_v12 }
 0x158   :  { %7075 = vtanh.f32 %v922_v13  ;;  %v932_v21 = vadd.f32 %v6433_v60, %v8054_v12  ;;  %v926_v44 = vpop.f32.mrb[63].mxu0  ;;  %v8306_v13 = vpop.f32.mrb[59].mxu1 }
 0x159   :  { %v7066_v17 = vpop.eup %7065  ;;  %v927_v30 = vadd.f32 %v8054_v12, %v926_v44  ;;  %v8312_v44 = vpop.f32.mrb[60].mxu1 }
 0x15a   :  { %v7068_v35 = vpop.eup %7067  ;;  %6622 = vmatprep.mubr.msk.f32.mxu1 %vm1394_vm1, %v7066_v17  ;;  %v8316_v26 = vpop.f32.mrb[61].mxu1 }
 0x15b   :  { %7077 = vtanh.f32 %v927_v30  ;;  %6623 = vmatmul.mubr.msk.f32.gmra.mrb[120].mxu1 %vm1394_vm1, %v7068_v35  ;;  %v952_v35 = vadd.f32 %v8070_v34, %v8054_v12  ;;  %v8322_v37 = vpop.f32.mrb[62].mxu1  ;;  %v962_v30 = vadd.f32 %v8078_v42, %v8054_v12  ;;  %v977_v42 = vadd.f32 %v8054_v12, %v8097_v61 }
 0x15c   :  { %7079 = vtanh.f32 %v932_v21  ;;  %v992_v61 = vadd.f32 %v8102_v2, %v8054_v12  ;;  %v1007_v2 = vadd.f32 %v8054_v12, %v8121_v22  ;;  %v1022_v22 = vadd.f32 %v8126_v28, %v8054_v12 }
 0x15d   :  { %v7070_v46 = vpop.eup %7069  ;;  %7081 = vtanh.f32 %v937_v25  ;;  %v957_v25 = vadd.f32 %v8054_v12, %v8081_v45  ;;  %v1037_v28 = vadd.f32 %v8054_v12, %v8151_v57  ;;  %v1052_v57 = vadd.f32 %v8156_v0, %v8054_v12 }
 0x15e   :  { %v7072_v60 = vpop.eup %7071  ;;  %6625 = vmatprep.mubr.msk.f32.mxu1 %vm1394_vm1, %v7070_v46  ;;  %7083 = vtanh.f32 %v942_v62  ;;  %v8326_v62 = vpop.f32.mrb[63].mxu1  ;;  %v967_v46 = vadd.f32 %v8054_v12, %v8089_v53  ;;  %v982_v53 = vadd.f32 %v8094_v58, %v8054_v12  ;;  %v997_v58 = vadd.f32 %v8054_v12, %v8113_v14 }
 0x15f   :  { %6626 = vmatmul.mubr.msk.f32.gmra.mrb[122].mxu1 %vm1394_vm1, %v7072_v60  ;;  %7085 = vtanh.f32 %v947_v29  ;;  %v972_v60 = vadd.f32 %v8086_v50, %v8054_v12  ;;  %v987_v50 = vadd.f32 %v8054_v12, %v8105_v5  ;;  %v1002_v5 = vadd.f32 %v8110_v10, %v8054_v12 }
 0x160   :  { %7087 = vtanh.f32 %v952_v35  ;;  %v1012_v14 = vadd.f32 %v8118_v19, %v8054_v12  ;;  %v1017_v10 = vadd.f32 %v8054_v12, %v8129_v32  ;;  %v1027_v19 = vadd.f32 %v8054_v12, %v8137_v43 }
 0x161   :  { %v7074_v21 = vpop.eup %7073  ;;  %7089 = vtanh.f32 %v957_v25  ;;  %v1032_v32 = vadd.f32 %v8134_v39, %v8054_v12  ;;  %v1042_v43 = vadd.f32 %v8148_v54, %v8054_v12  ;;  %v1047_v39 = vadd.f32 %v8054_v12, %v8159_v4 }
 0x162   :  { %v7076_v17 = vpop.eup %7075  ;;  %6628 = vmatprep.mubr.msk.f32.mxu1 %vm1394_vm1, %v7074_v21  ;;  %7091 = vtanh.f32 %v962_v30  ;;  %v1057_v54 = vadd.f32 %v8054_v12, %v8167_v16  ;;  %v1062_v4 = vadd.f32 %v8164_v11, %v8054_v12  ;;  %v1067_v0 = vadd.f32 %v8054_v12, %v8175_v27 }
 0x163   :  { %6629 = vmatmul.mubr.msk.f32.gmra.mrb[124].mxu1 %vm1394_vm1, %v7076_v17  ;;  %7093 = vtanh.f32 %v967_v46  ;;  %v1072_v16 = vadd.f32 %v8172_v23, %v8054_v12  ;;  %v1077_v11 = vadd.f32 %v8054_v12, %v8183_v41  ;;  %v1082_v27 = vadd.f32 %v8180_v36, %v8054_v12 }
 0x164   :  { %7095 = vtanh.f32 %v972_v60  ;;  %v1087_v23 = vadd.f32 %v8054_v12, %v8191_v55  ;;  %v1092_v41 = vadd.f32 %v8188_v49, %v8054_v12  ;;  %v1097_v36 = vadd.f32 %v8054_v12, %v8199_v6  ;;  %v8416_v49 = vld [vmem:[%s10054_s2] ss:$0 sm:$0xff] }
 0x165   :  { %v7078_v34 = vpop.eup %7077  ;;  %7097 = vtanh.f32 %v977_v42  ;;  %v1102_v55 = vadd.f32 %v8196_v63, %v8054_v12  ;;  %v1117_v12 = vadd.f32 %v8416_v49, %v8215_v38  ;;  %v1132_v38 = vadd.f32 %v8416_v49, %v8220_v48 }
 0x166   :  { %v7080_v29 = vpop.eup %7079  ;;  %6631 = vmatprep.mubr.msk.f32.mxu1 %vm1394_vm1, %v7078_v34  ;;  %7099 = vtanh.f32 %v982_v53  ;;  %v1147_v48 = vadd.f32 %v8416_v49, %v8239_v33  ;;  %v1162_v33 = vadd.f32 %v8416_v49, %v8244_v47  ;;  %v1177_v47 = vadd.f32 %v8416_v49, %v8263_v51 }
 0x167   :  { %v7082_v45 = vpop.eup %7081  ;;  %6632 = vmatmul.mubr.msk.f32.gmra.mrb[126].mxu1 %vm1394_vm1, %v7080_v29  ;;  %7101 = vtanh.f32 %v987_v50 }
 0x168   :  { %6634 = vmatprep.mubr.msk.f32.mxu1 %vm1394_vm1, %v7082_v45  ;;  %v7084_v35 = vpop.eup %7083  ;;  %7103 = vtanh.f32 %v992_v61 }
 0x169   :  { %v7086_v21 = vpop.eup %7085  ;;  %7105 = vtanh.f32 %v997_v58 }
 0x16a   :  { %v7088_v25 = vpop.eup %7087  ;;  %7107 = vtanh.f32 %v1002_v5 }
 0x16b   :  { %6635 = vmatmul.mubr.msk.f32.gmra.mrb[128].mxu1 %vm1394_vm1, %v7084_v35  ;;  %v7090_v17 = vpop.eup %7089  ;;  %7109 = vtanh.f32 %v1007_v2 }
 0x16c   :  { %6637 = vmatprep.mubr.msk.f32.mxu1 %vm1394_vm1, %v7086_v21  ;;  %v7092_v30 = vpop.eup %7091  ;;  %7111 = vtanh.f32 %v1012_v14 }
 0x16d   :  { %v7094_v34 = vpop.eup %7093  ;;  %7113 = vtanh.f32 %v1017_v10  ;;  %v1107_v10 = vadd.f32 %v8416_v49, %v8207_v20  ;;  %v1122_v20 = vadd.f32 %v8416_v49, %v8212_v31  ;;  %v1137_v31 = vadd.f32 %v8416_v49, %v8231_v9 }
 0x16e   :  { %v7096_v46 = vpop.eup %7095  ;;  %7115 = vtanh.f32 %v1022_v22  ;;  %v1152_v9 = vadd.f32 %v8416_v49, %v8236_v24  ;;  %v1167_v24 = vadd.f32 %v8416_v49, %v8255_v18  ;;  %v1182_v18 = vadd.f32 %v8416_v49, %v8260_v40  ;;  %v10068_v40 = vld [vmem:[#allocation4_spill] sm:$0xff] }
 0x16f   :  { %6638 = vmatmul.mubr.msk.f32.gmra.mrb[130].mxu1 %vm1394_vm1, %v7088_v25  ;;  %v7098_v29 = vpop.eup %7097  ;;  %7117 = vtanh.f32 %v1027_v19 }
 0x170   :  { %6640 = vmatprep.mubr.msk.f32.mxu1 %vm1394_vm1, %v7090_v17  ;;  %v7100_v45 = vpop.eup %7099  ;;  %7119 = vtanh.f32 %v1032_v32 }
 0x171   :  { %v7102_v60 = vpop.eup %7101  ;;  %7121 = vtanh.f32 %v1037_v28 }
 0x172   :  { %v7104_v42 = vpop.eup %7103  ;;  %7123 = vtanh.f32 %v1042_v43 }
 0x173   :  { %6641 = vmatmul.mubr.msk.f32.gmra.mrb[132].mxu1 %vm1394_vm1, %v7092_v30  ;;  %v7106_v35 = vpop.eup %7105  ;;  %7125 = vtanh.f32 %v1047_v39 }
 0x174   :  { %6643 = vmatprep.mubr.msk.f32.mxu1 %vm1394_vm1, %v7094_v34  ;;  %v7108_v21 = vpop.eup %7107  ;;  %7127 = vtanh.f32 %v1052_v57 }
 0x175   :  { %v7110_v53 = vpop.eup %7109  ;;  %7129 = vtanh.f32 %v1057_v54  ;;  %v10067_v54 = vld [vmem:[#allocation5_spill] sm:$0xff] }
 0x176   :  { %v7112_v50 = vpop.eup %7111  ;;  %7131 = vtanh.f32 %v1062_v4 }
 0x177   :  { %6644 = vmatmul.mubr.msk.f32.gmra.mrb[134].mxu1 %vm1394_vm1, %v7096_v46  ;;  %v7114_v25 = vpop.eup %7113  ;;  %7133 = vtanh.f32 %v1067_v0 }
 0x178   :  { %6646 = vmatprep.mubr.msk.f32.mxu1 %vm1394_vm1, %v7098_v29  ;;  %v7116_v17 = vpop.eup %7115  ;;  %7135 = vtanh.f32 %v1072_v16 }
 0x179   :  { %v7118_v61 = vpop.eup %7117  ;;  %7137 = vtanh.f32 %v1077_v11  ;;  %v10069_v11 = vld [vmem:[#allocation7_spill] sm:$0xff] }
 0x17a   :  { %v7120_v58 = vpop.eup %7119  ;;  %7139 = vtanh.f32 %v1082_v27 }
 0x17b   :  { %6647 = vmatmul.mubr.msk.f32.gmra.mrb[136].mxu1 %vm1394_vm1, %v7100_v45  ;;  %v7122_v30 = vpop.eup %7121  ;;  %7141 = vtanh.f32 %v1087_v23 }
 0x17c   :  { %6649 = vmatprep.mubr.msk.f32.mxu1 %vm1394_vm1, %v7102_v60  ;;  %v7124_v34 = vpop.eup %7123  ;;  %7143 = vtanh.f32 %v1092_v41  ;;  %v1112_v60 = vadd.f32 %v8416_v49, %v8204_v15  ;;  %v1127_v15 = vadd.f32 %v8416_v49, %v8223_v56  ;;  %v1142_v56 = vadd.f32 %v8416_v49, %v8228_v3  ;;  %v10070_v41 = vld [vmem:[#allocation6_spill] sm:$0xff] }
 0x17d   :  { %v7126_v5 = vpop.eup %7125  ;;  %7145 = vtanh.f32 %v1097_v36  ;;  %v1157_v3 = vadd.f32 %v8416_v49, %v8247_v59  ;;  %v1172_v59 = vadd.f32 %v8416_v49, %v8252_v8  ;;  %v8469_v8 = vld [vmem:[%s10056_s4] ss:$0 sm:$0xff]  ;;  %v1202_v36 = vadd.f32 %v8416_v49, %v10070_v41 }
 0x17e   :  { %v7128_v2 = vpop.eup %7127  ;;  %7147 = vtanh.f32 %v1102_v55 }
 0x17f   :  { %6650 = vmatmul.mubr.msk.f32.gmra.mrb[138].mxu1 %vm1394_vm1, %v7104_v42  ;;  %v7130_v46 = vpop.eup %7129  ;;  %7149 = vtanh.f32 %v1107_v10 }
 0x180   :  { %6652 = vmatprep.mubr.msk.f32.mxu1 %vm1394_vm1, %v7106_v35  ;;  %v7132_v29 = vpop.eup %7131  ;;  %7151 = vtanh.f32 %v1112_v60 }
 0x181   :  { %v7134_v14 = vpop.eup %7133  ;;  %7153 = vtanh.f32 %v1117_v12 }
 0x182   :  { %v7136_v6 = vpop.eup %7135  ;;  %7155 = vtanh.f32 %v1122_v20 }
 0x183   :  { %6653 = vmatmul.mubr.msk.f32.gmra.mrb[140].mxu1 %vm1394_vm1, %v7108_v21  ;;  %v7138_v45 = vpop.eup %7137  ;;  %7157 = vtanh.f32 %v1127_v15  ;;  %v1217_v15 = vadd.f32 %v8416_v49, %v8295_v1 }
 0x184   :  { %6655 = vmatprep.mubr.msk.f32.mxu1 %vm1394_vm1, %v7110_v53  ;;  %v7140_v63 = vpop.eup %7139  ;;  %7159 = vtanh.f32 %v1132_v38 }
 0x185   :  { %v7142_v22 = vpop.eup %7141  ;;  %7161 = vtanh.f32 %v1137_v31 }
 0x186   :  { %v7144_v19 = vpop.eup %7143  ;;  %7163 = vtanh.f32 %v1142_v56  ;;  %v1222_v56 = vadd.f32 %v8416_v49, %v8292_v7 }
 0x187   :  { %6656 = vmatmul.mubr.msk.f32.gmra.mrb[142].mxu1 %vm1394_vm1, %v7112_v50  ;;  %v7146_v42 = vpop.eup %7145  ;;  %7165 = vtanh.f32 %v1147_v48 }
 0x188   :  { %6658 = vmatprep.mubr.msk.f32.mxu1 %vm1394_vm1, %v7114_v25  ;;  %v7148_v35 = vpop.eup %7147  ;;  %7167 = vtanh.f32 %v1152_v9 }
 0x189   :  { %v7150_v32 = vpop.eup %7149  ;;  %7169 = vtanh.f32 %v1157_v3 }
 0x18a   :  { %v7152_v28 = vpop.eup %7151  ;;  %7171 = vtanh.f32 %v1162_v33  ;;  %v1232_v33 = vadd.f32 %v8416_v49, %v8302_v52 }
 0x18b   :  { %6659 = vmatmul.mubr.msk.f32.gmra.mrb[144].mxu1 %vm1394_vm1, %v7116_v17  ;;  %v7154_v21 = vpop.eup %7153  ;;  %7173 = vtanh.f32 %v1167_v24  ;;  %v1187_v17 = vadd.f32 %v8416_v49, %v10067_v54 }
 0x18c   :  { %6661 = vmatprep.mubr.msk.f32.mxu1 %vm1394_vm1, %v7118_v61  ;;  %v7156_v53 = vpop.eup %7155  ;;  %7175 = vtanh.f32 %v1172_v59 }
 0x18d   :  { %v7158_v43 = vpop.eup %7157  ;;  %7177 = vtanh.f32 %v1177_v47 }
 0x18e   :  { %v7160_v39 = vpop.eup %7159  ;;  %7179 = vtanh.f32 %v1182_v18  ;;  %v1242_v18 = vadd.f32 %v8416_v49, %v8312_v44 }
 0x18f   :  { %6662 = vmatmul.mubr.msk.f32.gmra.mrb[146].mxu1 %vm1394_vm1, %v7120_v58  ;;  %v7162_v50 = vpop.eup %7161  ;;  %7181 = vtanh.f32 %v1187_v17  ;;  %v1247_v17 = vadd.f32 %v8416_v49, %v8326_v62 }
 0x190   :  { %6664 = vmatprep.mubr.msk.f32.mxu1 %vm1394_vm1, %v7122_v30  ;;  %v7164_v25 = vpop.eup %7163  ;;  %v1192_v30 = vadd.f32 %v8416_v49, %v10068_v40  ;;  %v1252_v40 = vadd.f32 %v8416_v49, %v8322_v37 }
 0x191   :  { %v7166_v57 = vpop.eup %7165 }
 0x192   :  { %v7168_v51 = vpop.eup %7167 }
 0x193   :  { %6665 = vmatmul.mubr.msk.f32.gmra.mrb[148].mxu1 %vm1394_vm1, %v7124_v34  ;;  %v7170_v4 = vpop.eup %7169  ;;  %v1197_v34 = vadd.f32 %v8416_v49, %v10069_v11 }
 0x194   :  { %6667 = vmatprep.mubr.msk.f32.mxu1 %vm1394_vm1, %v7126_v5  ;;  %v7172_v5 = vpop.eup %7171 }
 0x195   :  { %v7174_v23 = vpop.eup %7173 }
 0x196   :  { %v7176_v10 = vpop.eup %7175 }
 0x197   :  { %6668 = vmatmul.mubr.msk.f32.gmra.mrb[150].mxu1 %vm1394_vm1, %v7128_v2 }
 0x198   :  { %6670 = vmatprep.mubr.msk.f32.mxu1 %vm1394_vm1, %v7130_v46 }
 0x19b   :  { %6671 = vmatmul.mubr.msk.f32.gmra.mrb[152].mxu1 %vm1394_vm1, %v7132_v29 }
 0x19c   :  { %6673 = vmatprep.mubr.msk.f32.mxu1 %vm1394_vm1, %v7134_v14  ;;  %v10071_v14 = vld [vmem:[#allocation9_spill] sm:$0xff] }
 0x19d   :  { %v1207_v55 = vadd.f32 %v8416_v49, %v10071_v14 }
 0x19f   :  { %6674 = vmatmul.mubr.msk.f32.gmra.mrb[154].mxu1 %vm1394_vm1, %v7136_v6 }
 0x1a0   :  { %6676 = vmatprep.mubr.msk.f32.mxu1 %vm1394_vm1, %v7138_v45  ;;  %v7178_v45 = vpop.eup %7177 }
 0x1a3   :  { %6677 = vmatmul.mubr.msk.f32.gmra.mrb[156].mxu1 %vm1394_vm1, %v7140_v63  ;;  %v10072_v63 = vld [vmem:[#allocation8_spill] sm:$0xff] }
 0x1a4   :  { %6679 = vmatprep.mubr.msk.f32.mxu1 %vm1394_vm1, %v7142_v22  ;;  %v1212_v22 = vadd.f32 %v8416_v49, %v10072_v63 }
 0x1a7   :  { %6680 = vmatmul.mubr.msk.f32.gmra.mrb[158].mxu1 %vm1394_vm1, %v7144_v19  ;;  %v7180_v19 = vpop.eup %7179 }
 0x1a8   :  { %6682 = vmatprep.mubr.msk.f32.mxu1 %vm1394_vm1, %v7146_v42  ;;  %v7182_v38 = vpop.eup %7181 }
 0x1ab   :  { %6683 = vmatmul.mubr.msk.f32.gmra.mrb[160].mxu1 %vm1394_vm1, %v7148_v35 }
 0x1ac   :  { %6685 = vmatprep.mubr.msk.f32.mxu1 %vm1394_vm1, %v7150_v32 }
 0x1af   :  { %6686 = vmatmul.mubr.msk.f32.gmra.mrb[162].mxu1 %vm1394_vm1, %v7152_v28  ;;  %v1227_v28 = vadd.f32 %v8416_v49, %v8306_v13 }
 0x1b0   :  { %6688 = vmatprep.mubr.msk.f32.mxu1 %vm1394_vm1, %v7154_v21 }
 0x1b3   :  { %6689 = vmatmul.mubr.msk.f32.gmra.mrb[164].mxu1 %vm1394_vm1, %v7156_v53 }
 0x1b4   :  { %6691 = vmatprep.mubr.msk.f32.mxu1 %vm1394_vm1, %v7158_v43 }
 0x1b7   :  { %6692 = vmatmul.mubr.msk.f32.gmra.mrb[166].mxu1 %vm1394_vm1, %v7160_v39  ;;  %v1237_v39 = vadd.f32 %v8416_v49, %v8316_v26 }
 0x1b8   :  { %6694 = vmatprep.mubr.msk.f32.mxu1 %vm1394_vm1, %v7162_v50 }
 0x1bb   :  { %6695 = vmatmul.mubr.msk.f32.gmra.mrb[168].mxu1 %vm1394_vm1, %v7164_v25 }
 0x1bc   :  { %6697 = vmatprep.mubr.msk.f32.mxu1 %vm1394_vm1, %v7166_v57 }
 0x1be   :  { %v6540_v61 = vpop.f32.mrb[64].mxu1 }
 0x1bf   :  { %v1851_v0 = vadd.f32 %v6540_v61, %v8469_v8  ;;  %v1845_v58 = vpop.f32.mrb[65].mxu1  ;;  %6698 = vmatmul.mubr.msk.f32.gmra.mrb[170].mxu1 %vm1394_vm1, %v7168_v51 }
 0x1c0   :  { %v1846_v16 = vadd.f32 %v8469_v8, %v1845_v58  ;;  %6700 = vmatprep.mubr.msk.f32.mxu1 %vm1394_vm1, %v7170_v4 }
 0x1c2   :  { %7183 = vtanh.f32 %v1846_v16  ;;  %v6543_v27 = vpop.f32.mrb[66].mxu1 }
 0x1c3   :  { %7185 = vtanh.f32 %v1851_v0  ;;  %v1861_v2 = vadd.f32 %v6543_v27, %v8469_v8  ;;  %v1855_v46 = vpop.f32.mrb[67].mxu1  ;;  %6701 = vmatmul.mubr.msk.f32.gmra.mrb[172].mxu1 %vm1394_vm1, %v7172_v5 }
 0x1c4   :  { %7187 = vtanh.f32 %v1192_v30  ;;  %v1856_v29 = vadd.f32 %v8469_v8, %v1855_v46  ;;  %6703 = vmatprep.mubr.msk.f32.mxu1 %vm1394_vm1, %v7174_v23 }
 0x1c5   :  { %7189 = vtanh.f32 %v1197_v34 }
 0x1c6   :  { %7191 = vtanh.f32 %v1856_v29  ;;  %v6546_v6 = vpop.f32.mrb[68].mxu1 }
 0x1c7   :  { %7193 = vtanh.f32 %v1861_v2  ;;  %v1871_v60 = vadd.f32 %v6546_v6, %v8469_v8  ;;  %v1865_v12 = vpop.f32.mrb[69].mxu1  ;;  %6704 = vmatmul.mubr.msk.f32.gmra.mrb[174].mxu1 %vm1394_vm1, %v7176_v10 }
 0x1c8   :  { %7195 = vtanh.f32 %v1202_v36  ;;  %v1866_v20 = vadd.f32 %v8469_v8, %v1865_v12  ;;  %6706 = vmatprep.mubr.msk.f32.mxu1 %vm1394_vm1, %v7178_v45 }
 0x1c9   :  { %7197 = vtanh.f32 %v1207_v55 }
 0x1ca   :  { %7199 = vtanh.f32 %v1866_v20  ;;  %v6549_v42 = vpop.f32.mrb[70].mxu1 }
 0x1cb   :  { %7201 = vtanh.f32 %v1871_v60  ;;  %v1881_v31 = vadd.f32 %v6549_v42, %v8469_v8  ;;  %v1875_v35 = vpop.f32.mrb[71].mxu1  ;;  %6707 = vmatmul.mubr.msk.f32.gmra.mrb[176].mxu1 %vm1394_vm1, %v7180_v19 }
 0x1cc   :  { %v7184_v32 = vpop.eup %7183  ;;  %7203 = vtanh.f32 %v1212_v22  ;;  %v1876_v48 = vadd.f32 %v8469_v8, %v1875_v35  ;;  %6709 = vmatprep.mubr.msk.f32.mxu1 %vm1394_vm1, %v7182_v38 }
 0x1cd   :  { %v7186_v1 = vpop.eup %7185  ;;  %7205 = vtanh.f32 %v1217_v15  ;;  %6738 = vmatprep.mubr.msk.f32.mxu0 %vm1394_vm1, %v7184_v32 }
 0x1ce   :  { %v7188_v21 = vpop.eup %7187  ;;  %7207 = vtanh.f32 %v1876_v48  ;;  %v6552_v9 = vpop.f32.mrb[72].mxu1  ;;  %6739 = vmatmul.mubr.msk.f32.vlgmr.msra.gmra.mrb[64].mxu0 %vm1394_vm1, %v7186_v1 }
 0x1cf   :  { %v7190_v3 = vpop.eup %7189  ;;  %7209 = vtanh.f32 %v1881_v31  ;;  %v1891_v7 = vadd.f32 %v6552_v9, %v8469_v8  ;;  %v1885_v53 = vpop.f32.mrb[73].mxu1  ;;  %6710 = vmatmul.mubr.msk.f32.gmra.mrb[178].mxu1 %vm1394_vm1, %v7188_v21 }
 0x1d0   :  { %v7192_v43 = vpop.eup %7191  ;;  %7211 = vtanh.f32 %v1222_v56  ;;  %v1886_v13 = vadd.f32 %v8469_v8, %v1885_v53  ;;  %6712 = vmatprep.mubr.msk.f32.mxu1 %vm1394_vm1, %v7190_v3 }
 0x1d1   :  { %v7194_v24 = vpop.eup %7193  ;;  %7213 = vtanh.f32 %v1227_v28  ;;  %6741 = vmatprep.mubr.msk.f32.mxu0 %vm1394_vm1, %v7192_v43 }
 0x1d2   :  { %v7196_v50 = vpop.eup %7195  ;;  %7215 = vtanh.f32 %v1886_v13  ;;  %v6555_v59 = vpop.f32.mrb[74].mxu1  ;;  %6742 = vmatmul.mubr.msk.f32.gmra.mrb[66].mxu0 %vm1394_vm1, %v7194_v24 }
 0x1d3   :  { %v7198_v47 = vpop.eup %7197  ;;  %7217 = vtanh.f32 %v1891_v7  ;;  %v1901_v52 = vadd.f32 %v6555_v59, %v8469_v8  ;;  %v1895_v25 = vpop.f32.mrb[75].mxu1  ;;  %6713 = vmatmul.mubr.msk.f32.gmra.mrb[180].mxu1 %vm1394_vm1, %v7196_v50 }
 0x1d4   :  { %v7200_v57 = vpop.eup %7199  ;;  %7219 = vtanh.f32 %v1232_v33  ;;  %v1896_v26 = vadd.f32 %v8469_v8, %v1895_v25  ;;  %6715 = vmatprep.mubr.msk.f32.mxu1 %vm1394_vm1, %v7198_v47 }
 0x1d5   :  { %v7202_v54 = vpop.eup %7201  ;;  %7221 = vtanh.f32 %v1237_v39  ;;  %6744 = vmatprep.mubr.msk.f32.mxu0 %vm1394_vm1, %v7200_v57 }
 0x1d6   :  { %v7204_v51 = vpop.eup %7203  ;;  %7223 = vtanh.f32 %v1896_v26  ;;  %v6558_v61 = vpop.f32.mrb[76].mxu1  ;;  %6745 = vmatmul.mubr.msk.f32.gmra.mrb[68].mxu0 %vm1394_vm1, %v7202_v54 }
 0x1d7   :  { %v7206_v4 = vpop.eup %7205  ;;  %7225 = vtanh.f32 %v1901_v52  ;;  %v1911_v44 = vadd.f32 %v6558_v61, %v8469_v8  ;;  %v1905_v0 = vpop.f32.mrb[77].mxu1  ;;  %6716 = vmatmul.mubr.msk.f32.gmra.mrb[182].mxu1 %vm1394_vm1, %v7204_v51 }
 0x1d8   :  { %v7208_v58 = vpop.eup %7207  ;;  %7227 = vtanh.f32 %v1242_v18  ;;  %v1906_v62 = vadd.f32 %v8469_v8, %v1905_v0  ;;  %6718 = vmatprep.mubr.msk.f32.mxu1 %vm1394_vm1, %v7206_v4 }
 0x1d9   :  { %v7210_v30 = vpop.eup %7209  ;;  %7229 = vtanh.f32 %v1247_v17  ;;  %6747 = vmatprep.mubr.msk.f32.mxu0 %vm1394_vm1, %v7208_v58 }
 0x1da   :  { %v7212_v16 = vpop.eup %7211  ;;  %7231 = vtanh.f32 %v1906_v62  ;;  %v6561_v11 = vpop.f32.mrb[78].mxu1  ;;  %6748 = vmatmul.mubr.msk.f32.gmra.mrb[70].mxu0 %vm1394_vm1, %v7210_v30 }
 0x1db   :  { %v7214_v34 = vpop.eup %7213  ;;  %7233 = vtanh.f32 %v1911_v44  ;;  %v1921_v5 = vadd.f32 %v6561_v11, %v8469_v8  ;;  %v1915_v27 = vpop.f32.mrb[79].mxu1  ;;  %6719 = vmatmul.mubr.msk.f32.gmra.mrb[184].mxu1 %vm1394_vm1, %v7212_v16 }
 0x1dc   :  { %v7216_v37 = vpop.eup %7215  ;;  %7235 = vtanh.f32 %v1252_v40  ;;  %v1916_v49 = vadd.f32 %v8469_v8, %v1915_v27  ;;  %6721 = vmatprep.mubr.msk.f32.mxu1 %vm1394_vm1, %v7214_v34 }
 0x1dd   :  { %v7218_v23 = vpop.eup %7217  ;;  %6750 = vmatprep.mubr.msk.f32.mxu0 %vm1394_vm1, %v7216_v37 }
 0x1de   :  { %v7220_v2 = vpop.eup %7219  ;;  %7237 = vtanh.f32 %v1916_v49  ;;  %v6564_v46 = vpop.f32.mrb[80].mxu1  ;;  %6751 = vmatmul.mubr.msk.f32.gmra.mrb[72].mxu0 %vm1394_vm1, %v7218_v23 }
 0x1df   :  { %v7222_v41 = vpop.eup %7221  ;;  %7239 = vtanh.f32 %v1921_v5  ;;  %v1931_v36 = vadd.f32 %v6564_v46, %v8469_v8  ;;  %v1925_v29 = vpop.f32.mrb[81].mxu1  ;;  %6722 = vmatmul.mubr.msk.f32.gmra.mrb[186].mxu1 %vm1394_vm1, %v7220_v2 }
 0x1e0   :  { %v7224_v14 = vpop.eup %7223  ;;  %v1926_v55 = vadd.f32 %v8469_v8, %v1925_v29  ;;  %6724 = vmatprep.mubr.msk.f32.mxu1 %vm1394_vm1, %v7222_v41 }
 0x1e1   :  { %v7226_v10 = vpop.eup %7225  ;;  %6753 = vmatprep.mubr.msk.f32.mxu0 %vm1394_vm1, %v7224_v14 }
 0x1e2   :  { %v7228_v6 = vpop.eup %7227  ;;  %7241 = vtanh.f32 %v1926_v55  ;;  %v6567_v45 = vpop.f32.mrb[82].mxu1  ;;  %6754 = vmatmul.mubr.msk.f32.gmra.mrb[74].mxu0 %vm1394_vm1, %v7226_v10 }
 0x1e3   :  { %v7230_v60 = vpop.eup %7229  ;;  %7243 = vtanh.f32 %v1931_v36  ;;  %v1941_v12 = vadd.f32 %v6567_v45, %v8469_v8  ;;  %v1935_v63 = vpop.f32.mrb[83].mxu1  ;;  %6725 = vmatmul.mubr.msk.f32.gmra.mrb[188].mxu1 %vm1394_vm1, %v7228_v6 }
 0x1e4   :  { %v7232_v22 = vpop.eup %7231  ;;  %v1936_v20 = vadd.f32 %v8469_v8, %v1935_v63  ;;  %6727 = vmatprep.mubr.msk.f32.mxu1 %vm1394_vm1, %v7230_v60 }
 0x1e5   :  { %v7234_v15 = vpop.eup %7233  ;;  %6756 = vmatprep.mubr.msk.f32.mxu0 %vm1394_vm1, %v7232_v22 }
 0x1e6   :  { %v7236_v19 = vpop.eup %7235  ;;  %7245 = vtanh.f32 %v1936_v20  ;;  %v6570_v42 = vpop.f32.mrb[84].mxu1  ;;  %6757 = vmatmul.mubr.msk.f32.gmra.mrb[76].mxu0 %vm1394_vm1, %v7234_v15 }
 0x1e7   :  { %7247 = vtanh.f32 %v1941_v12  ;;  %v1951_v38 = vadd.f32 %v6570_v42, %v8469_v8  ;;  %v1945_v31 = vpop.f32.mrb[85].mxu1  ;;  %6728 = vmatmul.mubr.msk.f32.gmra.mrb[190].mxu1 %vm1394_vm1, %v7236_v19 }
 0x1e8   :  { %v7238_v35 = vpop.eup %7237  ;;  %v1946_v32 = vadd.f32 %v8469_v8, %v1945_v31 }
 0x1e9   :  { %v7240_v56 = vpop.eup %7239  ;;  %6759 = vmatprep.mubr.msk.f32.mxu0 %vm1394_vm1, %v7238_v35 }
 0x1ea   :  { %7249 = vtanh.f32 %v1946_v32  ;;  %v6573_v48 = vpop.f32.mrb[86].mxu1  ;;  %6760 = vmatmul.mubr.msk.f32.gmra.mrb[78].mxu0 %vm1394_vm1, %v7240_v56 }
 0x1eb   :  { %7251 = vtanh.f32 %v1951_v38  ;;  %v1961_v1 = vadd.f32 %v6573_v48, %v8469_v8  ;;  %v1955_v28 = vpop.f32.mrb[87].mxu1 }
 0x1ec   :  { %v7242_v21 = vpop.eup %7241  ;;  %v1956_v9 = vadd.f32 %v8469_v8, %v1955_v28 }
 0x1ed   :  { %v7244_v3 = vpop.eup %7243  ;;  %6762 = vmatprep.mubr.msk.f32.mxu0 %vm1394_vm1, %v7242_v21 }
 0x1ee   :  { %7253 = vtanh.f32 %v1956_v9  ;;  %v6576_v7 = vpop.f32.mrb[88].mxu1  ;;  %6763 = vmatmul.mubr.msk.f32.gmra.mrb[80].mxu0 %vm1394_vm1, %v7244_v3 }
 0x1ef   :  { %7255 = vtanh.f32 %v1961_v1  ;;  %v1971_v53 = vadd.f32 %v6576_v7, %v8469_v8  ;;  %v1965_v43 = vpop.f32.mrb[89].mxu1 }
 0x1f0   :  { %v7246_v33 = vpop.eup %7245  ;;  %v1966_v13 = vadd.f32 %v8469_v8, %v1965_v43 }
 0x1f1   :  { %v7248_v24 = vpop.eup %7247  ;;  %6765 = vmatprep.mubr.msk.f32.mxu0 %vm1394_vm1, %v7246_v33 }
 0x1f2   :  { %7257 = vtanh.f32 %v1966_v13  ;;  %v6579_v39 = vpop.f32.mrb[90].mxu1  ;;  %6766 = vmatmul.mubr.msk.f32.gmra.mrb[82].mxu0 %vm1394_vm1, %v7248_v24 }
 0x1f3   :  { %7259 = vtanh.f32 %v1971_v53  ;;  %v1981_v50 = vadd.f32 %v6579_v39, %v8469_v8  ;;  %v1975_v59 = vpop.f32.mrb[91].mxu1 }
 0x1f4   :  { %v7250_v47 = vpop.eup %7249  ;;  %v1976_v52 = vadd.f32 %v8469_v8, %v1975_v59 }
 0x1f5   :  { %v7252_v25 = vpop.eup %7251  ;;  %6768 = vmatprep.mubr.msk.f32.mxu0 %vm1394_vm1, %v7250_v47 }
 0x1f6   :  { %7261 = vtanh.f32 %v1976_v52  ;;  %v6582_v57 = vpop.f32.mrb[92].mxu1  ;;  %6769 = vmatmul.mubr.msk.f32.gmra.mrb[84].mxu0 %vm1394_vm1, %v7252_v25 }
 0x1f7   :  { %7263 = vtanh.f32 %v1981_v50  ;;  %v1991_v18 = vadd.f32 %v6582_v57, %v8469_v8  ;;  %v1985_v26 = vpop.f32.mrb[93].mxu1 }
 0x1f8   :  { %v7254_v54 = vpop.eup %7253  ;;  %v1986_v17 = vadd.f32 %v8469_v8, %v1985_v26 }
 0x1f9   :  { %v7256_v51 = vpop.eup %7255  ;;  %6771 = vmatprep.mubr.msk.f32.mxu0 %vm1394_vm1, %v7254_v54 }
 0x1fa   :  { %7265 = vtanh.f32 %v1986_v17  ;;  %v6585_v61 = vpop.f32.mrb[94].mxu1  ;;  %6772 = vmatmul.mubr.msk.f32.gmra.mrb[86].mxu0 %vm1394_vm1, %v7256_v51 }
 0x1fb   :  { %7267 = vtanh.f32 %v1991_v18  ;;  %v2001_v4 = vadd.f32 %v6585_v61, %v8469_v8  ;;  %v1995_v44 = vpop.f32.mrb[95].mxu1 }
 0x1fc   :  { %v7258_v0 = vpop.eup %7257  ;;  %v1996_v58 = vadd.f32 %v8469_v8, %v1995_v44 }
 0x1fd   :  { %v7260_v40 = vpop.eup %7259  ;;  %6774 = vmatprep.mubr.msk.f32.mxu0 %vm1394_vm1, %v7258_v0 }
 0x1fe   :  { %7269 = vtanh.f32 %v1996_v58  ;;  %v6588_v62 = vpop.f32.mrb[96].mxu1  ;;  %6775 = vmatmul.mubr.msk.f32.gmra.mrb[88].mxu0 %vm1394_vm1, %v7260_v40 }
 0x1ff   :  { %7271 = vtanh.f32 %v2001_v4  ;;  %v2011_v30 = vadd.f32 %v6588_v62, %v8469_v8  ;;  %v2005_v16 = vpop.f32.mrb[97].mxu1 }
 0x200   :  { %v7262_v11 = vpop.eup %7261  ;;  %v2006_v34 = vadd.f32 %v8469_v8, %v2005_v16 }
 0x201   :  { %v7264_v5 = vpop.eup %7263  ;;  %6777 = vmatprep.mubr.msk.f32.mxu0 %vm1394_vm1, %v7262_v11 }
 0x202   :  { %7273 = vtanh.f32 %v2006_v34  ;;  %v6591_v27 = vpop.f32.mrb[98].mxu1  ;;  %6778 = vmatmul.mubr.msk.f32.gmra.mrb[90].mxu0 %vm1394_vm1, %v7264_v5 }
 0x203   :  { %7275 = vtanh.f32 %v2011_v30  ;;  %v2021_v37 = vadd.f32 %v6591_v27, %v8469_v8  ;;  %v2015_v49 = vpop.f32.mrb[99].mxu1 }
 0x204   :  { %v7266_v23 = vpop.eup %7265  ;;  %v2016_v2 = vadd.f32 %v8469_v8, %v2015_v49 }
 0x205   :  { %v7268_v46 = vpop.eup %7267  ;;  %6780 = vmatprep.mubr.msk.f32.mxu0 %vm1394_vm1, %v7266_v23 }
 0x206   :  { %7277 = vtanh.f32 %v2016_v2  ;;  %v6594_v41 = vpop.f32.mrb[100].mxu1  ;;  %6781 = vmatmul.mubr.msk.f32.gmra.mrb[92].mxu0 %vm1394_vm1, %v7268_v46 }
 0x207   :  { %7279 = vtanh.f32 %v2021_v37  ;;  %v2031_v36 = vadd.f32 %v6594_v41, %v8469_v8  ;;  %v2025_v29 = vpop.f32.mrb[101].mxu1 }
 0x208   :  { %v7270_v14 = vpop.eup %7269  ;;  %v2026_v55 = vadd.f32 %v8469_v8, %v2025_v29 }
 0x209   :  { %v7272_v10 = vpop.eup %7271  ;;  %6783 = vmatprep.mubr.msk.f32.mxu0 %vm1394_vm1, %v7270_v14 }
 0x20a   :  { %7281 = vtanh.f32 %v2026_v55  ;;  %v6597_v6 = vpop.f32.mrb[102].mxu1  ;;  %6784 = vmatmul.mubr.msk.f32.gmra.mrb[94].mxu0 %vm1394_vm1, %v7272_v10 }
 0x20b   :  { %7283 = vtanh.f32 %v2031_v36  ;;  %v2041_v45 = vadd.f32 %v6597_v6, %v8469_v8  ;;  %v2035_v60 = vpop.f32.mrb[103].mxu1 }
 0x20c   :  { %v7274_v12 = vpop.eup %7273  ;;  %v2036_v63 = vadd.f32 %v8469_v8, %v2035_v60 }
 0x20d   :  { %v7276_v22 = vpop.eup %7275  ;;  %6786 = vmatprep.mubr.msk.f32.mxu0 %vm1394_vm1, %v7274_v12 }
 0x20e   :  { %7285 = vtanh.f32 %v2036_v63  ;;  %v6600_v20 = vpop.f32.mrb[104].mxu1  ;;  %6787 = vmatmul.mubr.msk.f32.gmra.mrb[96].mxu0 %vm1394_vm1, %v7276_v22 }
 0x20f   :  { %7287 = vtanh.f32 %v2041_v45  ;;  %v2051_v15 = vadd.f32 %v6600_v20, %v8469_v8  ;;  %v2045_v19 = vpop.f32.mrb[105].mxu1 }
 0x210   :  { %v7278_v42 = vpop.eup %7277  ;;  %v2046_v38 = vadd.f32 %v8469_v8, %v2045_v19 }
 0x211   :  { %v7280_v31 = vpop.eup %7279  ;;  %6789 = vmatprep.mubr.msk.f32.mxu0 %vm1394_vm1, %v7278_v42 }
 0x212   :  { %7289 = vtanh.f32 %v2046_v38  ;;  %v6603_v35 = vpop.f32.mrb[106].mxu1  ;;  %6790 = vmatmul.mubr.msk.f32.gmra.mrb[98].mxu0 %vm1394_vm1, %v7280_v31 }
 0x213   :  { %7291 = vtanh.f32 %v2051_v15  ;;  %v2061_v32 = vadd.f32 %v6603_v35, %v8469_v8  ;;  %v2055_v56 = vpop.f32.mrb[107].mxu1 }
 0x214   :  { %v7282_v48 = vpop.eup %7281  ;;  %v2056_v1 = vadd.f32 %v8469_v8, %v2055_v56 }
 0x215   :  { %v7284_v28 = vpop.eup %7283  ;;  %6792 = vmatprep.mubr.msk.f32.mxu0 %vm1394_vm1, %v7282_v48 }
 0x216   :  { %7293 = vtanh.f32 %v2056_v1  ;;  %v6606_v21 = vpop.f32.mrb[108].mxu1  ;;  %6793 = vmatmul.mubr.msk.f32.gmra.mrb[100].mxu0 %vm1394_vm1, %v7284_v28 }
 0x217   :  { %7295 = vtanh.f32 %v2061_v32  ;;  %v2071_v9 = vadd.f32 %v6606_v21, %v8469_v8  ;;  %v2065_v3 = vpop.f32.mrb[109].mxu1 }
 0x218   :  { %v7286_v7 = vpop.eup %7285  ;;  %v2066_v53 = vadd.f32 %v8469_v8, %v2065_v3 }
 0x219   :  { %v7288_v43 = vpop.eup %7287  ;;  %6795 = vmatprep.mubr.msk.f32.mxu0 %vm1394_vm1, %v7286_v7 }
 0x21a   :  { %7297 = vtanh.f32 %v2066_v53  ;;  %v6609_v33 = vpop.f32.mrb[110].mxu1  ;;  %6796 = vmatmul.mubr.msk.f32.gmra.mrb[102].mxu0 %vm1394_vm1, %v7288_v43 }
 0x21b   :  { %7299 = vtanh.f32 %v2071_v9  ;;  %v2081_v13 = vadd.f32 %v6609_v33, %v8469_v8  ;;  %v2075_v24 = vpop.f32.mrb[111].mxu1 }
 0x21c   :  { %v7290_v39 = vpop.eup %7289  ;;  %v2076_v50 = vadd.f32 %v8469_v8, %v2075_v24 }
 0x21d   :  { %v7292_v59 = vpop.eup %7291  ;;  %6798 = vmatprep.mubr.msk.f32.mxu0 %vm1394_vm1, %v7290_v39 }
 0x21e   :  { %7301 = vtanh.f32 %v2076_v50  ;;  %v6612_v47 = vpop.f32.mrb[112].mxu1  ;;  %6799 = vmatmul.mubr.msk.f32.gmra.mrb[104].mxu0 %vm1394_vm1, %v7292_v59 }
 0x21f   :  { %7303 = vtanh.f32 %v2081_v13  ;;  %v2091_v52 = vadd.f32 %v6612_v47, %v8469_v8  ;;  %v2085_v25 = vpop.f32.mrb[113].mxu1 }
 0x220   :  { %v7294_v57 = vpop.eup %7293  ;;  %v2086_v18 = vadd.f32 %v8469_v8, %v2085_v25 }
 0x221   :  { %v7296_v26 = vpop.eup %7295  ;;  %6801 = vmatprep.mubr.msk.f32.mxu0 %vm1394_vm1, %v7294_v57 }
 0x222   :  { %7305 = vtanh.f32 %v2086_v18  ;;  %v6615_v54 = vpop.f32.mrb[114].mxu1  ;;  %6802 = vmatmul.mubr.msk.f32.gmra.mrb[106].mxu0 %vm1394_vm1, %v7296_v26 }
 0x223   :  { %7307 = vtanh.f32 %v2091_v52  ;;  %v2101_v17 = vadd.f32 %v6615_v54, %v8469_v8  ;;  %v2095_v51 = vpop.f32.mrb[115].mxu1 }
 0x224   :  { %v7298_v61 = vpop.eup %7297  ;;  %v2096_v4 = vadd.f32 %v8469_v8, %v2095_v51 }
 0x225   :  { %v7300_v44 = vpop.eup %7299  ;;  %6804 = vmatprep.mubr.msk.f32.mxu0 %vm1394_vm1, %v7298_v61 }
 0x226   :  { %7309 = vtanh.f32 %v2096_v4  ;;  %v6618_v0 = vpop.f32.mrb[116].mxu1  ;;  %6805 = vmatmul.mubr.msk.f32.gmra.mrb[108].mxu0 %vm1394_vm1, %v7300_v44 }
 0x227   :  { %7311 = vtanh.f32 %v2101_v17  ;;  %v2111_v58 = vadd.f32 %v6618_v0, %v8469_v8  ;;  %v2105_v40 = vpop.f32.mrb[117].mxu1 }
 0x228   :  { %v7302_v62 = vpop.eup %7301  ;;  %v2106_v30 = vadd.f32 %v8469_v8, %v2105_v40 }
 0x229   :  { %v7304_v16 = vpop.eup %7303  ;;  %6807 = vmatprep.mubr.msk.f32.mxu0 %vm1394_vm1, %v7302_v62 }
 0x22a   :  { %7313 = vtanh.f32 %v2106_v30  ;;  %v6621_v11 = vpop.f32.mrb[118].mxu1  ;;  %6808 = vmatmul.mubr.msk.f32.gmra.mrb[110].mxu0 %vm1394_vm1, %v7304_v16 }
 0x22b   :  { %7315 = vtanh.f32 %v2111_v58  ;;  %v2121_v34 = vadd.f32 %v6621_v11, %v8469_v8  ;;  %v2115_v5 = vpop.f32.mrb[119].mxu1 }
 0x22c   :  { %v7306_v27 = vpop.eup %7305  ;;  %v2116_v37 = vadd.f32 %v8469_v8, %v2115_v5 }
 0x22d   :  { %v7308_v49 = vpop.eup %7307  ;;  %6810 = vmatprep.mubr.msk.f32.mxu0 %vm1394_vm1, %v7306_v27 }
 0x22e   :  { %7317 = vtanh.f32 %v2116_v37  ;;  %v6624_v23 = vpop.f32.mrb[120].mxu1  ;;  %6811 = vmatmul.mubr.msk.f32.gmra.mrb[112].mxu0 %vm1394_vm1, %v7308_v49 }
 0x22f   :  { %7319 = vtanh.f32 %v2121_v34  ;;  %v2131_v2 = vadd.f32 %v6624_v23, %v8469_v8  ;;  %v2125_v46 = vpop.f32.mrb[121].mxu1 }
 0x230   :  { %v7310_v41 = vpop.eup %7309  ;;  %v2126_v36 = vadd.f32 %v8469_v8, %v2125_v46 }
 0x231   :  { %v7312_v29 = vpop.eup %7311  ;;  %6813 = vmatprep.mubr.msk.f32.mxu0 %vm1394_vm1, %v7310_v41 }
 0x232   :  { %7321 = vtanh.f32 %v2126_v36  ;;  %v6627_v14 = vpop.f32.mrb[122].mxu1  ;;  %6814 = vmatmul.mubr.msk.f32.gmra.mrb[114].mxu0 %vm1394_vm1, %v7312_v29 }
 0x233   :  { %7323 = vtanh.f32 %v2131_v2  ;;  %v2141_v55 = vadd.f32 %v6627_v14, %v8469_v8  ;;  %v2135_v10 = vpop.f32.mrb[123].mxu1 }
 0x234   :  { %v7314_v6 = vpop.eup %7313  ;;  %v2136_v45 = vadd.f32 %v8469_v8, %v2135_v10 }
 0x235   :  { %v7316_v60 = vpop.eup %7315  ;;  %6816 = vmatprep.mubr.msk.f32.mxu0 %vm1394_vm1, %v7314_v6 }
 0x236   :  { %7325 = vtanh.f32 %v2136_v45  ;;  %v6630_v12 = vpop.f32.mrb[124].mxu1  ;;  %6817 = vmatmul.mubr.msk.f32.gmra.mrb[116].mxu0 %vm1394_vm1, %v7316_v60 }
 0x237   :  { %7327 = vtanh.f32 %v2141_v55  ;;  %v2151_v63 = vadd.f32 %v6630_v12, %v8469_v8  ;;  %v2145_v22 = vpop.f32.mrb[125].mxu1 }
 0x238   :  { %v7318_v20 = vpop.eup %7317  ;;  %v2146_v15 = vadd.f32 %v8469_v8, %v2145_v22 }
 0x239   :  { %v7320_v19 = vpop.eup %7319  ;;  %6819 = vmatprep.mubr.msk.f32.mxu0 %vm1394_vm1, %v7318_v20 }
 0x23a   :  { %7329 = vtanh.f32 %v2146_v15  ;;  %v6633_v42 = vpop.f32.mrb[126].mxu1  ;;  %6820 = vmatmul.mubr.msk.f32.gmra.mrb[118].mxu0 %vm1394_vm1, %v7320_v19 }
 0x23b   :  { %7331 = vtanh.f32 %v2151_v63  ;;  %v2161_v38 = vadd.f32 %v6633_v42, %v8469_v8  ;;  %v2155_v31 = vpop.f32.mrb[127].mxu1 }
 0x23c   :  { %v7322_v35 = vpop.eup %7321  ;;  %v2156_v32 = vadd.f32 %v8469_v8, %v2155_v31 }
 0x23d   :  { %v7324_v56 = vpop.eup %7323  ;;  %6822 = vmatprep.mubr.msk.f32.mxu0 %vm1394_vm1, %v7322_v35 }
 0x23e   :  { %7333 = vtanh.f32 %v2156_v32  ;;  %v6636_v48 = vpop.f32.mrb[128].mxu1  ;;  %6823 = vmatmul.mubr.msk.f32.gmra.mrb[120].mxu0 %vm1394_vm1, %v7324_v56 }
 0x23f   :  { %7335 = vtanh.f32 %v2161_v38  ;;  %v2171_v1 = vadd.f32 %v6636_v48, %v8469_v8  ;;  %v2165_v28 = vpop.f32.mrb[129].mxu1 }
 0x240   :  { %v7326_v21 = vpop.eup %7325  ;;  %v2166_v9 = vadd.f32 %v8469_v8, %v2165_v28 }
 0x241   :  { %v7328_v3 = vpop.eup %7327  ;;  %6825 = vmatprep.mubr.msk.f32.mxu0 %vm1394_vm1, %v7326_v21 }
 0x242   :  { %7337 = vtanh.f32 %v2166_v9  ;;  %v6639_v7 = vpop.f32.mrb[130].mxu1  ;;  %6826 = vmatmul.mubr.msk.f32.gmra.mrb[122].mxu0 %vm1394_vm1, %v7328_v3 }
 0x243   :  { %7339 = vtanh.f32 %v2171_v1  ;;  %v2181_v53 = vadd.f32 %v6639_v7, %v8469_v8  ;;  %v2175_v43 = vpop.f32.mrb[131].mxu1 }
 0x244   :  { %v7330_v33 = vpop.eup %7329  ;;  %v2176_v13 = vadd.f32 %v8469_v8, %v2175_v43 }
 0x245   :  { %v7332_v24 = vpop.eup %7331  ;;  %6828 = vmatprep.mubr.msk.f32.mxu0 %vm1394_vm1, %v7330_v33 }
 0x246   :  { %7341 = vtanh.f32 %v2176_v13  ;;  %v6642_v39 = vpop.f32.mrb[132].mxu1  ;;  %6829 = vmatmul.mubr.msk.f32.gmra.mrb[124].mxu0 %vm1394_vm1, %v7332_v24 }
 0x247   :  { %7343 = vtanh.f32 %v2181_v53  ;;  %v2191_v50 = vadd.f32 %v6642_v39, %v8469_v8  ;;  %v2185_v59 = vpop.f32.mrb[133].mxu1 }
 0x248   :  { %v7334_v47 = vpop.eup %7333  ;;  %v2186_v52 = vadd.f32 %v8469_v8, %v2185_v59 }
 0x249   :  { %v7336_v25 = vpop.eup %7335  ;;  %6831 = vmatprep.mubr.msk.f32.mxu0 %vm1394_vm1, %v7334_v47 }
 0x24a   :  { %7345 = vtanh.f32 %v2186_v52  ;;  %v6645_v57 = vpop.f32.mrb[134].mxu1  ;;  %6832 = vmatmul.mubr.msk.f32.gmra.mrb[126].mxu0 %vm1394_vm1, %v7336_v25  ;;  %v8697_v52 = vld [vmem:[%s10056_s4] ss:$0 sm:$0xff] }
 0x24b   :  { %7347 = vtanh.f32 %v2191_v50  ;;  %v2201_v18 = vadd.f32 %v6645_v57, %v8469_v8  ;;  %v2195_v26 = vpop.f32.mrb[135].mxu1 }
 0x24c   :  { %v7338_v54 = vpop.eup %7337  ;;  %v2196_v17 = vadd.f32 %v8469_v8, %v2195_v26 }
 0x24d   :  { %v7340_v51 = vpop.eup %7339  ;;  %6834 = vmatprep.mubr.msk.f32.mxu0 %vm1394_vm1, %v7338_v54 }
 0x24e   :  { %7349 = vtanh.f32 %v2196_v17  ;;  %v6648_v61 = vpop.f32.mrb[136].mxu1  ;;  %6835 = vmatmul.mubr.msk.f32.gmra.mrb[128].mxu0 %vm1394_vm1, %v7340_v51 }
 0x24f   :  { %7351 = vtanh.f32 %v2201_v18  ;;  %v2211_v4 = vadd.f32 %v6648_v61, %v8469_v8  ;;  %v2205_v44 = vpop.f32.mrb[137].mxu1 }
 0x250   :  { %v7342_v0 = vpop.eup %7341  ;;  %v2206_v58 = vadd.f32 %v8469_v8, %v2205_v44 }
 0x251   :  { %v7344_v40 = vpop.eup %7343  ;;  %6837 = vmatprep.mubr.msk.f32.mxu0 %vm1394_vm1, %v7342_v0 }
 0x252   :  { %7353 = vtanh.f32 %v2206_v58  ;;  %v6651_v62 = vpop.f32.mrb[138].mxu1  ;;  %6838 = vmatmul.mubr.msk.f32.gmra.mrb[130].mxu0 %vm1394_vm1, %v7344_v40 }
 0x253   :  { %7355 = vtanh.f32 %v2211_v4  ;;  %v2221_v30 = vadd.f32 %v6651_v62, %v8469_v8  ;;  %v2215_v16 = vpop.f32.mrb[139].mxu1 }
 0x254   :  { %v7346_v11 = vpop.eup %7345  ;;  %v2216_v34 = vadd.f32 %v8469_v8, %v2215_v16 }
 0x255   :  { %v7348_v5 = vpop.eup %7347  ;;  %6840 = vmatprep.mubr.msk.f32.mxu0 %vm1394_vm1, %v7346_v11 }
 0x256   :  { %7357 = vtanh.f32 %v2216_v34  ;;  %v6654_v27 = vpop.f32.mrb[140].mxu1  ;;  %6841 = vmatmul.mubr.msk.f32.gmra.mrb[132].mxu0 %vm1394_vm1, %v7348_v5 }
 0x257   :  { %7359 = vtanh.f32 %v2221_v30  ;;  %v2231_v37 = vadd.f32 %v6654_v27, %v8469_v8  ;;  %v2225_v49 = vpop.f32.mrb[141].mxu1 }
 0x258   :  { %v7350_v23 = vpop.eup %7349  ;;  %v2226_v2 = vadd.f32 %v8469_v8, %v2225_v49 }
 0x259   :  { %v7352_v46 = vpop.eup %7351  ;;  %6843 = vmatprep.mubr.msk.f32.mxu0 %vm1394_vm1, %v7350_v23 }
 0x25a   :  { %7361 = vtanh.f32 %v2226_v2  ;;  %v6657_v41 = vpop.f32.mrb[142].mxu1  ;;  %6844 = vmatmul.mubr.msk.f32.gmra.mrb[134].mxu0 %vm1394_vm1, %v7352_v46 }
 0x25b   :  { %7363 = vtanh.f32 %v2231_v37  ;;  %v2241_v36 = vadd.f32 %v6657_v41, %v8469_v8  ;;  %v2235_v29 = vpop.f32.mrb[143].mxu1 }
 0x25c   :  { %v7354_v14 = vpop.eup %7353  ;;  %v2236_v55 = vadd.f32 %v8469_v8, %v2235_v29 }
 0x25d   :  { %v7356_v10 = vpop.eup %7355  ;;  %6846 = vmatprep.mubr.msk.f32.mxu0 %vm1394_vm1, %v7354_v14 }
 0x25e   :  { %7365 = vtanh.f32 %v2236_v55  ;;  %v6660_v6 = vpop.f32.mrb[144].mxu1  ;;  %6847 = vmatmul.mubr.msk.f32.gmra.mrb[136].mxu0 %vm1394_vm1, %v7356_v10 }
 0x25f   :  { %7367 = vtanh.f32 %v2241_v36  ;;  %v2251_v45 = vadd.f32 %v6660_v6, %v8469_v8  ;;  %v2245_v60 = vpop.f32.mrb[145].mxu1 }
 0x260   :  { %v7358_v12 = vpop.eup %7357  ;;  %v2246_v63 = vadd.f32 %v8469_v8, %v2245_v60 }
 0x261   :  { %v7360_v22 = vpop.eup %7359  ;;  %6849 = vmatprep.mubr.msk.f32.mxu0 %vm1394_vm1, %v7358_v12 }
 0x262   :  { %7369 = vtanh.f32 %v2246_v63  ;;  %v6663_v20 = vpop.f32.mrb[146].mxu1  ;;  %6850 = vmatmul.mubr.msk.f32.gmra.mrb[138].mxu0 %vm1394_vm1, %v7360_v22 }
 0x263   :  { %7371 = vtanh.f32 %v2251_v45  ;;  %v2261_v15 = vadd.f32 %v6663_v20, %v8469_v8  ;;  %v2255_v19 = vpop.f32.mrb[147].mxu1 }
 0x264   :  { %v7362_v42 = vpop.eup %7361  ;;  %v2256_v38 = vadd.f32 %v8469_v8, %v2255_v19 }
 0x265   :  { %v7364_v31 = vpop.eup %7363  ;;  %6852 = vmatprep.mubr.msk.f32.mxu0 %vm1394_vm1, %v7362_v42 }
 0x266   :  { %7373 = vtanh.f32 %v2256_v38  ;;  %v6666_v35 = vpop.f32.mrb[148].mxu1  ;;  %6853 = vmatmul.mubr.msk.f32.gmra.mrb[140].mxu0 %vm1394_vm1, %v7364_v31 }
 0x267   :  { %7375 = vtanh.f32 %v2261_v15  ;;  %v2271_v32 = vadd.f32 %v6666_v35, %v8469_v8  ;;  %v2265_v56 = vpop.f32.mrb[149].mxu1 }
 0x268   :  { %v7366_v48 = vpop.eup %7365  ;;  %v2266_v1 = vadd.f32 %v8469_v8, %v2265_v56 }
 0x269   :  { %v7368_v28 = vpop.eup %7367  ;;  %6855 = vmatprep.mubr.msk.f32.mxu0 %vm1394_vm1, %v7366_v48 }
 0x26a   :  { %7377 = vtanh.f32 %v2266_v1  ;;  %v6669_v21 = vpop.f32.mrb[150].mxu1  ;;  %6856 = vmatmul.mubr.msk.f32.gmra.mrb[142].mxu0 %vm1394_vm1, %v7368_v28 }
 0x26b   :  { %7379 = vtanh.f32 %v2271_v32  ;;  %v2281_v9 = vadd.f32 %v6669_v21, %v8469_v8  ;;  %v2275_v3 = vpop.f32.mrb[151].mxu1 }
 0x26c   :  { %v7370_v7 = vpop.eup %7369  ;;  %v2276_v53 = vadd.f32 %v8469_v8, %v2275_v3 }
 0x26d   :  { %v7372_v43 = vpop.eup %7371  ;;  %6858 = vmatprep.mubr.msk.f32.mxu0 %vm1394_vm1, %v7370_v7 }
 0x26e   :  { %7381 = vtanh.f32 %v2276_v53  ;;  %v6672_v33 = vpop.f32.mrb[152].mxu1  ;;  %6859 = vmatmul.mubr.msk.f32.gmra.mrb[144].mxu0 %vm1394_vm1, %v7372_v43 }
 0x26f   :  { %7383 = vtanh.f32 %v2281_v9  ;;  %v2291_v13 = vadd.f32 %v6672_v33, %v8469_v8  ;;  %v2285_v24 = vpop.f32.mrb[153].mxu1 }
 0x270   :  { %v7374_v39 = vpop.eup %7373  ;;  %v2286_v50 = vadd.f32 %v8469_v8, %v2285_v24 }
 0x271   :  { %v7376_v59 = vpop.eup %7375  ;;  %6861 = vmatprep.mubr.msk.f32.mxu0 %vm1394_vm1, %v7374_v39 }
 0x272   :  { %7385 = vtanh.f32 %v2286_v50  ;;  %v6675_v47 = vpop.f32.mrb[154].mxu1  ;;  %6862 = vmatmul.mubr.msk.f32.gmra.mrb[146].mxu0 %vm1394_vm1, %v7376_v59 }
 0x273   :  { %7387 = vtanh.f32 %v2291_v13  ;;  %v2301_v25 = vadd.f32 %v8697_v52, %v6675_v47  ;;  %v2295_v57 = vpop.f32.mrb[155].mxu1 }
 0x274   :  { %v7378_v18 = vpop.eup %7377  ;;  %v2296_v26 = vadd.f32 %v8697_v52, %v2295_v57 }
 0x275   :  { %v7380_v8 = vpop.eup %7379  ;;  %6864 = vmatprep.mubr.msk.f32.mxu0 %vm1394_vm1, %v7378_v18 }
 0x276   :  { %7389 = vtanh.f32 %v2296_v26  ;;  %v6678_v54 = vpop.f32.mrb[156].mxu1  ;;  %6865 = vmatmul.mubr.msk.f32.gmra.mrb[148].mxu0 %vm1394_vm1, %v7380_v8 }
 0x277   :  { %7391 = vtanh.f32 %v2301_v25  ;;  %v2311_v17 = vadd.f32 %v8697_v52, %v6678_v54  ;;  %v2305_v51 = vpop.f32.mrb[157].mxu1  ;;  %v8747_v54 = vld [vmem:[%s10058_s6] ss:$0 sm:$0xff] }
 0x278   :  { %v7382_v61 = vpop.eup %7381  ;;  %v2306_v4 = vadd.f32 %v8697_v52, %v2305_v51 }
 0x279   :  { %v7384_v44 = vpop.eup %7383  ;;  %6867 = vmatprep.mubr.msk.f32.mxu0 %vm1394_vm1, %v7382_v61 }
 0x27a   :  { %7393 = vtanh.f32 %v2306_v4  ;;  %v6681_v0 = vpop.f32.mrb[158].mxu1  ;;  %6868 = vmatmul.mubr.msk.f32.gmra.mrb[150].mxu0 %vm1394_vm1, %v7384_v44 }
 0x27b   :  { %7395 = vtanh.f32 %v2311_v17  ;;  %v2321_v58 = vadd.f32 %v8697_v52, %v6681_v0  ;;  %v2315_v40 = vpop.f32.mrb[159].mxu1 }
 0x27c   :  { %v7386_v62 = vpop.eup %7385  ;;  %v2316_v30 = vadd.f32 %v8697_v52, %v2315_v40 }
 0x27d   :  { %v7388_v16 = vpop.eup %7387  ;;  %6870 = vmatprep.mubr.msk.f32.mxu0 %vm1394_vm1, %v7386_v62 }
 0x27e   :  { %7397 = vtanh.f32 %v2316_v30  ;;  %v6684_v11 = vpop.f32.mrb[160].mxu1  ;;  %6871 = vmatmul.mubr.msk.f32.gmra.mrb[152].mxu0 %vm1394_vm1, %v7388_v16 }
 0x27f   :  { %7399 = vtanh.f32 %v2321_v58  ;;  %v2331_v34 = vadd.f32 %v8697_v52, %v6684_v11  ;;  %v2325_v5 = vpop.f32.mrb[161].mxu1 }
 0x280   :  { %v7390_v27 = vpop.eup %7389  ;;  %v2326_v37 = vadd.f32 %v8697_v52, %v2325_v5 }
 0x281   :  { %v7392_v49 = vpop.eup %7391  ;;  %6873 = vmatprep.mubr.msk.f32.mxu0 %vm1394_vm1, %v7390_v27 }
 0x282   :  { %7401 = vtanh.f32 %v2326_v37  ;;  %v6687_v23 = vpop.f32.mrb[162].mxu1  ;;  %6874 = vmatmul.mubr.msk.f32.gmra.mrb[154].mxu0 %vm1394_vm1, %v7392_v49 }
 0x283   :  { %7403 = vtanh.f32 %v2331_v34  ;;  %v2341_v2 = vadd.f32 %v8697_v52, %v6687_v23  ;;  %v2335_v46 = vpop.f32.mrb[163].mxu1 }
 0x284   :  { %v7394_v41 = vpop.eup %7393  ;;  %v2336_v36 = vadd.f32 %v8697_v52, %v2335_v46 }
 0x285   :  { %v7396_v29 = vpop.eup %7395  ;;  %6876 = vmatprep.mubr.msk.f32.mxu0 %vm1394_vm1, %v7394_v41 }
 0x286   :  { %7405 = vtanh.f32 %v2336_v36  ;;  %v6690_v14 = vpop.f32.mrb[164].mxu1  ;;  %6877 = vmatmul.mubr.msk.f32.gmra.mrb[156].mxu0 %vm1394_vm1, %v7396_v29 }
 0x287   :  { %7407 = vtanh.f32 %v2341_v2  ;;  %v2351_v55 = vadd.f32 %v8697_v52, %v6690_v14  ;;  %v2345_v10 = vpop.f32.mrb[165].mxu1 }
 0x288   :  { %v7398_v6 = vpop.eup %7397  ;;  %v2346_v45 = vadd.f32 %v8697_v52, %v2345_v10 }
 0x289   :  { %v7400_v60 = vpop.eup %7399  ;;  %6879 = vmatprep.mubr.msk.f32.mxu0 %vm1394_vm1, %v7398_v6 }
 0x28a   :  { %7409 = vtanh.f32 %v2346_v45  ;;  %v6693_v12 = vpop.f32.mrb[166].mxu1  ;;  %6880 = vmatmul.mubr.msk.f32.gmra.mrb[158].mxu0 %vm1394_vm1, %v7400_v60 }
 0x28b   :  { %7411 = vtanh.f32 %v2351_v55  ;;  %v2361_v63 = vadd.f32 %v8697_v52, %v6693_v12  ;;  %v2355_v22 = vpop.f32.mrb[167].mxu1 }
 0x28c   :  { %v7402_v20 = vpop.eup %7401  ;;  %v2356_v15 = vadd.f32 %v8697_v52, %v2355_v22 }
 0x28d   :  { %v7404_v19 = vpop.eup %7403  ;;  %6882 = vmatprep.mubr.msk.f32.mxu0 %vm1394_vm1, %v7402_v20 }
 0x28e   :  { %7413 = vtanh.f32 %v2356_v15  ;;  %v6696_v42 = vpop.f32.mrb[168].mxu1  ;;  %6883 = vmatmul.mubr.msk.f32.gmra.mrb[160].mxu0 %vm1394_vm1, %v7404_v19 }
 0x28f   :  { %7415 = vtanh.f32 %v2361_v63  ;;  %v2371_v38 = vadd.f32 %v8697_v52, %v6696_v42  ;;  %v2365_v31 = vpop.f32.mrb[169].mxu1 }
 0x290   :  { %v7406_v35 = vpop.eup %7405  ;;  %v2366_v32 = vadd.f32 %v8697_v52, %v2365_v31 }
 0x291   :  { %v7408_v56 = vpop.eup %7407  ;;  %6885 = vmatprep.mubr.msk.f32.mxu0 %vm1394_vm1, %v7406_v35 }
 0x292   :  { %7417 = vtanh.f32 %v2366_v32  ;;  %v6699_v48 = vpop.f32.mrb[170].mxu1  ;;  %6886 = vmatmul.mubr.msk.f32.gmra.mrb[162].mxu0 %vm1394_vm1, %v7408_v56 }
 0x293   :  { %7419 = vtanh.f32 %v2371_v38  ;;  %v2381_v1 = vadd.f32 %v8697_v52, %v6699_v48  ;;  %v2375_v28 = vpop.f32.mrb[171].mxu1 }
 0x294   :  { %v7410_v21 = vpop.eup %7409  ;;  %v2376_v9 = vadd.f32 %v8697_v52, %v2375_v28 }
 0x295   :  { %v7412_v3 = vpop.eup %7411  ;;  %6888 = vmatprep.mubr.msk.f32.mxu0 %vm1394_vm1, %v7410_v21 }
 0x296   :  { %7421 = vtanh.f32 %v2376_v9  ;;  %v6702_v7 = vpop.f32.mrb[172].mxu1  ;;  %6889 = vmatmul.mubr.msk.f32.gmra.mrb[164].mxu0 %vm1394_vm1, %v7412_v3 }
 0x297   :  { %7423 = vtanh.f32 %v2381_v1  ;;  %v2391_v53 = vadd.f32 %v8697_v52, %v6702_v7  ;;  %v2385_v43 = vpop.f32.mrb[173].mxu1 }
 0x298   :  { %v7414_v33 = vpop.eup %7413  ;;  %v2386_v13 = vadd.f32 %v8697_v52, %v2385_v43 }
 0x299   :  { %v7416_v24 = vpop.eup %7415  ;;  %6891 = vmatprep.mubr.msk.f32.mxu0 %vm1394_vm1, %v7414_v33 }
 0x29a   :  { %7425 = vtanh.f32 %v2386_v13  ;;  %v6705_v39 = vpop.f32.mrb[174].mxu1  ;;  %6892 = vmatmul.mubr.msk.f32.gmra.mrb[166].mxu0 %vm1394_vm1, %v7416_v24 }
 0x29b   :  { %7427 = vtanh.f32 %v2391_v53  ;;  %v2401_v50 = vadd.f32 %v8697_v52, %v6705_v39  ;;  %v2395_v59 = vpop.f32.mrb[175].mxu1 }
 0x29c   :  { %v7418_v47 = vpop.eup %7417  ;;  %v2396_v25 = vadd.f32 %v8697_v52, %v2395_v59 }
 0x29d   :  { %v7420_v57 = vpop.eup %7419  ;;  %6894 = vmatprep.mubr.msk.f32.mxu0 %vm1394_vm1, %v7418_v47 }
 0x29e   :  { %7429 = vtanh.f32 %v2396_v25  ;;  %v6708_v18 = vpop.f32.mrb[176].mxu1  ;;  %6895 = vmatmul.mubr.msk.f32.gmra.mrb[168].mxu0 %vm1394_vm1, %v7420_v57 }
 0x29f   :  { %7431 = vtanh.f32 %v2401_v50  ;;  %v2411_v26 = vadd.f32 %v8697_v52, %v6708_v18  ;;  %v2405_v8 = vpop.f32.mrb[177].mxu1 }
 0x2a0   :  { %v7422_v17 = vpop.eup %7421  ;;  %v2406_v51 = vadd.f32 %v8697_v52, %v2405_v8 }
 0x2a1   :  { %v7424_v61 = vpop.eup %7423  ;;  %v6740_v4 = vpop.f32.mrb[64].mxu0  ;;  %6897 = vmatprep.mubr.msk.f32.mxu0 %vm1394_vm1, %v7422_v17 }
 0x2a2   :  { %7433 = vtanh.f32 %v2406_v51  ;;  %v3079_v44 = vadd.f32 %v6740_v4, %v8747_v54  ;;  %v6711_v0 = vpop.f32.mrb[178].mxu1  ;;  %v3073_v58 = vpop.f32.mrb[65].mxu0  ;;  %6898 = vmatmul.mubr.msk.f32.gmra.mrb[170].mxu0 %vm1394_vm1, %v7424_v61 }
 0x2a3   :  { %7435 = vtanh.f32 %v2411_v26  ;;  %v2421_v40 = vadd.f32 %v8697_v52, %v6711_v0  ;;  %v3074_v62 = vadd.f32 %v8747_v54, %v3073_v58  ;;  %v2415_v30 = vpop.f32.mrb[179].mxu1 }
 0x2a4   :  { %v7426_v16 = vpop.eup %7425  ;;  %3714 = vst.msk [vmem:[#allocation2 + $0x8] sm:$0xff] %vm3712_vm2, %v3079_v44  ;;  %v2416_v11 = vadd.f32 %v8697_v52, %v2415_v30  ;;  %3971 = vrot.lane.b32.xlu0 %v3079_v44, %s7469_s24 }
 0x2a5   :  { %v7428_v34 = vpop.eup %7427  ;;  %3713 = vst.msk [vmem:[#allocation2] sm:$0xff] %vm3712_vm2, %v3074_v62  ;;  %v6743_v5 = vpop.f32.mrb[66].mxu0  ;;  %6900 = vmatprep.mubr.msk.f32.mxu0 %vm1394_vm1, %v7426_v16 }
 0x2a6   :  { %7437 = vtanh.f32 %v2416_v11  ;;  %v3089_v27 = vadd.f32 %v6743_v5, %v8747_v54  ;;  %v6714_v37 = vpop.f32.mrb[180].mxu1  ;;  %v3083_v49 = vpop.f32.mrb[67].mxu0  ;;  %6901 = vmatmul.mubr.msk.f32.gmra.mrb[172].mxu0 %vm1394_vm1, %v7428_v34 }
 0x2a7   :  { %7439 = vtanh.f32 %v2421_v40  ;;  %v2431_v23 = vadd.f32 %v8697_v52, %v6714_v37  ;;  %v3084_v2 = vadd.f32 %v8747_v54, %v3083_v49  ;;  %v2425_v46 = vpop.f32.mrb[181].mxu1 }
 0x2a8   :  { %v7430_v41 = vpop.eup %7429  ;;  %3716 = vst.msk [vmem:[#allocation2 + $0x18] sm:$0xff] %vm3712_vm2, %v3089_v27  ;;  %v2426_v36 = vadd.f32 %v8697_v52, %v2425_v46  ;;  %3975 = vrot.lane.b32.xlu1 %v3089_v27, %s7469_s24  ;;  %3969 = vrot.lane.b32.xlu0 %v3074_v62, %s7469_s24 }
 0x2a9   :  { %v7432_v29 = vpop.eup %7431  ;;  %3715 = vst.msk [vmem:[#allocation2 + $0x10] sm:$0xff] %vm3712_vm2, %v3084_v2  ;;  %v6746_v14 = vpop.f32.mrb[68].mxu0  ;;  %6903 = vmatprep.mubr.msk.f32.mxu0 %vm1394_vm1, %v7430_v41 }
 0x2aa   :  { %7441 = vtanh.f32 %v2426_v36  ;;  %v3099_v55 = vadd.f32 %v6746_v14, %v8747_v54  ;;  %v6717_v10 = vpop.f32.mrb[182].mxu1  ;;  %v3093_v6 = vpop.f32.mrb[69].mxu0  ;;  %6904 = vmatmul.mubr.msk.f32.gmra.mrb[174].mxu0 %vm1394_vm1, %v7432_v29 }
 0x2ab   :  { %v4760_v45 = vld [vmem:[#allocation2 + $0x8] sm:$0xff]  ;;  %7443 = vtanh.f32 %v2431_v23  ;;  %v2441_v60 = vadd.f32 %v8697_v52, %v6717_v10  ;;  %v3094_v12 = vadd.f32 %v8747_v54, %v3093_v6  ;;  %v2435_v63 = vpop.f32.mrb[183].mxu1 }
 0x2ac   :  { %v7434_v22 = vpop.eup %7433  ;;  %4761 = vst [vmem:[%s10059_s7 + $0x8] sm:$0xff] %v4760_v45  ;;  %v4758_v20 = vld [vmem:[#allocation2] sm:$0xff]  ;;  %3718 = vst.msk [vmem:[#allocation2 + $0x28] sm:$0xff] %vm3712_vm2, %v3099_v55  ;;  %v2436_v15 = vadd.f32 %v8697_v52, %v2435_v63  ;;  %3973 = vrot.lane.b32.xlu1 %v3084_v2, %s7469_s24 }
 0x2ad   :  { %v7436_v19 = vpop.eup %7435  ;;  %4759 = vst [vmem:[%s10059_s7] sm:$0xff] %v4758_v20  ;;  %3717 = vst.msk [vmem:[#allocation2 + $0x20] sm:$0xff] %vm3712_vm2, %v3094_v12  ;;  %v6749_v42 = vpop.f32.mrb[70].mxu0  ;;  %6906 = vmatprep.mubr.msk.f32.mxu0 %vm1394_vm1, %v7434_v22  ;;  %3977 = vrot.lane.b32.xlu0 %v3094_v12, %s7469_s24 }
 0x2ae   :  { %7445 = vtanh.f32 %v2436_v15  ;;  %v3109_v38 = vadd.f32 %v6749_v42, %v8747_v54  ;;  %v6720_v31 = vpop.f32.mrb[184].mxu1  ;;  %v3103_v35 = vpop.f32.mrb[71].mxu0  ;;  %6907 = vmatmul.mubr.msk.f32.gmra.mrb[176].mxu0 %vm1394_vm1, %v7436_v19 }
 0x2af   :  { %v4764_v32 = vld [vmem:[#allocation2 + $0x18] sm:$0xff]  ;;  %7447 = vtanh.f32 %v2441_v60  ;;  %v2451_v56 = vadd.f32 %v8697_v52, %v6720_v31  ;;  %v3104_v48 = vadd.f32 %v8747_v54, %v3103_v35  ;;  %v2445_v1 = vpop.f32.mrb[185].mxu1 }
 0x2b0   :  { %v7438_v28 = vpop.eup %7437  ;;  %4765 = vst [vmem:[%s10059_s7 + $0x18] sm:$0xff] %v4764_v32  ;;  %v4762_v21 = vld [vmem:[#allocation2 + $0x10] sm:$0xff]  ;;  %3720 = vst.msk [vmem:[#allocation2 + $0x38] sm:$0xff] %vm3712_vm2, %v3109_v38  ;;  %v2446_v9 = vadd.f32 %v8697_v52, %v2445_v1  ;;  %3979 = vrot.lane.b32.xlu1 %v3099_v55, %s7469_s24 }
 0x2b1   :  { %v7440_v3 = vpop.eup %7439  ;;  %4763 = vst [vmem:[%s10059_s7 + $0x10] sm:$0xff] %v4762_v21  ;;  %3719 = vst.msk [vmem:[#allocation2 + $0x30] sm:$0xff] %vm3712_vm2, %v3104_v48  ;;  %v6752_v7 = vpop.f32.mrb[72].mxu0  ;;  %6909 = vmatprep.mubr.msk.f32.mxu0 %vm1394_vm1, %v7438_v28  ;;  %3981 = vrot.lane.b32.xlu0 %v3104_v48, %s7469_s24 }
 0x2b2   :  { %7449 = vtanh.f32 %v2446_v9  ;;  %v3119_v53 = vadd.f32 %v6752_v7, %v8747_v54  ;;  %v6723_v43 = vpop.f32.mrb[186].mxu1  ;;  %v3113_v33 = vpop.f32.mrb[73].mxu0  ;;  %6910 = vmatmul.mubr.msk.f32.gmra.mrb[178].mxu0 %vm1394_vm1, %v7440_v3 }
 0x2b3   :  { %v4768_v13 = vld [vmem:[#allocation2 + $0x28] sm:$0xff]  ;;  %7451 = vtanh.f32 %v2451_v56  ;;  %v2461_v24 = vadd.f32 %v8697_v52, %v6723_v43  ;;  %v3114_v39 = vadd.f32 %v8747_v54, %v3113_v33  ;;  %v2455_v50 = vpop.f32.mrb[187].mxu1 }
 0x2b4   :  { %v7442_v59 = vpop.eup %7441  ;;  %4769 = vst [vmem:[%s10059_s7 + $0x28] sm:$0xff] %v4768_v13  ;;  %v4766_v47 = vld [vmem:[#allocation2 + $0x20] sm:$0xff]  ;;  %3722 = vst.msk [vmem:[#allocation2 + $0x48] sm:$0xff] %vm3712_vm2, %v3119_v53  ;;  %v2456_v25 = vadd.f32 %v8697_v52, %v2455_v50  ;;  %3983 = vrot.lane.b32.xlu1 %v3109_v38, %s7469_s24 }
 0x2b5   :  { %v7444_v57 = vpop.eup %7443  ;;  %4767 = vst [vmem:[%s10059_s7 + $0x20] sm:$0xff] %v4766_v47  ;;  %3721 = vst.msk [vmem:[#allocation2 + $0x40] sm:$0xff] %vm3712_vm2, %v3114_v39  ;;  %v6755_v18 = vpop.f32.mrb[74].mxu0  ;;  %6912 = vmatprep.mubr.msk.f32.mxu0 %vm1394_vm1, %v7442_v59  ;;  %3985 = vrot.lane.b32.xlu0 %v3114_v39, %s7469_s24 }
 0x2b6   :  { %7453 = vtanh.f32 %v2456_v25  ;;  %v3129_v26 = vadd.f32 %v6755_v18, %v8747_v54  ;;  %v6726_v8 = vpop.f32.mrb[188].mxu1  ;;  %v3123_v17 = vpop.f32.mrb[75].mxu0  ;;  %6913 = vmatmul.mubr.msk.f32.gmra.mrb[180].mxu0 %vm1394_vm1, %v7444_v57 }
 0x2b7   :  { %v4772_v51 = vld [vmem:[#allocation2 + $0x38] sm:$0xff]  ;;  %7455 = vtanh.f32 %v2461_v24  ;;  %v2471_v61 = vadd.f32 %v8697_v52, %v6726_v8  ;;  %v3124_v4 = vadd.f32 %v8747_v54, %v3123_v17  ;;  %v2465_v44 = vpop.f32.mrb[189].mxu1 }
 0x2b8   :  { %v7446_v0 = vpop.eup %7445  ;;  %4773 = vst [vmem:[%s10059_s7 + $0x38] sm:$0xff] %v4772_v51  ;;  %v4770_v58 = vld [vmem:[#allocation2 + $0x30] sm:$0xff]  ;;  %3724 = vst.msk [vmem:[#allocation2 + $0x58] sm:$0xff] %vm3712_vm2, %v3129_v26  ;;  %v2466_v40 = vadd.f32 %v8697_v52, %v2465_v44  ;;  %3987 = vrot.lane.b32.xlu1 %v3119_v53, %s7469_s24 }
 0x2b9   :  { %v7448_v62 = vpop.eup %7447  ;;  %4771 = vst [vmem:[%s10059_s7 + $0x30] sm:$0xff] %v4770_v58  ;;  %3723 = vst.msk [vmem:[#allocation2 + $0x50] sm:$0xff] %vm3712_vm2, %v3124_v4  ;;  %v6758_v30 = vpop.f32.mrb[76].mxu0  ;;  %6915 = vmatprep.mubr.msk.f32.mxu0 %vm1394_vm1, %v7446_v0  ;;  %3989 = vrot.lane.b32.xlu0 %v3124_v4, %s7469_s24 }
 0x2ba   :  { %7457 = vtanh.f32 %v2466_v40  ;;  %v3139_v16 = vadd.f32 %v6758_v30, %v8747_v54  ;;  %v6729_v11 = vpop.f32.mrb[190].mxu1  ;;  %v3133_v34 = vpop.f32.mrb[77].mxu0  ;;  %6916 = vmatmul.mubr.msk.f32.gmra.mrb[182].mxu0 %vm1394_vm1, %v7448_v62 }
 0x2bb   :  { %v4776_v5 = vld [vmem:[#allocation2 + $0x48] sm:$0xff]  ;;  %7459 = vtanh.f32 %v2471_v61  ;;  %v2481_v27 = vadd.f32 %v8697_v52, %v6729_v11  ;;  %v3134_v37 = vadd.f32 %v8747_v54, %v3133_v34  ;;  %v2475_v49 = vpop.f32.mrb[191].mxu1 }
 0x2bc   :  { %v7450_v23 = vpop.eup %7449  ;;  %4777 = vst [vmem:[%s10059_s7 + $0x48] sm:$0xff] %v4776_v5  ;;  %v4774_v2 = vld [vmem:[#allocation2 + $0x40] sm:$0xff]  ;;  %3726 = vst.msk [vmem:[#allocation2 + $0x68] sm:$0xff] %vm3712_vm2, %v3139_v16  ;;  %v2476_v46 = vadd.f32 %v8697_v52, %v2475_v49  ;;  %3991 = vrot.lane.b32.xlu1 %v3129_v26, %s7469_s24 }
 0x2bd   :  { %v7452_v41 = vpop.eup %7451  ;;  %4775 = vst [vmem:[%s10059_s7 + $0x40] sm:$0xff] %v4774_v2  ;;  %3725 = vst.msk [vmem:[#allocation2 + $0x60] sm:$0xff] %vm3712_vm2, %v3134_v37  ;;  %v6761_v36 = vpop.f32.mrb[78].mxu0  ;;  %6918 = vmatprep.mubr.msk.f32.mxu0 %vm1394_vm1, %v7450_v23  ;;  %3993 = vrot.lane.b32.xlu0 %v3134_v37, %s7469_s24 }
 0x2be   :  { %7461 = vtanh.f32 %v2476_v46  ;;  %v3149_v29 = vadd.f32 %v6761_v36, %v8747_v54  ;;  %v3143_v14 = vpop.f32.mrb[79].mxu0  ;;  %6919 = vmatmul.mubr.msk.f32.gmra.mrb[184].mxu0 %vm1394_vm1, %v7452_v41 }
 0x2bf   :  { %v4780_v52 = vld [vmem:[#allocation2 + $0x58] sm:$0xff]  ;;  %7463 = vtanh.f32 %v2481_v27  ;;  %v3144_v55 = vadd.f32 %v8747_v54, %v3143_v14 }
 0x2c0   :  { %v7454_v10 = vpop.eup %7453  ;;  %4781 = vst [vmem:[%s10059_s7 + $0x58] sm:$0xff] %v4780_v52  ;;  %v4778_v6 = vld [vmem:[#allocation2 + $0x50] sm:$0xff]  ;;  %3728 = vst.msk [vmem:[#allocation2 + $0x78] sm:$0xff] %vm3712_vm2, %v3149_v29  ;;  %3995 = vrot.lane.b32.xlu1 %v3139_v16, %s7469_s24 }
 0x2c1   :  { %v7456_v45 = vpop.eup %7455  ;;  %4779 = vst [vmem:[%s10059_s7 + $0x50] sm:$0xff] %v4778_v6  ;;  %3727 = vst.msk [vmem:[#allocation2 + $0x70] sm:$0xff] %vm3712_vm2, %v3144_v55  ;;  %v6764_v60 = vpop.f32.mrb[80].mxu0  ;;  %6921 = vmatprep.mubr.msk.f32.mxu0 %vm1394_vm1, %v7454_v10  ;;  %3997 = vrot.lane.b32.xlu0 %v3144_v55, %s7469_s24 }
 0x2c2   :  { %v3159_v12 = vadd.f32 %v6764_v60, %v8747_v54  ;;  %v3153_v63 = vpop.f32.mrb[81].mxu0  ;;  %6922 = vmatmul.mubr.msk.f32.gmra.mrb[186].mxu0 %vm1394_vm1, %v7456_v45 }
 0x2c3   :  { %v4784_v22 = vld [vmem:[#allocation2 + $0x68] sm:$0xff]  ;;  %v3154_v20 = vadd.f32 %v8747_v54, %v3153_v63 }
 0x2c4   :  { %v7458_v15 = vpop.eup %7457  ;;  %4785 = vst [vmem:[%s10059_s7 + $0x68] sm:$0xff] %v4784_v22  ;;  %v4782_v19 = vld [vmem:[#allocation2 + $0x60] sm:$0xff]  ;;  %3730 = vst.msk [vmem:[#allocation2 + $0x88] sm:$0xff] %vm3712_vm2, %v3159_v12  ;;  %3999 = vrot.lane.b32.xlu1 %v3149_v29, %s7469_s24 }
 0x2c5   :  { %v7460_v42 = vpop.eup %7459  ;;  %4783 = vst [vmem:[%s10059_s7 + $0x60] sm:$0xff] %v4782_v19  ;;  %3729 = vst.msk [vmem:[#allocation2 + $0x80] sm:$0xff] %vm3712_vm2, %v3154_v20  ;;  %v6767_v38 = vpop.f32.mrb[82].mxu0  ;;  %6924 = vmatprep.mubr.msk.f32.mxu0 %vm1394_vm1, %v7458_v15  ;;  %4001 = vrot.lane.b32.xlu0 %v3154_v20, %s7469_s24 }
 0x2c6   :  { %v3169_v31 = vadd.f32 %v6767_v38, %v8747_v54  ;;  %v3163_v35 = vpop.f32.mrb[83].mxu0  ;;  %6925 = vmatmul.mubr.msk.f32.gmra.mrb[188].mxu0 %vm1394_vm1, %v7460_v42 }
 0x2c7   :  { %v4788_v32 = vld [vmem:[#allocation2 + $0x78] sm:$0xff]  ;;  %v3164_v56 = vadd.f32 %v8747_v54, %v3163_v35 }
 0x2c8   :  { %v7462_v48 = vpop.eup %7461  ;;  %4789 = vst [vmem:[%s10059_s7 + $0x78] sm:$0xff] %v4788_v32  ;;  %v4786_v1 = vld [vmem:[#allocation2 + $0x70] sm:$0xff]  ;;  %3732 = vst.msk [vmem:[#allocation2 + $0x98] sm:$0xff] %vm3712_vm2, %v3169_v31  ;;  %4003 = vrot.lane.b32.xlu1 %v3159_v12, %s7469_s24 }
 0x2c9   :  { %v7464_v28 = vpop.eup %7463  ;;  %4787 = vst [vmem:[%s10059_s7 + $0x70] sm:$0xff] %v4786_v1  ;;  %3731 = vst.msk [vmem:[#allocation2 + $0x90] sm:$0xff] %vm3712_vm2, %v3164_v56  ;;  %v6770_v21 = vpop.f32.mrb[84].mxu0  ;;  %6927 = vmatprep.mubr.msk.f32.mxu0 %vm1394_vm1, %v7462_v48  ;;  %4005 = vrot.lane.b32.xlu0 %v3164_v56, %s7469_s24 }
 0x2ca   :  { %v3179_v9 = vadd.f32 %v6770_v21, %v8747_v54  ;;  %v3173_v3 = vpop.f32.mrb[85].mxu0  ;;  %6928 = vmatmul.mubr.msk.f32.gmra.mrb[190].mxu0 %vm1394_vm1, %v7464_v28 }
 0x2cb   :  { %v4792_v7 = vld [vmem:[#allocation2 + $0x88] sm:$0xff]  ;;  %v3174_v53 = vadd.f32 %v8747_v54, %v3173_v3 }
 0x2cc   :  { %4793 = vst [vmem:[%s10059_s7 + $0x88] sm:$0xff] %v4792_v7  ;;  %v4790_v43 = vld [vmem:[#allocation2 + $0x80] sm:$0xff]  ;;  %3734 = vst.msk [vmem:[#allocation2 + $0xa8] sm:$0xff] %vm3712_vm2, %v3179_v9  ;;  %4007 = vrot.lane.b32.xlu1 %v3169_v31, %s7469_s24 }
 0x2cd   :  { %4791 = vst [vmem:[%s10059_s7 + $0x80] sm:$0xff] %v4790_v43  ;;  %3733 = vst.msk [vmem:[#allocation2 + $0xa0] sm:$0xff] %vm3712_vm2, %v3174_v53  ;;  %v6773_v33 = vpop.f32.mrb[86].mxu0  ;;  %4009 = vrot.lane.b32.xlu0 %v3174_v53, %s7469_s24 }
 0x2ce   :  { %v3189_v13 = vadd.f32 %v6773_v33, %v8747_v54  ;;  %v3183_v24 = vpop.f32.mrb[87].mxu0 }
 0x2cf   :  { %v4796_v39 = vld [vmem:[#allocation2 + $0x98] sm:$0xff]  ;;  %v3184_v50 = vadd.f32 %v8747_v54, %v3183_v24 }
 0x2d0   :  { %4797 = vst [vmem:[%s10059_s7 + $0x98] sm:$0xff] %v4796_v39  ;;  %v4794_v59 = vld [vmem:[#allocation2 + $0x90] sm:$0xff]  ;;  %3736 = vst.msk [vmem:[#allocation2 + $0xb8] sm:$0xff] %vm3712_vm2, %v3189_v13  ;;  %4011 = vrot.lane.b32.xlu1 %v3179_v9, %s7469_s24 }
 0x2d1   :  { %4795 = vst [vmem:[%s10059_s7 + $0x90] sm:$0xff] %v4794_v59  ;;  %3735 = vst.msk [vmem:[#allocation2 + $0xb0] sm:$0xff] %vm3712_vm2, %v3184_v50  ;;  %v6776_v47 = vpop.f32.mrb[88].mxu0  ;;  %4013 = vrot.lane.b32.xlu0 %v3184_v50, %s7469_s24 }
 0x2d2   :  { %v3199_v25 = vadd.f32 %v6776_v47, %v8747_v54  ;;  %v3193_v57 = vpop.f32.mrb[89].mxu0 }
 0x2d3   :  { %v4800_v18 = vld [vmem:[#allocation2 + $0xa8] sm:$0xff]  ;;  %v3194_v26 = vadd.f32 %v8747_v54, %v3193_v57 }
 0x2d4   :  { %4801 = vst [vmem:[%s10059_s7 + $0xa8] sm:$0xff] %v4800_v18  ;;  %v4798_v8 = vld [vmem:[#allocation2 + $0xa0] sm:$0xff]  ;;  %3738 = vst.msk [vmem:[#allocation2 + $0xc8] sm:$0xff] %vm3712_vm2, %v3199_v25  ;;  %4015 = vrot.lane.b32.xlu1 %v3189_v13, %s7469_s24 }
 0x2d5   :  { %4799 = vst [vmem:[%s10059_s7 + $0xa0] sm:$0xff] %v4798_v8  ;;  %3737 = vst.msk [vmem:[#allocation2 + $0xc0] sm:$0xff] %vm3712_vm2, %v3194_v26  ;;  %v6779_v17 = vpop.f32.mrb[90].mxu0  ;;  %4017 = vrot.lane.b32.xlu0 %v3194_v26, %s7469_s24 }
 0x2d6   :  { %v3209_v51 = vadd.f32 %v6779_v17, %v8747_v54  ;;  %v3203_v61 = vpop.f32.mrb[91].mxu0 }
 0x2d7   :  { %v4804_v4 = vld [vmem:[#allocation2 + $0xb8] sm:$0xff]  ;;  %v3204_v44 = vadd.f32 %v8747_v54, %v3203_v61 }
 0x2d8   :  { %4805 = vst [vmem:[%s10059_s7 + $0xb8] sm:$0xff] %v4804_v4  ;;  %v4802_v0 = vld [vmem:[#allocation2 + $0xb0] sm:$0xff]  ;;  %3740 = vst.msk [vmem:[#allocation2 + $0xd8] sm:$0xff] %vm3712_vm2, %v3209_v51  ;;  %4019 = vrot.lane.b32.xlu1 %v3199_v25, %s7469_s24 }
 0x2d9   :  { %4803 = vst [vmem:[%s10059_s7 + $0xb0] sm:$0xff] %v4802_v0  ;;  %3739 = vst.msk [vmem:[#allocation2 + $0xd0] sm:$0xff] %vm3712_vm2, %v3204_v44  ;;  %v6782_v58 = vpop.f32.mrb[92].mxu0  ;;  %4021 = vrot.lane.b32.xlu0 %v3204_v44, %s7469_s24 }
 0x2da   :  { %v3219_v40 = vadd.f32 %v6782_v58, %v8747_v54  ;;  %v3213_v62 = vpop.f32.mrb[93].mxu0 }
 0x2db   :  { %v4808_v30 = vld [vmem:[#allocation2 + $0xc8] sm:$0xff]  ;;  %v3214_v16 = vadd.f32 %v8747_v54, %v3213_v62 }
 0x2dc   :  { %4809 = vst [vmem:[%s10059_s7 + $0xc8] sm:$0xff] %v4808_v30  ;;  %v4806_v11 = vld [vmem:[#allocation2 + $0xc0] sm:$0xff]  ;;  %3742 = vst.msk [vmem:[#allocation2 + $0xe8] sm:$0xff] %vm3712_vm2, %v3219_v40  ;;  %4023 = vrot.lane.b32.xlu1 %v3209_v51, %s7469_s24 }
 0x2dd   :  { %4807 = vst [vmem:[%s10059_s7 + $0xc0] sm:$0xff] %v4806_v11  ;;  %3741 = vst.msk [vmem:[#allocation2 + $0xe0] sm:$0xff] %vm3712_vm2, %v3214_v16  ;;  %v6785_v34 = vpop.f32.mrb[94].mxu0  ;;  %4025 = vrot.lane.b32.xlu0 %v3214_v16, %s7469_s24 }
 0x2de   :  { %v3229_v5 = vadd.f32 %v6785_v34, %v8747_v54  ;;  %v3223_v27 = vpop.f32.mrb[95].mxu0 }
 0x2df   :  { %v4812_v37 = vld [vmem:[#allocation2 + $0xd8] sm:$0xff]  ;;  %v3224_v49 = vadd.f32 %v8747_v54, %v3223_v27 }
 0x2e0   :  { %4813 = vst [vmem:[%s10059_s7 + $0xd8] sm:$0xff] %v4812_v37  ;;  %v4810_v23 = vld [vmem:[#allocation2 + $0xd0] sm:$0xff]  ;;  %3744 = vst.msk [vmem:[#allocation2 + $0xf8] sm:$0xff] %vm3712_vm2, %v3229_v5  ;;  %4027 = vrot.lane.b32.xlu1 %v3219_v40, %s7469_s24 }
 0x2e1   :  { %4811 = vst [vmem:[%s10059_s7 + $0xd0] sm:$0xff] %v4810_v23  ;;  %3743 = vst.msk [vmem:[#allocation2 + $0xf0] sm:$0xff] %vm3712_vm2, %v3224_v49  ;;  %v6788_v2 = vpop.f32.mrb[96].mxu0  ;;  %4029 = vrot.lane.b32.xlu0 %v3224_v49, %s7469_s24 }
 0x2e2   :  { %v3239_v46 = vadd.f32 %v6788_v2, %v8747_v54  ;;  %v3233_v41 = vpop.f32.mrb[97].mxu0 }
 0x2e3   :  { %v4816_v36 = vld [vmem:[#allocation2 + $0xe8] sm:$0xff]  ;;  %v3234_v29 = vadd.f32 %v8747_v54, %v3233_v41 }
 0x2e4   :  { %4817 = vst [vmem:[%s10059_s7 + $0xe8] sm:$0xff] %v4816_v36  ;;  %v4814_v14 = vld [vmem:[#allocation2 + $0xe0] sm:$0xff]  ;;  %3746 = vst.msk [vmem:[#allocation2 + $0x108] sm:$0xff] %vm3712_vm2, %v3239_v46  ;;  %4031 = vrot.lane.b32.xlu1 %v3229_v5, %s7469_s24 }
 0x2e5   :  { %4815 = vst [vmem:[%s10059_s7 + $0xe0] sm:$0xff] %v4814_v14  ;;  %3745 = vst.msk [vmem:[#allocation2 + $0x100] sm:$0xff] %vm3712_vm2, %v3234_v29  ;;  %v6791_v52 = vpop.f32.mrb[98].mxu0  ;;  %4033 = vrot.lane.b32.xlu0 %v3234_v29, %s7469_s24 }
 0x2e6   :  { %v3249_v55 = vadd.f32 %v6791_v52, %v8747_v54  ;;  %v3243_v10 = vpop.f32.mrb[99].mxu0 }
 0x2e7   :  { %v4820_v6 = vld [vmem:[#allocation2 + $0xf8] sm:$0xff]  ;;  %v3244_v45 = vadd.f32 %v8747_v54, %v3243_v10 }
 0x2e8   :  { %4821 = vst [vmem:[%s10059_s7 + $0xf8] sm:$0xff] %v4820_v6  ;;  %v4818_v60 = vld [vmem:[#allocation2 + $0xf0] sm:$0xff]  ;;  %3748 = vst.msk [vmem:[#allocation2 + $0x118] sm:$0xff] %vm3712_vm2, %v3249_v55  ;;  %4035 = vrot.lane.b32.xlu1 %v3239_v46, %s7469_s24 }
 0x2e9   :  { %4819 = vst [vmem:[%s10059_s7 + $0xf0] sm:$0xff] %v4818_v60  ;;  %3747 = vst.msk [vmem:[#allocation2 + $0x110] sm:$0xff] %vm3712_vm2, %v3244_v45  ;;  %v6794_v12 = vpop.f32.mrb[100].mxu0  ;;  %4037 = vrot.lane.b32.xlu0 %v3244_v45, %s7469_s24 }
 0x2ea   :  { %v3259_v63 = vadd.f32 %v6794_v12, %v8747_v54  ;;  %v3253_v22 = vpop.f32.mrb[101].mxu0 }
 0x2eb   :  { %v4824_v20 = vld [vmem:[#allocation2 + $0x108] sm:$0xff]  ;;  %v3254_v15 = vadd.f32 %v8747_v54, %v3253_v22 }
 0x2ec   :  { %4825 = vst [vmem:[%s10059_s7 + $0x108] sm:$0xff] %v4824_v20  ;;  %v4822_v19 = vld [vmem:[#allocation2 + $0x100] sm:$0xff]  ;;  %3750 = vst.msk [vmem:[#allocation2 + $0x128] sm:$0xff] %vm3712_vm2, %v3259_v63  ;;  %4039 = vrot.lane.b32.xlu1 %v3249_v55, %s7469_s24 }
 0x2ed   :  { %4823 = vst [vmem:[%s10059_s7 + $0x100] sm:$0xff] %v4822_v19  ;;  %3749 = vst.msk [vmem:[#allocation2 + $0x120] sm:$0xff] %vm3712_vm2, %v3254_v15  ;;  %v6797_v42 = vpop.f32.mrb[102].mxu0  ;;  %4041 = vrot.lane.b32.xlu0 %v3254_v15, %s7469_s24 }
 0x2ee   :  { %v3269_v38 = vadd.f32 %v6797_v42, %v8747_v54  ;;  %v3263_v31 = vpop.f32.mrb[103].mxu0 }
 0x2ef   :  { %v4828_v35 = vld [vmem:[#allocation2 + $0x118] sm:$0xff]  ;;  %v3264_v32 = vadd.f32 %v8747_v54, %v3263_v31 }
 0x2f0   :  { %4829 = vst [vmem:[%s10059_s7 + $0x118] sm:$0xff] %v4828_v35  ;;  %v4826_v56 = vld [vmem:[#allocation2 + $0x110] sm:$0xff]  ;;  %3752 = vst.msk [vmem:[#allocation2 + $0x138] sm:$0xff] %vm3712_vm2, %v3269_v38  ;;  %4043 = vrot.lane.b32.xlu1 %v3259_v63, %s7469_s24 }
 0x2f1   :  { %4827 = vst [vmem:[%s10059_s7 + $0x110] sm:$0xff] %v4826_v56  ;;  %3751 = vst.msk [vmem:[#allocation2 + $0x130] sm:$0xff] %vm3712_vm2, %v3264_v32  ;;  %v6800_v48 = vpop.f32.mrb[104].mxu0  ;;  %4045 = vrot.lane.b32.xlu0 %v3264_v32, %s7469_s24 }
 0x2f2   :  { %v3279_v1 = vadd.f32 %v6800_v48, %v8747_v54  ;;  %v3273_v28 = vpop.f32.mrb[105].mxu0 }
 0x2f3   :  { %v4832_v21 = vld [vmem:[#allocation2 + $0x128] sm:$0xff]  ;;  %v3274_v9 = vadd.f32 %v8747_v54, %v3273_v28 }
 0x2f4   :  { %4833 = vst [vmem:[%s10059_s7 + $0x128] sm:$0xff] %v4832_v21  ;;  %v4830_v3 = vld [vmem:[#allocation2 + $0x120] sm:$0xff]  ;;  %3754 = vst.msk [vmem:[#allocation2 + $0x148] sm:$0xff] %vm3712_vm2, %v3279_v1  ;;  %4047 = vrot.lane.b32.xlu1 %v3269_v38, %s7469_s24 }
 0x2f5   :  { %4831 = vst [vmem:[%s10059_s7 + $0x120] sm:$0xff] %v4830_v3  ;;  %3753 = vst.msk [vmem:[#allocation2 + $0x140] sm:$0xff] %vm3712_vm2, %v3274_v9  ;;  %v6803_v7 = vpop.f32.mrb[106].mxu0  ;;  %4049 = vrot.lane.b32.xlu0 %v3274_v9, %s7469_s24 }
 0x2f6   :  { %v3289_v53 = vadd.f32 %v6803_v7, %v8747_v54  ;;  %v3283_v43 = vpop.f32.mrb[107].mxu0 }
 0x2f7   :  { %v4836_v33 = vld [vmem:[#allocation2 + $0x138] sm:$0xff]  ;;  %v3284_v13 = vadd.f32 %v8747_v54, %v3283_v43 }
 0x2f8   :  { %4837 = vst [vmem:[%s10059_s7 + $0x138] sm:$0xff] %v4836_v33  ;;  %v4834_v24 = vld [vmem:[#allocation2 + $0x130] sm:$0xff]  ;;  %3756 = vst.msk [vmem:[#allocation2 + $0x158] sm:$0xff] %vm3712_vm2, %v3289_v53  ;;  %4051 = vrot.lane.b32.xlu1 %v3279_v1, %s7469_s24 }
 0x2f9   :  { %4835 = vst [vmem:[%s10059_s7 + $0x130] sm:$0xff] %v4834_v24  ;;  %3755 = vst.msk [vmem:[#allocation2 + $0x150] sm:$0xff] %vm3712_vm2, %v3284_v13  ;;  %v6806_v39 = vpop.f32.mrb[108].mxu0  ;;  %4053 = vrot.lane.b32.xlu0 %v3284_v13, %s7469_s24 }
 0x2fa   :  { %v3299_v50 = vadd.f32 %v6806_v39, %v8747_v54  ;;  %v3293_v59 = vpop.f32.mrb[109].mxu0 }
 0x2fb   :  { %v4840_v47 = vld [vmem:[#allocation2 + $0x148] sm:$0xff]  ;;  %v3294_v25 = vadd.f32 %v8747_v54, %v3293_v59 }
 0x2fc   :  { %4841 = vst [vmem:[%s10059_s7 + $0x148] sm:$0xff] %v4840_v47  ;;  %v4838_v57 = vld [vmem:[#allocation2 + $0x140] sm:$0xff]  ;;  %3758 = vst.msk [vmem:[#allocation2 + $0x168] sm:$0xff] %vm3712_vm2, %v3299_v50  ;;  %4055 = vrot.lane.b32.xlu1 %v3289_v53, %s7469_s24 }
 0x2fd   :  { %4839 = vst [vmem:[%s10059_s7 + $0x140] sm:$0xff] %v4838_v57  ;;  %3757 = vst.msk [vmem:[#allocation2 + $0x160] sm:$0xff] %vm3712_vm2, %v3294_v25  ;;  %v6809_v18 = vpop.f32.mrb[110].mxu0  ;;  %4057 = vrot.lane.b32.xlu0 %v3294_v25, %s7469_s24 }
 0x2fe   :  { %v3309_v26 = vadd.f32 %v6809_v18, %v8747_v54  ;;  %v3303_v8 = vpop.f32.mrb[111].mxu0 }
 0x2ff   :  { %v4844_v17 = vld [vmem:[#allocation2 + $0x158] sm:$0xff]  ;;  %v3304_v51 = vadd.f32 %v8747_v54, %v3303_v8 }
 0x300   :  { %4845 = vst [vmem:[%s10059_s7 + $0x158] sm:$0xff] %v4844_v17  ;;  %v4842_v61 = vld [vmem:[#allocation2 + $0x150] sm:$0xff]  ;;  %3760 = vst.msk [vmem:[#allocation2 + $0x178] sm:$0xff] %vm3712_vm2, %v3309_v26  ;;  %4059 = vrot.lane.b32.xlu1 %v3299_v50, %s7469_s24 }
 0x301   :  { %4843 = vst [vmem:[%s10059_s7 + $0x150] sm:$0xff] %v4842_v61  ;;  %3759 = vst.msk [vmem:[#allocation2 + $0x170] sm:$0xff] %vm3712_vm2, %v3304_v51  ;;  %v6812_v4 = vpop.f32.mrb[112].mxu0  ;;  %4061 = vrot.lane.b32.xlu0 %v3304_v51, %s7469_s24 }
 0x302   :  { %v3319_v44 = vadd.f32 %v6812_v4, %v8747_v54  ;;  %v3313_v0 = vpop.f32.mrb[113].mxu0 }
 0x303   :  { %v4848_v58 = vld [vmem:[#allocation2 + $0x168] sm:$0xff]  ;;  %v3314_v40 = vadd.f32 %v8747_v54, %v3313_v0 }
 0x304   :  { %4849 = vst [vmem:[%s10059_s7 + $0x168] sm:$0xff] %v4848_v58  ;;  %v4846_v62 = vld [vmem:[#allocation2 + $0x160] sm:$0xff]  ;;  %3762 = vst.msk [vmem:[#allocation2 + $0x188] sm:$0xff] %vm3712_vm2, %v3319_v44  ;;  %4063 = vrot.lane.b32.xlu1 %v3309_v26, %s7469_s24 }
 0x305   :  { %4847 = vst [vmem:[%s10059_s7 + $0x160] sm:$0xff] %v4846_v62  ;;  %3761 = vst.msk [vmem:[#allocation2 + $0x180] sm:$0xff] %vm3712_vm2, %v3314_v40  ;;  %v6815_v30 = vpop.f32.mrb[114].mxu0  ;;  %4065 = vrot.lane.b32.xlu0 %v3314_v40, %s7469_s24 }
 0x306   :  { %v3329_v16 = vadd.f32 %v6815_v30, %v8747_v54  ;;  %v3323_v11 = vpop.f32.mrb[115].mxu0 }
 0x307   :  { %v4852_v34 = vld [vmem:[#allocation2 + $0x178] sm:$0xff]  ;;  %v3324_v5 = vadd.f32 %v8747_v54, %v3323_v11 }
 0x308   :  { %4853 = vst [vmem:[%s10059_s7 + $0x178] sm:$0xff] %v4852_v34  ;;  %v4850_v27 = vld [vmem:[#allocation2 + $0x170] sm:$0xff]  ;;  %3764 = vst.msk [vmem:[#allocation2 + $0x198] sm:$0xff] %vm3712_vm2, %v3329_v16  ;;  %4067 = vrot.lane.b32.xlu1 %v3319_v44, %s7469_s24 }
 0x309   :  { %4851 = vst [vmem:[%s10059_s7 + $0x170] sm:$0xff] %v4850_v27  ;;  %3763 = vst.msk [vmem:[#allocation2 + $0x190] sm:$0xff] %vm3712_vm2, %v3324_v5  ;;  %v6818_v37 = vpop.f32.mrb[116].mxu0  ;;  %4069 = vrot.lane.b32.xlu0 %v3324_v5, %s7469_s24 }
 0x30a   :  { %v3339_v49 = vadd.f32 %v6818_v37, %v8747_v54  ;;  %v3333_v23 = vpop.f32.mrb[117].mxu0  ;;  %v9208_v37 = vld [vmem:[%s10058_s6] ss:$0 sm:$0xff] }
 0x30b   :  { %v4856_v2 = vld [vmem:[#allocation2 + $0x188] sm:$0xff]  ;;  %v3334_v46 = vadd.f32 %v8747_v54, %v3333_v23 }
 0x30c   :  { %4857 = vst [vmem:[%s10059_s7 + $0x188] sm:$0xff] %v4856_v2  ;;  %v4854_v41 = vld [vmem:[#allocation2 + $0x180] sm:$0xff]  ;;  %3766 = vst.msk [vmem:[#allocation2 + $0x1a8] sm:$0xff] %vm3712_vm2, %v3339_v49  ;;  %4071 = vrot.lane.b32.xlu1 %v3329_v16, %s7469_s24 }
 0x30d   :  { %4855 = vst [vmem:[%s10059_s7 + $0x180] sm:$0xff] %v4854_v41  ;;  %3765 = vst.msk [vmem:[#allocation2 + $0x1a0] sm:$0xff] %vm3712_vm2, %v3334_v46  ;;  %v6821_v36 = vpop.f32.mrb[118].mxu0  ;;  %4073 = vrot.lane.b32.xlu0 %v3334_v46, %s7469_s24 }
 0x30e   :  { %v3349_v29 = vadd.f32 %v6821_v36, %v8747_v54  ;;  %v3343_v14 = vpop.f32.mrb[119].mxu0 }
 0x30f   :  { %v4860_v52 = vld [vmem:[#allocation2 + $0x198] sm:$0xff]  ;;  %v3344_v55 = vadd.f32 %v8747_v54, %v3343_v14 }
 0x310   :  { %4861 = vst [vmem:[%s10059_s7 + $0x198] sm:$0xff] %v4860_v52  ;;  %v4858_v10 = vld [vmem:[#allocation2 + $0x190] sm:$0xff]  ;;  %3768 = vst.msk [vmem:[#allocation2 + $0x1b8] sm:$0xff] %vm3712_vm2, %v3349_v29  ;;  %4075 = vrot.lane.b32.xlu1 %v3339_v49, %s7469_s24 }
 0x311   :  { %4859 = vst [vmem:[%s10059_s7 + $0x190] sm:$0xff] %v4858_v10  ;;  %3767 = vst.msk [vmem:[#allocation2 + $0x1b0] sm:$0xff] %vm3712_vm2, %v3344_v55  ;;  %v6824_v6 = vpop.f32.mrb[120].mxu0  ;;  %4077 = vrot.lane.b32.xlu0 %v3344_v55, %s7469_s24 }
 0x312   :  { %v3359_v45 = vadd.f32 %v6824_v6, %v8747_v54  ;;  %v3353_v60 = vpop.f32.mrb[121].mxu0 }
 0x313   :  { %v4864_v12 = vld [vmem:[#allocation2 + $0x1a8] sm:$0xff]  ;;  %v3354_v63 = vadd.f32 %v8747_v54, %v3353_v60 }
 0x314   :  { %4865 = vst [vmem:[%s10059_s7 + $0x1a8] sm:$0xff] %v4864_v12  ;;  %v4862_v22 = vld [vmem:[#allocation2 + $0x1a0] sm:$0xff]  ;;  %3770 = vst.msk [vmem:[#allocation2 + $0x1c8] sm:$0xff] %vm3712_vm2, %v3359_v45  ;;  %4079 = vrot.lane.b32.xlu1 %v3349_v29, %s7469_s24 }
 0x315   :  { %4863 = vst [vmem:[%s10059_s7 + $0x1a0] sm:$0xff] %v4862_v22  ;;  %3769 = vst.msk [vmem:[#allocation2 + $0x1c0] sm:$0xff] %vm3712_vm2, %v3354_v63  ;;  %v6827_v20 = vpop.f32.mrb[122].mxu0  ;;  %4081 = vrot.lane.b32.xlu0 %v3354_v63, %s7469_s24 }
 0x316   :  { %v3369_v15 = vadd.f32 %v6827_v20, %v8747_v54  ;;  %v3972_v19 = vpop.permute.xlu0 %3971  ;;  %v3363_v42 = vpop.f32.mrb[123].mxu0 }
 0x317   :  { %v4868_v38 = vld [vmem:[#allocation2 + $0x1b8] sm:$0xff]  ;;  %4354 = vst.msk [vmem:[#allocation3 + $0x8] sm:$0xff] %vm3712_vm2, %v3972_v19  ;;  %v3364_v31 = vadd.f32 %v8747_v54, %v3363_v42 }
 0x318   :  { %4869 = vst [vmem:[%s10059_s7 + $0x1b8] sm:$0xff] %v4868_v38  ;;  %v4866_v35 = vld [vmem:[#allocation2 + $0x1b0] sm:$0xff]  ;;  %3772 = vst.msk [vmem:[#allocation2 + $0x1d8] sm:$0xff] %vm3712_vm2, %v3369_v15  ;;  %4083 = vrot.lane.b32.xlu1 %v3359_v45, %s7469_s24 }
 0x319   :  { %4867 = vst [vmem:[%s10059_s7 + $0x1b0] sm:$0xff] %v4866_v35  ;;  %3771 = vst.msk [vmem:[#allocation2 + $0x1d0] sm:$0xff] %vm3712_vm2, %v3364_v31  ;;  %v6830_v32 = vpop.f32.mrb[124].mxu0  ;;  %4085 = vrot.lane.b32.xlu0 %v3364_v31, %s7469_s24 }
 0x31a   :  { %v3379_v56 = vadd.f32 %v6830_v32, %v8747_v54  ;;  %v3976_v48 = vpop.permute.xlu1 %3975  ;;  %v3373_v1 = vpop.f32.mrb[125].mxu0 }
 0x31b   :  { %v4872_v28 = vld [vmem:[#allocation2 + $0x1c8] sm:$0xff]  ;;  %4356 = vst.msk [vmem:[#allocation3 + $0x18] sm:$0xff] %vm3712_vm2, %v3976_v48  ;;  %v3374_v21 = vadd.f32 %v8747_v54, %v3373_v1  ;;  %v3970_v9 = vpop.permute.xlu0 %3969 }
 0x31c   :  { %4873 = vst [vmem:[%s10059_s7 + $0x1c8] sm:$0xff] %v4872_v28  ;;  %v4870_v3 = vld [vmem:[#allocation2 + $0x1c0] sm:$0xff]  ;;  %3774 = vst.msk [vmem:[#allocation2 + $0x1e8] sm:$0xff] %vm3712_vm2, %v3379_v56  ;;  %4087 = vrot.lane.b32.xlu1 %v3369_v15, %s7469_s24 }
 0x31d   :  { %4353 = vst.msk [vmem:[#allocation3] sm:$0xff] %vm3712_vm2, %v3970_v9  ;;  %4871 = vst [vmem:[%s10059_s7 + $0x1c0] sm:$0xff] %v4870_v3  ;;  %v6833_v7 = vpop.f32.mrb[126].mxu0  ;;  %4089 = vrot.lane.b32.xlu0 %v3374_v21, %s7469_s24 }
 0x31e   :  { %3773 = vst.msk [vmem:[#allocation2 + $0x1e0] sm:$0xff] %vm3712_vm2, %v3374_v21  ;;  %v5290_v53 = vld [vmem:[#allocation3 + $0x8] sm:$0xff]  ;;  %v3389_v43 = vadd.f32 %v6833_v7, %v8747_v54  ;;  %v3383_v33 = vpop.f32.mrb[127].mxu0  ;;  %v3974_v13 = vpop.permute.xlu1 %3973 }
 0x31f   :  { %v4876_v24 = vld [vmem:[#allocation2 + $0x1d8] sm:$0xff]  ;;  %5291 = vst [vmem:[%s10060_s8 + $0x8] sm:$0xff] %v5290_v53  ;;  %v3384_v39 = vadd.f32 %v8747_v54, %v3383_v33  ;;  %4355 = vst.msk [vmem:[#allocation3 + $0x10] sm:$0xff] %vm3712_vm2, %v3974_v13  ;;  %v3978_v50 = vpop.permute.xlu0 %3977 }
 0x320   :  { %4877 = vst [vmem:[%s10059_s7 + $0x1d8] sm:$0xff] %v4876_v24  ;;  %v4874_v59 = vld [vmem:[#allocation2 + $0x1d0] sm:$0xff]  ;;  %3776 = vst.msk [vmem:[#allocation2 + $0x1f8] sm:$0xff] %vm3712_vm2, %v3389_v43  ;;  %4091 = vrot.lane.b32.xlu1 %v3379_v56, %s7469_s24 }
 0x321   :  { %4357 = vst.msk [vmem:[#allocation3 + $0x20] sm:$0xff] %vm3712_vm2, %v3978_v50  ;;  %4875 = vst [vmem:[%s10059_s7 + $0x1d0] sm:$0xff] %v4874_v59  ;;  %v6836_v47 = vpop.f32.mrb[128].mxu0  ;;  %4093 = vrot.lane.b32.xlu0 %v3384_v39, %s7469_s24 }
 0x322   :  { %3775 = vst.msk [vmem:[#allocation2 + $0x1f0] sm:$0xff] %vm3712_vm2, %v3384_v39  ;;  %v5294_v25 = vld [vmem:[#allocation3 + $0x18] sm:$0xff]  ;;  %v3399_v57 = vadd.f32 %v6836_v47, %v8747_v54  ;;  %v3393_v18 = vpop.f32.mrb[129].mxu0  ;;  %v3980_v26 = vpop.permute.xlu1 %3979 }
 0x323   :  { %v4880_v8 = vld [vmem:[#allocation2 + $0x1e8] sm:$0xff]  ;;  %5295 = vst [vmem:[%s10060_s8 + $0x18] sm:$0xff] %v5294_v25  ;;  %v3394_v51 = vadd.f32 %v8747_v54, %v3393_v18  ;;  %4358 = vst.msk [vmem:[#allocation3 + $0x28] sm:$0xff] %vm3712_vm2, %v3980_v26  ;;  %v3982_v61 = vpop.permute.xlu0 %3981 }
 0x324   :  { %v5288_v17 = vld [vmem:[#allocation3] sm:$0xff]  ;;  %4881 = vst [vmem:[%s10059_s7 + $0x1e8] sm:$0xff] %v4880_v8  ;;  %3778 = vst.msk [vmem:[#allocation2 + $0x208] sm:$0xff] %vm3712_vm2, %v3399_v57  ;;  %4095 = vrot.lane.b32.xlu1 %v3389_v43, %s7469_s24 }
 0x325   :  { %v4878_v4 = vld [vmem:[#allocation2 + $0x1e0] sm:$0xff]  ;;  %5289 = vst [vmem:[%s10060_s8] sm:$0xff] %v5288_v17  ;;  %4359 = vst.msk [vmem:[#allocation3 + $0x30] sm:$0xff] %vm3712_vm2, %v3982_v61  ;;  %v6839_v44 = vpop.f32.mrb[130].mxu0  ;;  %4097 = vrot.lane.b32.xlu0 %v3394_v51, %s7469_s24 }
 0x326   :  { %4879 = vst [vmem:[%s10059_s7 + $0x1e0] sm:$0xff] %v4878_v4  ;;  %3777 = vst.msk [vmem:[#allocation2 + $0x200] sm:$0xff] %vm3712_vm2, %v3394_v51  ;;  %v5292_v0 = vld [vmem:[#allocation3 + $0x10] sm:$0xff]  ;;  %v3409_v58 = vadd.f32 %v6839_v44, %v8747_v54  ;;  %v3403_v40 = vpop.f32.mrb[131].mxu0  ;;  %v3984_v62 = vpop.permute.xlu1 %3983 }
 0x327   :  { %v4884_v30 = vld [vmem:[#allocation2 + $0x1f8] sm:$0xff]  ;;  %5293 = vst [vmem:[%s10060_s8 + $0x10] sm:$0xff] %v5292_v0  ;;  %v3404_v11 = vadd.f32 %v8747_v54, %v3403_v40  ;;  %4360 = vst.msk [vmem:[#allocation3 + $0x38] sm:$0xff] %vm3712_vm2, %v3984_v62  ;;  %v3986_v34 = vpop.permute.xlu0 %3985 }
 0x328   :  { %v5296_v16 = vld [vmem:[#allocation3 + $0x20] sm:$0xff]  ;;  %4885 = vst [vmem:[%s10059_s7 + $0x1f8] sm:$0xff] %v4884_v30  ;;  %3780 = vst.msk [vmem:[#allocation2 + $0x218] sm:$0xff] %vm3712_vm2, %v3409_v58  ;;  %4099 = vrot.lane.b32.xlu1 %v3399_v57, %s7469_s24 }
 0x329   :  { %v4882_v5 = vld [vmem:[#allocation2 + $0x1f0] sm:$0xff]  ;;  %5297 = vst [vmem:[%s10060_s8 + $0x20] sm:$0xff] %v5296_v16  ;;  %4361 = vst.msk [vmem:[#allocation3 + $0x40] sm:$0xff] %vm3712_vm2, %v3986_v34  ;;  %v6842_v54 = vpop.f32.mrb[132].mxu0  ;;  %4101 = vrot.lane.b32.xlu0 %v3404_v11, %s7469_s24 }
 0x32a   :  { %4883 = vst [vmem:[%s10059_s7 + $0x1f0] sm:$0xff] %v4882_v5  ;;  %3779 = vst.msk [vmem:[#allocation2 + $0x210] sm:$0xff] %vm3712_vm2, %v3404_v11  ;;  %v5298_v27 = vld [vmem:[#allocation3 + $0x28] sm:$0xff]  ;;  %v3419_v49 = vadd.f32 %v9208_v37, %v6842_v54  ;;  %v3413_v23 = vpop.f32.mrb[133].mxu0  ;;  %v3988_v2 = vpop.permute.xlu1 %3987 }
 0x32b   :  { %v4888_v46 = vld [vmem:[#allocation2 + $0x208] sm:$0xff]  ;;  %5299 = vst [vmem:[%s10060_s8 + $0x28] sm:$0xff] %v5298_v27  ;;  %v3414_v36 = vadd.f32 %v9208_v37, %v3413_v23  ;;  %4362 = vst.msk [vmem:[#allocation3 + $0x48] sm:$0xff] %vm3712_vm2, %v3988_v2  ;;  %v3990_v29 = vpop.permute.xlu0 %3989 }
 0x32c   :  { %v5300_v41 = vld [vmem:[#allocation3 + $0x30] sm:$0xff]  ;;  %4889 = vst [vmem:[%s10059_s7 + $0x208] sm:$0xff] %v4888_v46  ;;  %3782 = vst.msk [vmem:[#allocation2 + $0x228] sm:$0xff] %vm3712_vm2, %v3419_v49  ;;  %4103 = vrot.lane.b32.xlu1 %v3409_v58, %s7469_s24 }
 0x32d   :  { %v4886_v14 = vld [vmem:[#allocation2 + $0x200] sm:$0xff]  ;;  %5301 = vst [vmem:[%s10060_s8 + $0x30] sm:$0xff] %v5300_v41  ;;  %4363 = vst.msk [vmem:[#allocation3 + $0x50] sm:$0xff] %vm3712_vm2, %v3990_v29  ;;  %v6845_v52 = vpop.f32.mrb[134].mxu0  ;;  %4105 = vrot.lane.b32.xlu0 %v3414_v36, %s7469_s24 }
 0x32e   :  { %4887 = vst [vmem:[%s10059_s7 + $0x200] sm:$0xff] %v4886_v14  ;;  %3781 = vst.msk [vmem:[#allocation2 + $0x220] sm:$0xff] %vm3712_vm2, %v3414_v36  ;;  %v5302_v55 = vld [vmem:[#allocation3 + $0x38] sm:$0xff]  ;;  %v3429_v10 = vadd.f32 %v9208_v37, %v6845_v52  ;;  %v3423_v6 = vpop.f32.mrb[135].mxu0  ;;  %v3992_v45 = vpop.permute.xlu1 %3991 }
 0x32f   :  { %v4892_v60 = vld [vmem:[#allocation2 + $0x218] sm:$0xff]  ;;  %5303 = vst [vmem:[%s10060_s8 + $0x38] sm:$0xff] %v5302_v55  ;;  %v3424_v63 = vadd.f32 %v9208_v37, %v3423_v6  ;;  %4364 = vst.msk [vmem:[#allocation3 + $0x58] sm:$0xff] %vm3712_vm2, %v3992_v45  ;;  %v3994_v22 = vpop.permute.xlu0 %3993 }
 0x330   :  { %v5304_v12 = vld [vmem:[#allocation3 + $0x40] sm:$0xff]  ;;  %4893 = vst [vmem:[%s10059_s7 + $0x218] sm:$0xff] %v4892_v60  ;;  %3784 = vst.msk [vmem:[#allocation2 + $0x238] sm:$0xff] %vm3712_vm2, %v3429_v10  ;;  %4107 = vrot.lane.b32.xlu1 %v3419_v49, %s7469_s24 }
 0x331   :  { %v4890_v20 = vld [vmem:[#allocation2 + $0x210] sm:$0xff]  ;;  %5305 = vst [vmem:[%s10060_s8 + $0x40] sm:$0xff] %v5304_v12  ;;  %4365 = vst.msk [vmem:[#allocation3 + $0x60] sm:$0xff] %vm3712_vm2, %v3994_v22  ;;  %v6848_v15 = vpop.f32.mrb[136].mxu0  ;;  %4109 = vrot.lane.b32.xlu0 %v3424_v63, %s7469_s24 }
 0x332   :  { %4891 = vst [vmem:[%s10059_s7 + $0x210] sm:$0xff] %v4890_v20  ;;  %3783 = vst.msk [vmem:[#allocation2 + $0x230] sm:$0xff] %vm3712_vm2, %v3424_v63  ;;  %v5306_v19 = vld [vmem:[#allocation3 + $0x48] sm:$0xff]  ;;  %v3439_v42 = vadd.f32 %v9208_v37, %v6848_v15  ;;  %v3433_v38 = vpop.f32.mrb[137].mxu0  ;;  %v3996_v31 = vpop.permute.xlu1 %3995 }
 0x333   :  { %v4896_v35 = vld [vmem:[#allocation2 + $0x228] sm:$0xff]  ;;  %5307 = vst [vmem:[%s10060_s8 + $0x48] sm:$0xff] %v5306_v19  ;;  %v3434_v56 = vadd.f32 %v9208_v37, %v3433_v38  ;;  %4366 = vst.msk [vmem:[#allocation3 + $0x68] sm:$0xff] %vm3712_vm2, %v3996_v31  ;;  %v3998_v48 = vpop.permute.xlu0 %3997 }
 0x334   :  { %v5308_v32 = vld [vmem:[#allocation3 + $0x50] sm:$0xff]  ;;  %4897 = vst [vmem:[%s10059_s7 + $0x228] sm:$0xff] %v4896_v35  ;;  %3786 = vst.msk [vmem:[#allocation2 + $0x248] sm:$0xff] %vm3712_vm2, %v3439_v42  ;;  %4111 = vrot.lane.b32.xlu1 %v3429_v10, %s7469_s24 }
 0x335   :  { %v4894_v1 = vld [vmem:[#allocation2 + $0x220] sm:$0xff]  ;;  %5309 = vst [vmem:[%s10060_s8 + $0x50] sm:$0xff] %v5308_v32  ;;  %4367 = vst.msk [vmem:[#allocation3 + $0x70] sm:$0xff] %vm3712_vm2, %v3998_v48  ;;  %v6851_v28 = vpop.f32.mrb[138].mxu0  ;;  %4113 = vrot.lane.b32.xlu0 %v3434_v56, %s7469_s24 }
 0x336   :  { %4895 = vst [vmem:[%s10059_s7 + $0x220] sm:$0xff] %v4894_v1  ;;  %3785 = vst.msk [vmem:[#allocation2 + $0x240] sm:$0xff] %vm3712_vm2, %v3434_v56  ;;  %v5310_v21 = vld [vmem:[#allocation3 + $0x58] sm:$0xff]  ;;  %v3449_v9 = vadd.f32 %v9208_v37, %v6851_v28  ;;  %v3443_v3 = vpop.f32.mrb[139].mxu0  ;;  %v4000_v7 = vpop.permute.xlu1 %3999 }
 0x337   :  { %v4900_v53 = vld [vmem:[#allocation2 + $0x238] sm:$0xff]  ;;  %5311 = vst [vmem:[%s10060_s8 + $0x58] sm:$0xff] %v5310_v21  ;;  %v3444_v33 = vadd.f32 %v9208_v37, %v3443_v3  ;;  %4368 = vst.msk [vmem:[#allocation3 + $0x78] sm:$0xff] %vm3712_vm2, %v4000_v7  ;;  %v4002_v13 = vpop.permute.xlu0 %4001 }
 0x338   :  { %v5312_v43 = vld [vmem:[#allocation3 + $0x60] sm:$0xff]  ;;  %4901 = vst [vmem:[%s10059_s7 + $0x238] sm:$0xff] %v4900_v53  ;;  %3788 = vst.msk [vmem:[#allocation2 + $0x258] sm:$0xff] %vm3712_vm2, %v3449_v9  ;;  %4115 = vrot.lane.b32.xlu1 %v3439_v42, %s7469_s24 }
 0x339   :  { %v4898_v24 = vld [vmem:[#allocation2 + $0x230] sm:$0xff]  ;;  %5313 = vst [vmem:[%s10060_s8 + $0x60] sm:$0xff] %v5312_v43  ;;  %4369 = vst.msk [vmem:[#allocation3 + $0x80] sm:$0xff] %vm3712_vm2, %v4002_v13  ;;  %v6854_v39 = vpop.f32.mrb[140].mxu0  ;;  %4117 = vrot.lane.b32.xlu0 %v3444_v33, %s7469_s24 }
 0x33a   :  { %4899 = vst [vmem:[%s10059_s7 + $0x230] sm:$0xff] %v4898_v24  ;;  %3787 = vst.msk [vmem:[#allocation2 + $0x250] sm:$0xff] %vm3712_vm2, %v3444_v33  ;;  %v5314_v50 = vld [vmem:[#allocation3 + $0x68] sm:$0xff]  ;;  %v3459_v59 = vadd.f32 %v9208_v37, %v6854_v39  ;;  %v3453_v47 = vpop.f32.mrb[141].mxu0  ;;  %v4004_v25 = vpop.permute.xlu1 %4003 }
 0x33b   :  { %v4904_v57 = vld [vmem:[#allocation2 + $0x248] sm:$0xff]  ;;  %5315 = vst [vmem:[%s10060_s8 + $0x68] sm:$0xff] %v5314_v50  ;;  %v3454_v26 = vadd.f32 %v9208_v37, %v3453_v47  ;;  %4370 = vst.msk [vmem:[#allocation3 + $0x88] sm:$0xff] %vm3712_vm2, %v4004_v25  ;;  %v4006_v8 = vpop.permute.xlu0 %4005 }
 0x33c   :  { %v5316_v18 = vld [vmem:[#allocation3 + $0x70] sm:$0xff]  ;;  %4905 = vst [vmem:[%s10059_s7 + $0x248] sm:$0xff] %v4904_v57  ;;  %3790 = vst.msk [vmem:[#allocation2 + $0x268] sm:$0xff] %vm3712_vm2, %v3459_v59  ;;  %4119 = vrot.lane.b32.xlu1 %v3449_v9, %s7469_s24 }
 0x33d   :  { %v4902_v17 = vld [vmem:[#allocation2 + $0x240] sm:$0xff]  ;;  %5317 = vst [vmem:[%s10060_s8 + $0x70] sm:$0xff] %v5316_v18  ;;  %4371 = vst.msk [vmem:[#allocation3 + $0x90] sm:$0xff] %vm3712_vm2, %v4006_v8  ;;  %v6857_v51 = vpop.f32.mrb[142].mxu0  ;;  %4121 = vrot.lane.b32.xlu0 %v3454_v26, %s7469_s24 }
 0x33e   :  { %4903 = vst [vmem:[%s10059_s7 + $0x240] sm:$0xff] %v4902_v17  ;;  %3789 = vst.msk [vmem:[#allocation2 + $0x260] sm:$0xff] %vm3712_vm2, %v3454_v26  ;;  %v5318_v61 = vld [vmem:[#allocation3 + $0x78] sm:$0xff]  ;;  %v3469_v4 = vadd.f32 %v9208_v37, %v6857_v51  ;;  %v3463_v44 = vpop.f32.mrb[143].mxu0  ;;  %v4008_v0 = vpop.permute.xlu1 %4007 }
 0x33f   :  { %v4908_v58 = vld [vmem:[#allocation2 + $0x258] sm:$0xff]  ;;  %5319 = vst [vmem:[%s10060_s8 + $0x78] sm:$0xff] %v5318_v61  ;;  %v3464_v62 = vadd.f32 %v9208_v37, %v3463_v44  ;;  %4372 = vst.msk [vmem:[#allocation3 + $0x98] sm:$0xff] %vm3712_vm2, %v4008_v0  ;;  %v4010_v30 = vpop.permute.xlu0 %4009 }
 0x340   :  { %v5320_v40 = vld [vmem:[#allocation3 + $0x80] sm:$0xff]  ;;  %4909 = vst [vmem:[%s10059_s7 + $0x258] sm:$0xff] %v4908_v58  ;;  %3792 = vst.msk [vmem:[#allocation2 + $0x278] sm:$0xff] %vm3712_vm2, %v3469_v4  ;;  %4123 = vrot.lane.b32.xlu1 %v3459_v59, %s7469_s24 }
 0x341   :  { %v4906_v16 = vld [vmem:[#allocation2 + $0x250] sm:$0xff]  ;;  %5321 = vst [vmem:[%s10060_s8 + $0x80] sm:$0xff] %v5320_v40  ;;  %4373 = vst.msk [vmem:[#allocation3 + $0xa0] sm:$0xff] %vm3712_vm2, %v4010_v30  ;;  %v6860_v11 = vpop.f32.mrb[144].mxu0  ;;  %4125 = vrot.lane.b32.xlu0 %v3464_v62, %s7469_s24 }
 0x342   :  { %4907 = vst [vmem:[%s10059_s7 + $0x250] sm:$0xff] %v4906_v16  ;;  %3791 = vst.msk [vmem:[#allocation2 + $0x270] sm:$0xff] %vm3712_vm2, %v3464_v62  ;;  %v5322_v34 = vld [vmem:[#allocation3 + $0x88] sm:$0xff]  ;;  %v3479_v5 = vadd.f32 %v9208_v37, %v6860_v11  ;;  %v3473_v54 = vpop.f32.mrb[145].mxu0  ;;  %v4012_v27 = vpop.permute.xlu1 %4011 }
 0x343   :  { %v4912_v49 = vld [vmem:[#allocation2 + $0x268] sm:$0xff]  ;;  %5323 = vst [vmem:[%s10060_s8 + $0x88] sm:$0xff] %v5322_v34  ;;  %v3474_v2 = vadd.f32 %v9208_v37, %v3473_v54  ;;  %4374 = vst.msk [vmem:[#allocation3 + $0xa8] sm:$0xff] %vm3712_vm2, %v4012_v27  ;;  %v4014_v46 = vpop.permute.xlu0 %4013 }
 0x344   :  { %v5324_v23 = vld [vmem:[#allocation3 + $0x90] sm:$0xff]  ;;  %4913 = vst [vmem:[%s10059_s7 + $0x268] sm:$0xff] %v4912_v49  ;;  %3794 = vst.msk [vmem:[#allocation2 + $0x288] sm:$0xff] %vm3712_vm2, %v3479_v5  ;;  %4127 = vrot.lane.b32.xlu1 %v3469_v4, %s7469_s24 }
 0x345   :  { %v4910_v41 = vld [vmem:[#allocation2 + $0x260] sm:$0xff]  ;;  %5325 = vst [vmem:[%s10060_s8 + $0x90] sm:$0xff] %v5324_v23  ;;  %4375 = vst.msk [vmem:[#allocation3 + $0xb0] sm:$0xff] %vm3712_vm2, %v4014_v46  ;;  %v6863_v36 = vpop.f32.mrb[146].mxu0  ;;  %4129 = vrot.lane.b32.xlu0 %v3474_v2, %s7469_s24 }
 0x346   :  { %4911 = vst [vmem:[%s10059_s7 + $0x260] sm:$0xff] %v4910_v41  ;;  %3793 = vst.msk [vmem:[#allocation2 + $0x280] sm:$0xff] %vm3712_vm2, %v3474_v2  ;;  %v5326_v29 = vld [vmem:[#allocation3 + $0x98] sm:$0xff]  ;;  %v3489_v14 = vadd.f32 %v9208_v37, %v6863_v36  ;;  %v3483_v52 = vpop.f32.mrb[147].mxu0  ;;  %v4016_v55 = vpop.permute.xlu1 %4015 }
 0x347   :  { %v4916_v10 = vld [vmem:[#allocation2 + $0x278] sm:$0xff]  ;;  %5327 = vst [vmem:[%s10060_s8 + $0x98] sm:$0xff] %v5326_v29  ;;  %v3484_v45 = vadd.f32 %v9208_v37, %v3483_v52  ;;  %4376 = vst.msk [vmem:[#allocation3 + $0xb8] sm:$0xff] %vm3712_vm2, %v4016_v55  ;;  %v4018_v60 = vpop.permute.xlu0 %4017 }
 0x348   :  { %v5328_v6 = vld [vmem:[#allocation3 + $0xa0] sm:$0xff]  ;;  %4917 = vst [vmem:[%s10059_s7 + $0x278] sm:$0xff] %v4916_v10  ;;  %3796 = vst.msk [vmem:[#allocation2 + $0x298] sm:$0xff] %vm3712_vm2, %v3489_v14  ;;  %4131 = vrot.lane.b32.xlu1 %v3479_v5, %s7469_s24 }
 0x349   :  { %v4914_v12 = vld [vmem:[#allocation2 + $0x270] sm:$0xff]  ;;  %5329 = vst [vmem:[%s10060_s8 + $0xa0] sm:$0xff] %v5328_v6  ;;  %4377 = vst.msk [vmem:[#allocation3 + $0xc0] sm:$0xff] %vm3712_vm2, %v4018_v60  ;;  %v6866_v63 = vpop.f32.mrb[148].mxu0  ;;  %4133 = vrot.lane.b32.xlu0 %v3484_v45, %s7469_s24 }
 0x34a   :  { %4915 = vst [vmem:[%s10059_s7 + $0x270] sm:$0xff] %v4914_v12  ;;  %3795 = vst.msk [vmem:[#allocation2 + $0x290] sm:$0xff] %vm3712_vm2, %v3484_v45  ;;  %v5330_v22 = vld [vmem:[#allocation3 + $0xa8] sm:$0xff]  ;;  %v3499_v20 = vadd.f32 %v9208_v37, %v6866_v63  ;;  %v3493_v15 = vpop.f32.mrb[149].mxu0  ;;  %v4020_v19 = vpop.permute.xlu1 %4019 }
 0x34b   :  { %v4920_v42 = vld [vmem:[#allocation2 + $0x288] sm:$0xff]  ;;  %5331 = vst [vmem:[%s10060_s8 + $0xa8] sm:$0xff] %v5330_v22  ;;  %v3494_v31 = vadd.f32 %v9208_v37, %v3493_v15  ;;  %4378 = vst.msk [vmem:[#allocation3 + $0xc8] sm:$0xff] %vm3712_vm2, %v4020_v19  ;;  %v4022_v35 = vpop.permute.xlu0 %4021 }
 0x34c   :  { %v5332_v38 = vld [vmem:[#allocation3 + $0xb0] sm:$0xff]  ;;  %4921 = vst [vmem:[%s10059_s7 + $0x288] sm:$0xff] %v4920_v42  ;;  %3798 = vst.msk [vmem:[#allocation2 + $0x2a8] sm:$0xff] %vm3712_vm2, %v3499_v20  ;;  %4135 = vrot.lane.b32.xlu1 %v3489_v14, %s7469_s24 }
 0x34d   :  { %v4918_v32 = vld [vmem:[#allocation2 + $0x280] sm:$0xff]  ;;  %5333 = vst [vmem:[%s10060_s8 + $0xb0] sm:$0xff] %v5332_v38  ;;  %4379 = vst.msk [vmem:[#allocation3 + $0xd0] sm:$0xff] %vm3712_vm2, %v4022_v35  ;;  %v6869_v56 = vpop.f32.mrb[150].mxu0  ;;  %4137 = vrot.lane.b32.xlu0 %v3494_v31, %s7469_s24 }
 0x34e   :  { %4919 = vst [vmem:[%s10059_s7 + $0x280] sm:$0xff] %v4918_v32  ;;  %3797 = vst.msk [vmem:[#allocation2 + $0x2a0] sm:$0xff] %vm3712_vm2, %v3494_v31  ;;  %v5334_v48 = vld [vmem:[#allocation3 + $0xb8] sm:$0xff]  ;;  %v3509_v1 = vadd.f32 %v9208_v37, %v6869_v56  ;;  %v3503_v28 = vpop.f32.mrb[151].mxu0  ;;  %v4024_v21 = vpop.permute.xlu1 %4023 }
 0x34f   :  { %v4924_v9 = vld [vmem:[#allocation2 + $0x298] sm:$0xff]  ;;  %5335 = vst [vmem:[%s10060_s8 + $0xb8] sm:$0xff] %v5334_v48  ;;  %v3504_v7 = vadd.f32 %v9208_v37, %v3503_v28  ;;  %4380 = vst.msk [vmem:[#allocation3 + $0xd8] sm:$0xff] %vm3712_vm2, %v4024_v21  ;;  %v4026_v53 = vpop.permute.xlu0 %4025 }
 0x350   :  { %v5336_v3 = vld [vmem:[#allocation3 + $0xc0] sm:$0xff]  ;;  %4925 = vst [vmem:[%s10059_s7 + $0x298] sm:$0xff] %v4924_v9  ;;  %3800 = vst.msk [vmem:[#allocation2 + $0x2b8] sm:$0xff] %vm3712_vm2, %v3509_v1  ;;  %4139 = vrot.lane.b32.xlu1 %v3499_v20, %s7469_s24 }
 0x351   :  { %v4922_v43 = vld [vmem:[#allocation2 + $0x290] sm:$0xff]  ;;  %5337 = vst [vmem:[%s10060_s8 + $0xc0] sm:$0xff] %v5336_v3  ;;  %4381 = vst.msk [vmem:[#allocation3 + $0xe0] sm:$0xff] %vm3712_vm2, %v4026_v53  ;;  %v6872_v33 = vpop.f32.mrb[152].mxu0  ;;  %4141 = vrot.lane.b32.xlu0 %v3504_v7, %s7469_s24 }
 0x352   :  { %4923 = vst [vmem:[%s10059_s7 + $0x290] sm:$0xff] %v4922_v43  ;;  %3799 = vst.msk [vmem:[#allocation2 + $0x2b0] sm:$0xff] %vm3712_vm2, %v3504_v7  ;;  %v5338_v13 = vld [vmem:[#allocation3 + $0xc8] sm:$0xff]  ;;  %v3519_v24 = vadd.f32 %v9208_v37, %v6872_v33  ;;  %v3513_v39 = vpop.f32.mrb[153].mxu0  ;;  %v4028_v50 = vpop.permute.xlu1 %4027 }
 0x353   :  { %v4928_v59 = vld [vmem:[#allocation2 + $0x2a8] sm:$0xff]  ;;  %5339 = vst [vmem:[%s10060_s8 + $0xc8] sm:$0xff] %v5338_v13  ;;  %v3514_v25 = vadd.f32 %v9208_v37, %v3513_v39  ;;  %4382 = vst.msk [vmem:[#allocation3 + $0xe8] sm:$0xff] %vm3712_vm2, %v4028_v50  ;;  %v4030_v57 = vpop.permute.xlu0 %4029 }
 0x354   :  { %v5340_v47 = vld [vmem:[#allocation3 + $0xd0] sm:$0xff]  ;;  %4929 = vst [vmem:[%s10059_s7 + $0x2a8] sm:$0xff] %v4928_v59  ;;  %3802 = vst.msk [vmem:[#allocation2 + $0x2c8] sm:$0xff] %vm3712_vm2, %v3519_v24  ;;  %4143 = vrot.lane.b32.xlu1 %v3509_v1, %s7469_s24 }
 0x355   :  { %v4926_v18 = vld [vmem:[#allocation2 + $0x2a0] sm:$0xff]  ;;  %5341 = vst [vmem:[%s10060_s8 + $0xd0] sm:$0xff] %v5340_v47  ;;  %4383 = vst.msk [vmem:[#allocation3 + $0xf0] sm:$0xff] %vm3712_vm2, %v4030_v57  ;;  %v6875_v26 = vpop.f32.mrb[154].mxu0  ;;  %4145 = vrot.lane.b32.xlu0 %v3514_v25, %s7469_s24 }
 0x356   :  { %4927 = vst [vmem:[%s10059_s7 + $0x2a0] sm:$0xff] %v4926_v18  ;;  %3801 = vst.msk [vmem:[#allocation2 + $0x2c0] sm:$0xff] %vm3712_vm2, %v3514_v25  ;;  %v5342_v8 = vld [vmem:[#allocation3 + $0xd8] sm:$0xff]  ;;  %v3529_v17 = vadd.f32 %v9208_v37, %v6875_v26  ;;  %v3523_v51 = vpop.f32.mrb[155].mxu0  ;;  %v4032_v61 = vpop.permute.xlu1 %4031 }
 0x357   :  { %v4932_v4 = vld [vmem:[#allocation2 + $0x2b8] sm:$0xff]  ;;  %5343 = vst [vmem:[%s10060_s8 + $0xd8] sm:$0xff] %v5342_v8  ;;  %v3524_v0 = vadd.f32 %v9208_v37, %v3523_v51  ;;  %4384 = vst.msk [vmem:[#allocation3 + $0xf8] sm:$0xff] %vm3712_vm2, %v4032_v61  ;;  %v4034_v58 = vpop.permute.xlu0 %4033 }
 0x358   :  { %v5344_v44 = vld [vmem:[#allocation3 + $0xe0] sm:$0xff]  ;;  %4933 = vst [vmem:[%s10059_s7 + $0x2b8] sm:$0xff] %v4932_v4  ;;  %3804 = vst.msk [vmem:[#allocation2 + $0x2d8] sm:$0xff] %vm3712_vm2, %v3529_v17  ;;  %4147 = vrot.lane.b32.xlu1 %v3519_v24, %s7469_s24 }
 0x359   :  { %v4930_v40 = vld [vmem:[#allocation2 + $0x2b0] sm:$0xff]  ;;  %5345 = vst [vmem:[%s10060_s8 + $0xe0] sm:$0xff] %v5344_v44  ;;  %4385 = vst.msk [vmem:[#allocation3 + $0x100] sm:$0xff] %vm3712_vm2, %v4034_v58  ;;  %v6878_v62 = vpop.f32.mrb[156].mxu0  ;;  %4149 = vrot.lane.b32.xlu0 %v3524_v0, %s7469_s24 }
 0x35a   :  { %4931 = vst [vmem:[%s10059_s7 + $0x2b0] sm:$0xff] %v4930_v40  ;;  %3803 = vst.msk [vmem:[#allocation2 + $0x2d0] sm:$0xff] %vm3712_vm2, %v3524_v0  ;;  %v5346_v30 = vld [vmem:[#allocation3 + $0xe8] sm:$0xff]  ;;  %v3539_v16 = vadd.f32 %v9208_v37, %v6878_v62  ;;  %v3533_v11 = vpop.f32.mrb[157].mxu0  ;;  %v4036_v34 = vpop.permute.xlu1 %4035 }
 0x35b   :  { %v4936_v5 = vld [vmem:[#allocation2 + $0x2c8] sm:$0xff]  ;;  %5347 = vst [vmem:[%s10060_s8 + $0xe8] sm:$0xff] %v5346_v30  ;;  %v3534_v27 = vadd.f32 %v9208_v37, %v3533_v11  ;;  %4386 = vst.msk [vmem:[#allocation3 + $0x108] sm:$0xff] %vm3712_vm2, %v4036_v34  ;;  %v4038_v49 = vpop.permute.xlu0 %4037 }
 0x35c   :  { %v5348_v54 = vld [vmem:[#allocation3 + $0xf0] sm:$0xff]  ;;  %4937 = vst [vmem:[%s10059_s7 + $0x2c8] sm:$0xff] %v4936_v5  ;;  %3806 = vst.msk [vmem:[#allocation2 + $0x2e8] sm:$0xff] %vm3712_vm2, %v3539_v16  ;;  %4151 = vrot.lane.b32.xlu1 %v3529_v17, %s7469_s24 }
 0x35d   :  { %v4934_v23 = vld [vmem:[#allocation2 + $0x2c0] sm:$0xff]  ;;  %5349 = vst [vmem:[%s10060_s8 + $0xf0] sm:$0xff] %v5348_v54  ;;  %4387 = vst.msk [vmem:[#allocation3 + $0x110] sm:$0xff] %vm3712_vm2, %v4038_v49  ;;  %v6881_v2 = vpop.f32.mrb[158].mxu0  ;;  %4153 = vrot.lane.b32.xlu0 %v3534_v27, %s7469_s24 }
 0x35e   :  { %4935 = vst [vmem:[%s10059_s7 + $0x2c0] sm:$0xff] %v4934_v23  ;;  %3805 = vst.msk [vmem:[#allocation2 + $0x2e0] sm:$0xff] %vm3712_vm2, %v3534_v27  ;;  %v5350_v46 = vld [vmem:[#allocation3 + $0xf8] sm:$0xff]  ;;  %v3549_v41 = vadd.f32 %v9208_v37, %v6881_v2  ;;  %v3543_v36 = vpop.f32.mrb[159].mxu0  ;;  %v4040_v29 = vpop.permute.xlu1 %4039 }
 0x35f   :  { %v4940_v14 = vld [vmem:[#allocation2 + $0x2d8] sm:$0xff]  ;;  %5351 = vst [vmem:[%s10060_s8 + $0xf8] sm:$0xff] %v5350_v46  ;;  %v3544_v55 = vadd.f32 %v9208_v37, %v3543_v36  ;;  %4388 = vst.msk [vmem:[#allocation3 + $0x118] sm:$0xff] %vm3712_vm2, %v4040_v29  ;;  %v4042_v10 = vpop.permute.xlu0 %4041 }
 0x360   :  { %v5352_v52 = vld [vmem:[#allocation3 + $0x100] sm:$0xff]  ;;  %4941 = vst [vmem:[%s10059_s7 + $0x2d8] sm:$0xff] %v4940_v14  ;;  %3808 = vst.msk [vmem:[#allocation2 + $0x2f8] sm:$0xff] %vm3712_vm2, %v3549_v41  ;;  %4155 = vrot.lane.b32.xlu1 %v3539_v16, %s7469_s24 }
 0x361   :  { %v4938_v6 = vld [vmem:[#allocation2 + $0x2d0] sm:$0xff]  ;;  %5353 = vst [vmem:[%s10060_s8 + $0x100] sm:$0xff] %v5352_v52  ;;  %4389 = vst.msk [vmem:[#allocation3 + $0x120] sm:$0xff] %vm3712_vm2, %v4042_v10  ;;  %v6884_v45 = vpop.f32.mrb[160].mxu0  ;;  %4157 = vrot.lane.b32.xlu0 %v3544_v55, %s7469_s24 }
 0x362   :  { %4939 = vst [vmem:[%s10059_s7 + $0x2d0] sm:$0xff] %v4938_v6  ;;  %3807 = vst.msk [vmem:[#allocation2 + $0x2f0] sm:$0xff] %vm3712_vm2, %v3544_v55  ;;  %v5354_v60 = vld [vmem:[#allocation3 + $0x108] sm:$0xff]  ;;  %v3559_v12 = vadd.f32 %v9208_v37, %v6884_v45  ;;  %v3553_v63 = vpop.f32.mrb[161].mxu0  ;;  %v4044_v22 = vpop.permute.xlu1 %4043 }
 0x363   :  { %v4944_v20 = vld [vmem:[#allocation2 + $0x2e8] sm:$0xff]  ;;  %5355 = vst [vmem:[%s10060_s8 + $0x108] sm:$0xff] %v5354_v60  ;;  %v3554_v19 = vadd.f32 %v9208_v37, %v3553_v63  ;;  %4390 = vst.msk [vmem:[#allocation3 + $0x128] sm:$0xff] %vm3712_vm2, %v4044_v22  ;;  %v4046_v42 = vpop.permute.xlu0 %4045 }
 0x364   :  { %v5356_v15 = vld [vmem:[#allocation3 + $0x110] sm:$0xff]  ;;  %4945 = vst [vmem:[%s10059_s7 + $0x2e8] sm:$0xff] %v4944_v20  ;;  %3810 = vst.msk [vmem:[#allocation2 + $0x308] sm:$0xff] %vm3712_vm2, %v3559_v12  ;;  %4159 = vrot.lane.b32.xlu1 %v3549_v41, %s7469_s24 }
 0x365   :  { %v4942_v38 = vld [vmem:[#allocation2 + $0x2e0] sm:$0xff]  ;;  %5357 = vst [vmem:[%s10060_s8 + $0x110] sm:$0xff] %v5356_v15  ;;  %4391 = vst.msk [vmem:[#allocation3 + $0x130] sm:$0xff] %vm3712_vm2, %v4046_v42  ;;  %v6887_v31 = vpop.f32.mrb[162].mxu0  ;;  %4161 = vrot.lane.b32.xlu0 %v3554_v19, %s7469_s24 }
 0x366   :  { %4943 = vst [vmem:[%s10059_s7 + $0x2e0] sm:$0xff] %v4942_v38  ;;  %3809 = vst.msk [vmem:[#allocation2 + $0x300] sm:$0xff] %vm3712_vm2, %v3554_v19  ;;  %v5358_v35 = vld [vmem:[#allocation3 + $0x118] sm:$0xff]  ;;  %v3569_v32 = vadd.f32 %v9208_v37, %v6887_v31  ;;  %v3563_v56 = vpop.f32.mrb[163].mxu0  ;;  %v4048_v48 = vpop.permute.xlu1 %4047 }
 0x367   :  { %v4948_v1 = vld [vmem:[#allocation2 + $0x2f8] sm:$0xff]  ;;  %5359 = vst [vmem:[%s10060_s8 + $0x118] sm:$0xff] %v5358_v35  ;;  %v3564_v21 = vadd.f32 %v9208_v37, %v3563_v56  ;;  %4392 = vst.msk [vmem:[#allocation3 + $0x138] sm:$0xff] %vm3712_vm2, %v4048_v48  ;;  %v4050_v9 = vpop.permute.xlu0 %4049 }
 0x368   :  { %v5360_v28 = vld [vmem:[#allocation3 + $0x120] sm:$0xff]  ;;  %4949 = vst [vmem:[%s10059_s7 + $0x2f8] sm:$0xff] %v4948_v1  ;;  %3812 = vst.msk [vmem:[#allocation2 + $0x318] sm:$0xff] %vm3712_vm2, %v3569_v32  ;;  %4163 = vrot.lane.b32.xlu1 %v3559_v12, %s7469_s24 }
 0x369   :  { %v4946_v3 = vld [vmem:[#allocation2 + $0x2f0] sm:$0xff]  ;;  %5361 = vst [vmem:[%s10060_s8 + $0x120] sm:$0xff] %v5360_v28  ;;  %4393 = vst.msk [vmem:[#allocation3 + $0x140] sm:$0xff] %vm3712_vm2, %v4050_v9  ;;  %v6890_v7 = vpop.f32.mrb[164].mxu0  ;;  %4165 = vrot.lane.b32.xlu0 %v3564_v21, %s7469_s24 }
 0x36a   :  { %4947 = vst [vmem:[%s10059_s7 + $0x2f0] sm:$0xff] %v4946_v3  ;;  %3811 = vst.msk [vmem:[#allocation2 + $0x310] sm:$0xff] %vm3712_vm2, %v3564_v21  ;;  %v5362_v53 = vld [vmem:[#allocation3 + $0x128] sm:$0xff]  ;;  %v3579_v43 = vadd.f32 %v9208_v37, %v6890_v7  ;;  %v3573_v33 = vpop.f32.mrb[165].mxu0  ;;  %v4052_v13 = vpop.permute.xlu1 %4051 }
 0x36b   :  { %v4952_v24 = vld [vmem:[#allocation2 + $0x308] sm:$0xff]  ;;  %5363 = vst [vmem:[%s10060_s8 + $0x128] sm:$0xff] %v5362_v53  ;;  %v3574_v50 = vadd.f32 %v9208_v37, %v3573_v33  ;;  %4394 = vst.msk [vmem:[#allocation3 + $0x148] sm:$0xff] %vm3712_vm2, %v4052_v13  ;;  %v4054_v59 = vpop.permute.xlu0 %4053 }
 0x36c   :  { %v5364_v39 = vld [vmem:[#allocation3 + $0x130] sm:$0xff]  ;;  %4953 = vst [vmem:[%s10059_s7 + $0x308] sm:$0xff] %v4952_v24  ;;  %3814 = vst.msk [vmem:[#allocation2 + $0x328] sm:$0xff] %vm3712_vm2, %v3579_v43  ;;  %4167 = vrot.lane.b32.xlu1 %v3569_v32, %s7469_s24 }
 0x36d   :  { %v4950_v47 = vld [vmem:[#allocation2 + $0x300] sm:$0xff]  ;;  %5365 = vst [vmem:[%s10060_s8 + $0x130] sm:$0xff] %v5364_v39  ;;  %4395 = vst.msk [vmem:[#allocation3 + $0x150] sm:$0xff] %vm3712_vm2, %v4054_v59  ;;  %v6893_v25 = vpop.f32.mrb[166].mxu0  ;;  %4169 = vrot.lane.b32.xlu0 %v3574_v50, %s7469_s24 }
 0x36e   :  { %4951 = vst [vmem:[%s10059_s7 + $0x300] sm:$0xff] %v4950_v47  ;;  %3813 = vst.msk [vmem:[#allocation2 + $0x320] sm:$0xff] %vm3712_vm2, %v3574_v50  ;;  %v5366_v57 = vld [vmem:[#allocation3 + $0x138] sm:$0xff]  ;;  %v3589_v18 = vadd.f32 %v9208_v37, %v6893_v25  ;;  %v3583_v26 = vpop.f32.mrb[167].mxu0  ;;  %v4056_v8 = vpop.permute.xlu1 %4055 }
 0x36f   :  { %v4956_v17 = vld [vmem:[#allocation2 + $0x318] sm:$0xff]  ;;  %5367 = vst [vmem:[%s10060_s8 + $0x138] sm:$0xff] %v5366_v57  ;;  %v3584_v61 = vadd.f32 %v9208_v37, %v3583_v26  ;;  %4396 = vst.msk [vmem:[#allocation3 + $0x158] sm:$0xff] %vm3712_vm2, %v4056_v8  ;;  %v4058_v4 = vpop.permute.xlu0 %4057 }
 0x370   :  { %v5368_v51 = vld [vmem:[#allocation3 + $0x140] sm:$0xff]  ;;  %4957 = vst [vmem:[%s10059_s7 + $0x318] sm:$0xff] %v4956_v17  ;;  %3816 = vst.msk [vmem:[#allocation2 + $0x338] sm:$0xff] %vm3712_vm2, %v3589_v18  ;;  %4171 = vrot.lane.b32.xlu1 %v3579_v43, %s7469_s24 }
 0x371   :  { %v4954_v44 = vld [vmem:[#allocation2 + $0x310] sm:$0xff]  ;;  %5369 = vst [vmem:[%s10060_s8 + $0x140] sm:$0xff] %v5368_v51  ;;  %4397 = vst.msk [vmem:[#allocation3 + $0x160] sm:$0xff] %vm3712_vm2, %v4058_v4  ;;  %v6896_v0 = vpop.f32.mrb[168].mxu0  ;;  %4173 = vrot.lane.b32.xlu0 %v3584_v61, %s7469_s24 }
 0x372   :  { %4955 = vst [vmem:[%s10059_s7 + $0x310] sm:$0xff] %v4954_v44  ;;  %3815 = vst.msk [vmem:[#allocation2 + $0x330] sm:$0xff] %vm3712_vm2, %v3584_v61  ;;  %v5370_v58 = vld [vmem:[#allocation3 + $0x148] sm:$0xff]  ;;  %v3599_v40 = vadd.f32 %v9208_v37, %v6896_v0  ;;  %v3593_v62 = vpop.f32.mrb[169].mxu0  ;;  %v4060_v30 = vpop.permute.xlu1 %4059 }
 0x373   :  { %v4960_v16 = vld [vmem:[#allocation2 + $0x328] sm:$0xff]  ;;  %5371 = vst [vmem:[%s10060_s8 + $0x148] sm:$0xff] %v5370_v58  ;;  %v3594_v34 = vadd.f32 %v9208_v37, %v3593_v62  ;;  %4398 = vst.msk [vmem:[#allocation3 + $0x168] sm:$0xff] %vm3712_vm2, %v4060_v30  ;;  %v4062_v5 = vpop.permute.xlu0 %4061 }
 0x374   :  { %v5372_v11 = vld [vmem:[#allocation3 + $0x150] sm:$0xff]  ;;  %4961 = vst [vmem:[%s10059_s7 + $0x328] sm:$0xff] %v4960_v16  ;;  %3818 = vst.msk [vmem:[#allocation2 + $0x348] sm:$0xff] %vm3712_vm2, %v3599_v40  ;;  %4175 = vrot.lane.b32.xlu1 %v3589_v18, %s7469_s24 }
 0x375   :  { %v4958_v54 = vld [vmem:[#allocation2 + $0x320] sm:$0xff]  ;;  %5373 = vst [vmem:[%s10060_s8 + $0x150] sm:$0xff] %v5372_v11  ;;  %4399 = vst.msk [vmem:[#allocation3 + $0x170] sm:$0xff] %vm3712_vm2, %v4062_v5  ;;  %v6899_v27 = vpop.f32.mrb[170].mxu0  ;;  %4177 = vrot.lane.b32.xlu0 %v3594_v34, %s7469_s24 }
 0x376   :  { %4959 = vst [vmem:[%s10059_s7 + $0x320] sm:$0xff] %v4958_v54  ;;  %3817 = vst.msk [vmem:[#allocation2 + $0x340] sm:$0xff] %vm3712_vm2, %v3594_v34  ;;  %v5374_v49 = vld [vmem:[#allocation3 + $0x158] sm:$0xff]  ;;  %v3609_v23 = vadd.f32 %v9208_v37, %v6899_v27  ;;  %v3603_v2 = vpop.f32.mrb[171].mxu0  ;;  %v4064_v46 = vpop.permute.xlu1 %4063 }
 0x377   :  { %v4964_v41 = vld [vmem:[#allocation2 + $0x338] sm:$0xff]  ;;  %5375 = vst [vmem:[%s10060_s8 + $0x158] sm:$0xff] %v5374_v49  ;;  %v3604_v29 = vadd.f32 %v9208_v37, %v3603_v2  ;;  %4400 = vst.msk [vmem:[#allocation3 + $0x178] sm:$0xff] %vm3712_vm2, %v4064_v46  ;;  %v4066_v14 = vpop.permute.xlu0 %4065 }
 0x378   :  { %v5376_v36 = vld [vmem:[#allocation3 + $0x160] sm:$0xff]  ;;  %4965 = vst [vmem:[%s10059_s7 + $0x338] sm:$0xff] %v4964_v41  ;;  %3820 = vst.msk [vmem:[#allocation2 + $0x358] sm:$0xff] %vm3712_vm2, %v3609_v23  ;;  %4179 = vrot.lane.b32.xlu1 %v3599_v40, %s7469_s24 }
 0x379   :  { %v4962_v52 = vld [vmem:[#allocation2 + $0x330] sm:$0xff]  ;;  %5377 = vst [vmem:[%s10060_s8 + $0x160] sm:$0xff] %v5376_v36  ;;  %4401 = vst.msk [vmem:[#allocation3 + $0x180] sm:$0xff] %vm3712_vm2, %v4066_v14  ;;  %v6902_v55 = vpop.f32.mrb[172].mxu0  ;;  %4181 = vrot.lane.b32.xlu0 %v3604_v29, %s7469_s24  ;;  %v9733_v14 = vld [vmem:[%s10058_s6] ss:$0 sm:$0xff] }
 0x37a   :  { %4963 = vst [vmem:[%s10059_s7 + $0x330] sm:$0xff] %v4962_v52  ;;  %3819 = vst.msk [vmem:[#allocation2 + $0x350] sm:$0xff] %vm3712_vm2, %v3604_v29  ;;  %v5378_v10 = vld [vmem:[#allocation3 + $0x168] sm:$0xff]  ;;  %v3619_v6 = vadd.f32 %v9208_v37, %v6902_v55  ;;  %v3613_v45 = vpop.f32.mrb[173].mxu0  ;;  %v4068_v60 = vpop.permute.xlu1 %4067 }
 0x37b   :  { %v4968_v12 = vld [vmem:[#allocation2 + $0x348] sm:$0xff]  ;;  %5379 = vst [vmem:[%s10060_s8 + $0x168] sm:$0xff] %v5378_v10  ;;  %v3614_v22 = vadd.f32 %v9208_v37, %v3613_v45  ;;  %4402 = vst.msk [vmem:[#allocation3 + $0x188] sm:$0xff] %vm3712_vm2, %v4068_v60  ;;  %v4070_v20 = vpop.permute.xlu0 %4069 }
 0x37c   :  { %v5380_v63 = vld [vmem:[#allocation3 + $0x170] sm:$0xff]  ;;  %4969 = vst [vmem:[%s10059_s7 + $0x348] sm:$0xff] %v4968_v12  ;;  %3822 = vst.msk [vmem:[#allocation2 + $0x368] sm:$0xff] %vm3712_vm2, %v3619_v6  ;;  %4183 = vrot.lane.b32.xlu1 %v3609_v23, %s7469_s24 }
 0x37d   :  { %v4966_v15 = vld [vmem:[#allocation2 + $0x340] sm:$0xff]  ;;  %5381 = vst [vmem:[%s10060_s8 + $0x170] sm:$0xff] %v5380_v63  ;;  %4403 = vst.msk [vmem:[#allocation3 + $0x190] sm:$0xff] %vm3712_vm2, %v4070_v20  ;;  %v6905_v19 = vpop.f32.mrb[174].mxu0  ;;  %4185 = vrot.lane.b32.xlu0 %v3614_v22, %s7469_s24 }
 0x37e   :  { %4967 = vst [vmem:[%s10059_s7 + $0x340] sm:$0xff] %v4966_v15  ;;  %3821 = vst.msk [vmem:[#allocation2 + $0x360] sm:$0xff] %vm3712_vm2, %v3614_v22  ;;  %v5382_v42 = vld [vmem:[#allocation3 + $0x178] sm:$0xff]  ;;  %v3629_v38 = vadd.f32 %v9208_v37, %v6905_v19  ;;  %v3623_v31 = vpop.f32.mrb[175].mxu0  ;;  %v4072_v35 = vpop.permute.xlu1 %4071 }
 0x37f   :  { %v4972_v32 = vld [vmem:[#allocation2 + $0x358] sm:$0xff]  ;;  %5383 = vst [vmem:[%s10060_s8 + $0x178] sm:$0xff] %v5382_v42  ;;  %v3624_v48 = vadd.f32 %v9208_v37, %v3623_v31  ;;  %4404 = vst.msk [vmem:[#allocation3 + $0x198] sm:$0xff] %vm3712_vm2, %v4072_v35  ;;  %v4074_v1 = vpop.permute.xlu0 %4073 }
 0x380   :  { %v5384_v56 = vld [vmem:[#allocation3 + $0x180] sm:$0xff]  ;;  %4973 = vst [vmem:[%s10059_s7 + $0x358] sm:$0xff] %v4972_v32  ;;  %3824 = vst.msk [vmem:[#allocation2 + $0x378] sm:$0xff] %vm3712_vm2, %v3629_v38  ;;  %4187 = vrot.lane.b32.xlu1 %v3619_v6, %s7469_s24 }
 0x381   :  { %v4970_v28 = vld [vmem:[#allocation2 + $0x350] sm:$0xff]  ;;  %5385 = vst [vmem:[%s10060_s8 + $0x180] sm:$0xff] %v5384_v56  ;;  %4405 = vst.msk [vmem:[#allocation3 + $0x1a0] sm:$0xff] %vm3712_vm2, %v4074_v1  ;;  %v6908_v21 = vpop.f32.mrb[176].mxu0  ;;  %4189 = vrot.lane.b32.xlu0 %v3624_v48, %s7469_s24 }
 0x382   :  { %4971 = vst [vmem:[%s10059_s7 + $0x350] sm:$0xff] %v4970_v28  ;;  %3823 = vst.msk [vmem:[#allocation2 + $0x370] sm:$0xff] %vm3712_vm2, %v3624_v48  ;;  %v5386_v9 = vld [vmem:[#allocation3 + $0x188] sm:$0xff]  ;;  %v3639_v3 = vadd.f32 %v9208_v37, %v6908_v21  ;;  %v3633_v7 = vpop.f32.mrb[177].mxu0  ;;  %v4076_v53 = vpop.permute.xlu1 %4075 }
 0x383   :  { %v4976_v43 = vld [vmem:[#allocation2 + $0x368] sm:$0xff]  ;;  %5387 = vst [vmem:[%s10060_s8 + $0x188] sm:$0xff] %v5386_v9  ;;  %v3634_v13 = vadd.f32 %v9208_v37, %v3633_v7  ;;  %4406 = vst.msk [vmem:[#allocation3 + $0x1a8] sm:$0xff] %vm3712_vm2, %v4076_v53  ;;  %v4078_v24 = vpop.permute.xlu0 %4077 }
 0x384   :  { %v5388_v33 = vld [vmem:[#allocation3 + $0x190] sm:$0xff]  ;;  %4977 = vst [vmem:[%s10059_s7 + $0x368] sm:$0xff] %v4976_v43  ;;  %3826 = vst.msk [vmem:[#allocation2 + $0x388] sm:$0xff] %vm3712_vm2, %v3639_v3  ;;  %4191 = vrot.lane.b32.xlu1 %v3629_v38, %s7469_s24 }
 0x385   :  { %v4974_v39 = vld [vmem:[#allocation2 + $0x360] sm:$0xff]  ;;  %5389 = vst [vmem:[%s10060_s8 + $0x190] sm:$0xff] %v5388_v33  ;;  %4407 = vst.msk [vmem:[#allocation3 + $0x1b0] sm:$0xff] %vm3712_vm2, %v4078_v24  ;;  %v6911_v50 = vpop.f32.mrb[178].mxu0  ;;  %4193 = vrot.lane.b32.xlu0 %v3634_v13, %s7469_s24 }
 0x386   :  { %4975 = vst [vmem:[%s10059_s7 + $0x360] sm:$0xff] %v4974_v39  ;;  %3825 = vst.msk [vmem:[#allocation2 + $0x380] sm:$0xff] %vm3712_vm2, %v3634_v13  ;;  %v5390_v59 = vld [vmem:[#allocation3 + $0x198] sm:$0xff]  ;;  %v3649_v47 = vadd.f32 %v9208_v37, %v6911_v50  ;;  %v3643_v25 = vpop.f32.mrb[179].mxu0  ;;  %v4080_v57 = vpop.permute.xlu1 %4079 }
 0x387   :  { %v4980_v18 = vld [vmem:[#allocation2 + $0x378] sm:$0xff]  ;;  %5391 = vst [vmem:[%s10060_s8 + $0x198] sm:$0xff] %v5390_v59  ;;  %v3644_v8 = vadd.f32 %v9208_v37, %v3643_v25  ;;  %4408 = vst.msk [vmem:[#allocation3 + $0x1b8] sm:$0xff] %vm3712_vm2, %v4080_v57  ;;  %v4082_v17 = vpop.permute.xlu0 %4081 }
 0x388   :  { %v5392_v26 = vld [vmem:[#allocation3 + $0x1a0] sm:$0xff]  ;;  %4981 = vst [vmem:[%s10059_s7 + $0x378] sm:$0xff] %v4980_v18  ;;  %3828 = vst.msk [vmem:[#allocation2 + $0x398] sm:$0xff] %vm3712_vm2, %v3649_v47  ;;  %4195 = vrot.lane.b32.xlu1 %v3639_v3, %s7469_s24 }
 0x389   :  { %v4978_v51 = vld [vmem:[#allocation2 + $0x370] sm:$0xff]  ;;  %5393 = vst [vmem:[%s10060_s8 + $0x1a0] sm:$0xff] %v5392_v26  ;;  %4409 = vst.msk [vmem:[#allocation3 + $0x1c0] sm:$0xff] %vm3712_vm2, %v4082_v17  ;;  %v6914_v61 = vpop.f32.mrb[180].mxu0  ;;  %4197 = vrot.lane.b32.xlu0 %v3644_v8, %s7469_s24 }
 0x38a   :  { %4979 = vst [vmem:[%s10059_s7 + $0x370] sm:$0xff] %v4978_v51  ;;  %3827 = vst.msk [vmem:[#allocation2 + $0x390] sm:$0xff] %vm3712_vm2, %v3644_v8  ;;  %v5394_v4 = vld [vmem:[#allocation3 + $0x1a8] sm:$0xff]  ;;  %v3659_v44 = vadd.f32 %v9208_v37, %v6914_v61  ;;  %v3653_v0 = vpop.f32.mrb[181].mxu0  ;;  %v4084_v58 = vpop.permute.xlu1 %4083 }
 0x38b   :  { %v4984_v40 = vld [vmem:[#allocation2 + $0x388] sm:$0xff]  ;;  %5395 = vst [vmem:[%s10060_s8 + $0x1a8] sm:$0xff] %v5394_v4  ;;  %v3654_v30 = vadd.f32 %v9208_v37, %v3653_v0  ;;  %4410 = vst.msk [vmem:[#allocation3 + $0x1c8] sm:$0xff] %vm3712_vm2, %v4084_v58  ;;  %v4086_v16 = vpop.permute.xlu0 %4085 }
 0x38c   :  { %v5396_v62 = vld [vmem:[#allocation3 + $0x1b0] sm:$0xff]  ;;  %4985 = vst [vmem:[%s10059_s7 + $0x388] sm:$0xff] %v4984_v40  ;;  %3830 = vst.msk [vmem:[#allocation2 + $0x3a8] sm:$0xff] %vm3712_vm2, %v3659_v44  ;;  %4199 = vrot.lane.b32.xlu1 %v3649_v47, %s7469_s24 }
 0x38d   :  { %v4982_v11 = vld [vmem:[#allocation2 + $0x380] sm:$0xff]  ;;  %5397 = vst [vmem:[%s10060_s8 + $0x1b0] sm:$0xff] %v5396_v62  ;;  %4411 = vst.msk [vmem:[#allocation3 + $0x1d0] sm:$0xff] %vm3712_vm2, %v4086_v16  ;;  %v6917_v34 = vpop.f32.mrb[182].mxu0  ;;  %4201 = vrot.lane.b32.xlu0 %v3654_v30, %s7469_s24 }
 0x38e   :  { %4983 = vst [vmem:[%s10059_s7 + $0x380] sm:$0xff] %v4982_v11  ;;  %3829 = vst.msk [vmem:[#allocation2 + $0x3a0] sm:$0xff] %vm3712_vm2, %v3654_v30  ;;  %v5398_v5 = vld [vmem:[#allocation3 + $0x1b8] sm:$0xff]  ;;  %v3669_v54 = vadd.f32 %v9208_v37, %v6917_v34  ;;  %v3663_v27 = vpop.f32.mrb[183].mxu0  ;;  %v4088_v49 = vpop.permute.xlu1 %4087 }
 0x38f   :  { %v4988_v23 = vld [vmem:[#allocation2 + $0x398] sm:$0xff]  ;;  %5399 = vst [vmem:[%s10060_s8 + $0x1b8] sm:$0xff] %v5398_v5  ;;  %v3664_v46 = vadd.f32 %v9208_v37, %v3663_v27  ;;  %4412 = vst.msk [vmem:[#allocation3 + $0x1d8] sm:$0xff] %vm3712_vm2, %v4088_v49  ;;  %v4090_v41 = vpop.permute.xlu0 %4089 }
 0x390   :  { %v5400_v2 = vld [vmem:[#allocation3 + $0x1c0] sm:$0xff]  ;;  %4989 = vst [vmem:[%s10059_s7 + $0x398] sm:$0xff] %v4988_v23  ;;  %3832 = vst.msk [vmem:[#allocation2 + $0x3b8] sm:$0xff] %vm3712_vm2, %v3669_v54  ;;  %4203 = vrot.lane.b32.xlu1 %v3659_v44, %s7469_s24 }
 0x391   :  { %v4986_v36 = vld [vmem:[#allocation2 + $0x390] sm:$0xff]  ;;  %5401 = vst [vmem:[%s10060_s8 + $0x1c0] sm:$0xff] %v5400_v2  ;;  %4413 = vst.msk [vmem:[#allocation3 + $0x1e0] sm:$0xff] %vm3712_vm2, %v4090_v41  ;;  %v6920_v37 = vpop.f32.mrb[184].mxu0  ;;  %4205 = vrot.lane.b32.xlu0 %v3664_v46, %s7469_s24 }
 0x392   :  { %4987 = vst [vmem:[%s10059_s7 + $0x390] sm:$0xff] %v4986_v36  ;;  %3831 = vst.msk [vmem:[#allocation2 + $0x3b0] sm:$0xff] %vm3712_vm2, %v3664_v46  ;;  %v5402_v29 = vld [vmem:[#allocation3 + $0x1c8] sm:$0xff]  ;;  %v3679_v52 = vadd.f32 %v9733_v14, %v6920_v37  ;;  %v3673_v55 = vpop.f32.mrb[185].mxu0  ;;  %v4092_v10 = vpop.permute.xlu1 %4091 }
 0x393   :  { %v4992_v6 = vld [vmem:[#allocation2 + $0x3a8] sm:$0xff]  ;;  %5403 = vst [vmem:[%s10060_s8 + $0x1c8] sm:$0xff] %v5402_v29  ;;  %v3674_v60 = vadd.f32 %v9733_v14, %v3673_v55  ;;  %4414 = vst.msk [vmem:[#allocation3 + $0x1e8] sm:$0xff] %vm3712_vm2, %v4092_v10  ;;  %v4094_v12 = vpop.permute.xlu0 %4093 }
 0x394   :  { %v5404_v45 = vld [vmem:[#allocation3 + $0x1d0] sm:$0xff]  ;;  %4993 = vst [vmem:[%s10059_s7 + $0x3a8] sm:$0xff] %v4992_v6  ;;  %3834 = vst.msk [vmem:[#allocation2 + $0x3c8] sm:$0xff] %vm3712_vm2, %v3679_v52  ;;  %4207 = vrot.lane.b32.xlu1 %v3669_v54, %s7469_s24 }
 0x395   :  { %v4990_v63 = vld [vmem:[#allocation2 + $0x3a0] sm:$0xff]  ;;  %5405 = vst [vmem:[%s10060_s8 + $0x1d0] sm:$0xff] %v5404_v45  ;;  %4415 = vst.msk [vmem:[#allocation3 + $0x1f0] sm:$0xff] %vm3712_vm2, %v4094_v12  ;;  %v6923_v22 = vpop.f32.mrb[186].mxu0  ;;  %4209 = vrot.lane.b32.xlu0 %v3674_v60, %s7469_s24 }
 0x396   :  { %4991 = vst [vmem:[%s10059_s7 + $0x3a0] sm:$0xff] %v4990_v63  ;;  %3833 = vst.msk [vmem:[#allocation2 + $0x3c0] sm:$0xff] %vm3712_vm2, %v3674_v60  ;;  %v5406_v20 = vld [vmem:[#allocation3 + $0x1d8] sm:$0xff]  ;;  %v3689_v15 = vadd.f32 %v9733_v14, %v6923_v22  ;;  %v3683_v19 = vpop.f32.mrb[187].mxu0  ;;  %v4096_v42 = vpop.permute.xlu1 %4095 }
 0x397   :  { %v4996_v38 = vld [vmem:[#allocation2 + $0x3b8] sm:$0xff]  ;;  %5407 = vst [vmem:[%s10060_s8 + $0x1d8] sm:$0xff] %v5406_v20  ;;  %v3684_v35 = vadd.f32 %v9733_v14, %v3683_v19  ;;  %4416 = vst.msk [vmem:[#allocation3 + $0x1f8] sm:$0xff] %vm3712_vm2, %v4096_v42  ;;  %v4098_v32 = vpop.permute.xlu0 %4097 }
 0x398   :  { %v5408_v31 = vld [vmem:[#allocation3 + $0x1e0] sm:$0xff]  ;;  %4997 = vst [vmem:[%s10059_s7 + $0x3b8] sm:$0xff] %v4996_v38  ;;  %3836 = vst.msk [vmem:[#allocation2 + $0x3d8] sm:$0xff] %vm3712_vm2, %v3689_v15  ;;  %4211 = vrot.lane.b32.xlu1 %v3679_v52, %s7469_s24 }
 0x399   :  { %v4994_v56 = vld [vmem:[#allocation2 + $0x3b0] sm:$0xff]  ;;  %5409 = vst [vmem:[%s10060_s8 + $0x1e0] sm:$0xff] %v5408_v31  ;;  %4417 = vst.msk [vmem:[#allocation3 + $0x200] sm:$0xff] %vm3712_vm2, %v4098_v32  ;;  %v6926_v48 = vpop.f32.mrb[188].mxu0  ;;  %4213 = vrot.lane.b32.xlu0 %v3684_v35, %s7469_s24 }
 0x39a   :  { %4995 = vst [vmem:[%s10059_s7 + $0x3b0] sm:$0xff] %v4994_v56  ;;  %3835 = vst.msk [vmem:[#allocation2 + $0x3d0] sm:$0xff] %vm3712_vm2, %v3684_v35  ;;  %v5410_v1 = vld [vmem:[#allocation3 + $0x1e8] sm:$0xff]  ;;  %v3699_v28 = vadd.f32 %v9733_v14, %v6926_v48  ;;  %v3693_v21 = vpop.f32.mrb[189].mxu0  ;;  %v4100_v9 = vpop.permute.xlu1 %4099 }
 0x39b   :  { %v5000_v3 = vld [vmem:[#allocation2 + $0x3c8] sm:$0xff]  ;;  %5411 = vst [vmem:[%s10060_s8 + $0x1e8] sm:$0xff] %v5410_v1  ;;  %v3694_v53 = vadd.f32 %v9733_v14, %v3693_v21  ;;  %4418 = vst.msk [vmem:[#allocation3 + $0x208] sm:$0xff] %vm3712_vm2, %v4100_v9  ;;  %v4102_v43 = vpop.permute.xlu0 %4101 }
 0x39c   :  { %v5412_v7 = vld [vmem:[#allocation3 + $0x1f0] sm:$0xff]  ;;  %5001 = vst [vmem:[%s10059_s7 + $0x3c8] sm:$0xff] %v5000_v3  ;;  %4419 = vst.msk [vmem:[#allocation3 + $0x210] sm:$0xff] %vm3712_vm2, %v4102_v43  ;;  %4215 = vrot.lane.b32.xlu1 %v3689_v15, %s7469_s24 }
 0x39d   :  { %v4998_v33 = vld [vmem:[#allocation2 + $0x3c0] sm:$0xff]  ;;  %5413 = vst [vmem:[%s10060_s8 + $0x1f0] sm:$0xff] %v5412_v7  ;;  %3837 = vst.msk [vmem:[#allocation2 + $0x3e0] sm:$0xff] %vm3712_vm2, %v3694_v53  ;;  %v6929_v13 = vpop.f32.mrb[190].mxu0  ;;  %4217 = vrot.lane.b32.xlu0 %v3694_v53, %s7469_s24 }
 0x39e   :  { %4999 = vst [vmem:[%s10059_s7 + $0x3c0] sm:$0xff] %v4998_v33  ;;  %v5414_v24 = vld [vmem:[#allocation3 + $0x1f8] sm:$0xff]  ;;  %v3709_v39 = vadd.f32 %v9733_v14, %v6929_v13  ;;  %v3703_v50 = vpop.f32.mrb[191].mxu0  ;;  %v4104_v59 = vpop.permute.xlu1 %4103 }
 0x39f   :  { %v5004_v47 = vld [vmem:[#allocation2 + $0x3d8] sm:$0xff]  ;;  %5415 = vst [vmem:[%s10060_s8 + $0x1f8] sm:$0xff] %v5414_v24  ;;  %v3704_v57 = vadd.f32 %v9733_v14, %v3703_v50  ;;  %4420 = vst.msk [vmem:[#allocation3 + $0x218] sm:$0xff] %vm3712_vm2, %v4104_v59  ;;  %v4106_v18 = vpop.permute.xlu0 %4105 }
 0x3a0   :  { %v5416_v25 = vld [vmem:[#allocation3 + $0x200] sm:$0xff]  ;;  %5005 = vst [vmem:[%s10059_s7 + $0x3d8] sm:$0xff] %v5004_v47  ;;  %4421 = vst.msk [vmem:[#allocation3 + $0x220] sm:$0xff] %vm3712_vm2, %v4106_v18  ;;  %4219 = vrot.lane.b32.xlu1 %v3699_v28, %s7469_s24 }
 0x3a1   :  { %v5002_v26 = vld [vmem:[#allocation2 + $0x3d0] sm:$0xff]  ;;  %5417 = vst [vmem:[%s10060_s8 + $0x200] sm:$0xff] %v5416_v25  ;;  %4221 = vrot.lane.b32.xlu0 %v3704_v57, %s7469_s24 }
 0x3a2   :  { %5003 = vst [vmem:[%s10059_s7 + $0x3d0] sm:$0xff] %v5002_v26  ;;  %v5418_v8 = vld [vmem:[#allocation3 + $0x208] sm:$0xff]  ;;  %v4108_v17 = vpop.permute.xlu1 %4107 }
 0x3a3   :  { %5419 = vst [vmem:[%s10060_s8 + $0x208] sm:$0xff] %v5418_v8  ;;  %v5420_v51 = vld [vmem:[#allocation3 + $0x210] sm:$0xff]  ;;  %4422 = vst.msk [vmem:[#allocation3 + $0x228] sm:$0xff] %vm3712_vm2, %v4108_v17  ;;  %v4110_v61 = vpop.permute.xlu0 %4109 }
 0x3a4   :  { %v5006_v4 = vld [vmem:[#allocation2 + $0x3e0] sm:$0xff]  ;;  %5421 = vst [vmem:[%s10060_s8 + $0x210] sm:$0xff] %v5420_v51  ;;  %4423 = vst.msk [vmem:[#allocation3 + $0x230] sm:$0xff] %vm3712_vm2, %v4110_v61  ;;  %4223 = vrot.lane.b32.xlu1 %v3709_v39, %s7469_s24 }
 0x3a5   :  { %5007 = vst [vmem:[%s10059_s7 + $0x3e0] sm:$0xff] %v5006_v4 }
 0x3a6   :  { %v5422_v44 = vld [vmem:[#allocation3 + $0x218] sm:$0xff]  ;;  %v4112_v0 = vpop.permute.xlu1 %4111 }
 0x3a7   :  { %5423 = vst [vmem:[%s10060_s8 + $0x218] sm:$0xff] %v5422_v44  ;;  %v5424_v58 = vld [vmem:[#allocation3 + $0x220] sm:$0xff]  ;;  %4424 = vst.msk [vmem:[#allocation3 + $0x238] sm:$0xff] %vm3712_vm2, %v4112_v0  ;;  %v4114_v40 = vpop.permute.xlu0 %4113 }
 0x3a8   :  { %5425 = vst [vmem:[%s10060_s8 + $0x220] sm:$0xff] %v5424_v58  ;;  %4425 = vst.msk [vmem:[#allocation3 + $0x240] sm:$0xff] %vm3712_vm2, %v4114_v40 }
 0x3aa   :  { %v5426_v62 = vld [vmem:[#allocation3 + $0x228] sm:$0xff]  ;;  %v4116_v30 = vpop.permute.xlu1 %4115 }
 0x3ab   :  { %5427 = vst [vmem:[%s10060_s8 + $0x228] sm:$0xff] %v5426_v62  ;;  %v5428_v16 = vld [vmem:[#allocation3 + $0x230] sm:$0xff]  ;;  %4426 = vst.msk [vmem:[#allocation3 + $0x248] sm:$0xff] %vm3712_vm2, %v4116_v30  ;;  %v4118_v11 = vpop.permute.xlu0 %4117 }
 0x3ac   :  { %5429 = vst [vmem:[%s10060_s8 + $0x230] sm:$0xff] %v5428_v16  ;;  %4427 = vst.msk [vmem:[#allocation3 + $0x250] sm:$0xff] %vm3712_vm2, %v4118_v11 }
 0x3ae   :  { %v5430_v34 = vld [vmem:[#allocation3 + $0x238] sm:$0xff]  ;;  %v4120_v5 = vpop.permute.xlu1 %4119 }
 0x3af   :  { %5431 = vst [vmem:[%s10060_s8 + $0x238] sm:$0xff] %v5430_v34  ;;  %v5432_v54 = vld [vmem:[#allocation3 + $0x240] sm:$0xff]  ;;  %4428 = vst.msk [vmem:[#allocation3 + $0x258] sm:$0xff] %vm3712_vm2, %v4120_v5  ;;  %v4122_v27 = vpop.permute.xlu0 %4121 }
 0x3b0   :  { %5433 = vst [vmem:[%s10060_s8 + $0x240] sm:$0xff] %v5432_v54  ;;  %4429 = vst.msk [vmem:[#allocation3 + $0x260] sm:$0xff] %vm3712_vm2, %v4122_v27 }
 0x3b2   :  { %v5434_v49 = vld [vmem:[#allocation3 + $0x248] sm:$0xff]  ;;  %v4124_v23 = vpop.permute.xlu1 %4123 }
 0x3b3   :  { %5435 = vst [vmem:[%s10060_s8 + $0x248] sm:$0xff] %v5434_v49  ;;  %v5436_v2 = vld [vmem:[#allocation3 + $0x250] sm:$0xff]  ;;  %4430 = vst.msk [vmem:[#allocation3 + $0x268] sm:$0xff] %vm3712_vm2, %v4124_v23  ;;  %v4126_v46 = vpop.permute.xlu0 %4125 }
 0x3b4   :  { %5437 = vst [vmem:[%s10060_s8 + $0x250] sm:$0xff] %v5436_v2  ;;  %4431 = vst.msk [vmem:[#allocation3 + $0x270] sm:$0xff] %vm3712_vm2, %v4126_v46 }
 0x3b6   :  { %v5438_v41 = vld [vmem:[#allocation3 + $0x258] sm:$0xff]  ;;  %v4128_v36 = vpop.permute.xlu1 %4127 }
 0x3b7   :  { %5439 = vst [vmem:[%s10060_s8 + $0x258] sm:$0xff] %v5438_v41  ;;  %v5440_v37 = vld [vmem:[#allocation3 + $0x260] sm:$0xff]  ;;  %4432 = vst.msk [vmem:[#allocation3 + $0x278] sm:$0xff] %vm3712_vm2, %v4128_v36  ;;  %v4130_v29 = vpop.permute.xlu0 %4129 }
 0x3b8   :  { %5441 = vst [vmem:[%s10060_s8 + $0x260] sm:$0xff] %v5440_v37  ;;  %4433 = vst.msk [vmem:[#allocation3 + $0x280] sm:$0xff] %vm3712_vm2, %v4130_v29 }
 0x3ba   :  { %v5442_v14 = vld [vmem:[#allocation3 + $0x268] sm:$0xff]  ;;  %v4132_v52 = vpop.permute.xlu1 %4131 }
 0x3bb   :  { %5443 = vst [vmem:[%s10060_s8 + $0x268] sm:$0xff] %v5442_v14  ;;  %v5444_v55 = vld [vmem:[#allocation3 + $0x270] sm:$0xff]  ;;  %4434 = vst.msk [vmem:[#allocation3 + $0x288] sm:$0xff] %vm3712_vm2, %v4132_v52  ;;  %v4134_v10 = vpop.permute.xlu0 %4133 }
 0x3bc   :  { %5445 = vst [vmem:[%s10060_s8 + $0x270] sm:$0xff] %v5444_v55  ;;  %4435 = vst.msk [vmem:[#allocation3 + $0x290] sm:$0xff] %vm3712_vm2, %v4134_v10 }
 0x3be   :  { %v5446_v6 = vld [vmem:[#allocation3 + $0x278] sm:$0xff]  ;;  %v4136_v45 = vpop.permute.xlu1 %4135 }
 0x3bf   :  { %5447 = vst [vmem:[%s10060_s8 + $0x278] sm:$0xff] %v5446_v6  ;;  %v5448_v60 = vld [vmem:[#allocation3 + $0x280] sm:$0xff]  ;;  %4436 = vst.msk [vmem:[#allocation3 + $0x298] sm:$0xff] %vm3712_vm2, %v4136_v45  ;;  %v4138_v12 = vpop.permute.xlu0 %4137 }
 0x3c0   :  { %5449 = vst [vmem:[%s10060_s8 + $0x280] sm:$0xff] %v5448_v60  ;;  %4437 = vst.msk [vmem:[#allocation3 + $0x2a0] sm:$0xff] %vm3712_vm2, %v4138_v12 }
 0x3c2   :  { %v5450_v63 = vld [vmem:[#allocation3 + $0x288] sm:$0xff]  ;;  %v4140_v22 = vpop.permute.xlu1 %4139 }
 0x3c3   :  { %5451 = vst [vmem:[%s10060_s8 + $0x288] sm:$0xff] %v5450_v63  ;;  %v5452_v20 = vld [vmem:[#allocation3 + $0x290] sm:$0xff]  ;;  %4438 = vst.msk [vmem:[#allocation3 + $0x2a8] sm:$0xff] %vm3712_vm2, %v4140_v22  ;;  %v4142_v15 = vpop.permute.xlu0 %4141 }
 0x3c4   :  { %5453 = vst [vmem:[%s10060_s8 + $0x290] sm:$0xff] %v5452_v20  ;;  %4439 = vst.msk [vmem:[#allocation3 + $0x2b0] sm:$0xff] %vm3712_vm2, %v4142_v15 }
 0x3c6   :  { %v5454_v19 = vld [vmem:[#allocation3 + $0x298] sm:$0xff]  ;;  %v4144_v42 = vpop.permute.xlu1 %4143 }
 0x3c7   :  { %5455 = vst [vmem:[%s10060_s8 + $0x298] sm:$0xff] %v5454_v19  ;;  %v5456_v38 = vld [vmem:[#allocation3 + $0x2a0] sm:$0xff]  ;;  %4440 = vst.msk [vmem:[#allocation3 + $0x2b8] sm:$0xff] %vm3712_vm2, %v4144_v42  ;;  %v4146_v31 = vpop.permute.xlu0 %4145 }
 0x3c8   :  { %5457 = vst [vmem:[%s10060_s8 + $0x2a0] sm:$0xff] %v5456_v38  ;;  %4441 = vst.msk [vmem:[#allocation3 + $0x2c0] sm:$0xff] %vm3712_vm2, %v4146_v31 }
 0x3ca   :  { %v5458_v35 = vld [vmem:[#allocation3 + $0x2a8] sm:$0xff]  ;;  %v4148_v32 = vpop.permute.xlu1 %4147 }
 0x3cb   :  { %5459 = vst [vmem:[%s10060_s8 + $0x2a8] sm:$0xff] %v5458_v35  ;;  %v5460_v56 = vld [vmem:[#allocation3 + $0x2b0] sm:$0xff]  ;;  %4442 = vst.msk [vmem:[#allocation3 + $0x2c8] sm:$0xff] %vm3712_vm2, %v4148_v32  ;;  %v4150_v48 = vpop.permute.xlu0 %4149 }
 0x3cc   :  { %5461 = vst [vmem:[%s10060_s8 + $0x2b0] sm:$0xff] %v5460_v56  ;;  %4443 = vst.msk [vmem:[#allocation3 + $0x2d0] sm:$0xff] %vm3712_vm2, %v4150_v48 }
 0x3ce   :  { %v5462_v1 = vld [vmem:[#allocation3 + $0x2b8] sm:$0xff]  ;;  %v4152_v28 = vpop.permute.xlu1 %4151 }
 0x3cf   :  { %5463 = vst [vmem:[%s10060_s8 + $0x2b8] sm:$0xff] %v5462_v1  ;;  %v5464_v21 = vld [vmem:[#allocation3 + $0x2c0] sm:$0xff]  ;;  %4444 = vst.msk [vmem:[#allocation3 + $0x2d8] sm:$0xff] %vm3712_vm2, %v4152_v28  ;;  %v4154_v9 = vpop.permute.xlu0 %4153 }
 0x3d0   :  { %5465 = vst [vmem:[%s10060_s8 + $0x2c0] sm:$0xff] %v5464_v21  ;;  %4445 = vst.msk [vmem:[#allocation3 + $0x2e0] sm:$0xff] %vm3712_vm2, %v4154_v9 }
 0x3d2   :  { %v5466_v3 = vld [vmem:[#allocation3 + $0x2c8] sm:$0xff]  ;;  %v4156_v7 = vpop.permute.xlu1 %4155 }
 0x3d3   :  { %5467 = vst [vmem:[%s10060_s8 + $0x2c8] sm:$0xff] %v5466_v3  ;;  %v5468_v53 = vld [vmem:[#allocation3 + $0x2d0] sm:$0xff]  ;;  %4446 = vst.msk [vmem:[#allocation3 + $0x2e8] sm:$0xff] %vm3712_vm2, %v4156_v7  ;;  %v4158_v43 = vpop.permute.xlu0 %4157 }
 0x3d4   :  { %5469 = vst [vmem:[%s10060_s8 + $0x2d0] sm:$0xff] %v5468_v53  ;;  %4447 = vst.msk [vmem:[#allocation3 + $0x2f0] sm:$0xff] %vm3712_vm2, %v4158_v43 }
 0x3d6   :  { %v5470_v33 = vld [vmem:[#allocation3 + $0x2d8] sm:$0xff]  ;;  %v4160_v13 = vpop.permute.xlu1 %4159 }
 0x3d7   :  { %5471 = vst [vmem:[%s10060_s8 + $0x2d8] sm:$0xff] %v5470_v33  ;;  %v5472_v24 = vld [vmem:[#allocation3 + $0x2e0] sm:$0xff]  ;;  %4448 = vst.msk [vmem:[#allocation3 + $0x2f8] sm:$0xff] %vm3712_vm2, %v4160_v13  ;;  %v4162_v39 = vpop.permute.xlu0 %4161 }
 0x3d8   :  { %5473 = vst [vmem:[%s10060_s8 + $0x2e0] sm:$0xff] %v5472_v24  ;;  %4449 = vst.msk [vmem:[#allocation3 + $0x300] sm:$0xff] %vm3712_vm2, %v4162_v39 }
 0x3da   :  { %v5474_v50 = vld [vmem:[#allocation3 + $0x2e8] sm:$0xff]  ;;  %v4164_v59 = vpop.permute.xlu1 %4163 }
 0x3db   :  { %5475 = vst [vmem:[%s10060_s8 + $0x2e8] sm:$0xff] %v5474_v50  ;;  %v5476_v47 = vld [vmem:[#allocation3 + $0x2f0] sm:$0xff]  ;;  %4450 = vst.msk [vmem:[#allocation3 + $0x308] sm:$0xff] %vm3712_vm2, %v4164_v59  ;;  %v4166_v25 = vpop.permute.xlu0 %4165 }
 0x3dc   :  { %5477 = vst [vmem:[%s10060_s8 + $0x2f0] sm:$0xff] %v5476_v47  ;;  %4451 = vst.msk [vmem:[#allocation3 + $0x310] sm:$0xff] %vm3712_vm2, %v4166_v25 }
 0x3de   :  { %v5478_v57 = vld [vmem:[#allocation3 + $0x2f8] sm:$0xff]  ;;  %v4168_v18 = vpop.permute.xlu1 %4167 }
 0x3df   :  { %5479 = vst [vmem:[%s10060_s8 + $0x2f8] sm:$0xff] %v5478_v57  ;;  %v5480_v26 = vld [vmem:[#allocation3 + $0x300] sm:$0xff]  ;;  %4452 = vst.msk [vmem:[#allocation3 + $0x318] sm:$0xff] %vm3712_vm2, %v4168_v18  ;;  %v4170_v8 = vpop.permute.xlu0 %4169 }
 0x3e0   :  { %5481 = vst [vmem:[%s10060_s8 + $0x300] sm:$0xff] %v5480_v26  ;;  %4453 = vst.msk [vmem:[#allocation3 + $0x320] sm:$0xff] %vm3712_vm2, %v4170_v8 }
 0x3e2   :  { %v5482_v17 = vld [vmem:[#allocation3 + $0x308] sm:$0xff]  ;;  %v4172_v51 = vpop.permute.xlu1 %4171 }
 0x3e3   :  { %5483 = vst [vmem:[%s10060_s8 + $0x308] sm:$0xff] %v5482_v17  ;;  %v5484_v61 = vld [vmem:[#allocation3 + $0x310] sm:$0xff]  ;;  %4454 = vst.msk [vmem:[#allocation3 + $0x328] sm:$0xff] %vm3712_vm2, %v4172_v51  ;;  %v4174_v4 = vpop.permute.xlu0 %4173 }
 0x3e4   :  { %5485 = vst [vmem:[%s10060_s8 + $0x310] sm:$0xff] %v5484_v61  ;;  %4455 = vst.msk [vmem:[#allocation3 + $0x330] sm:$0xff] %vm3712_vm2, %v4174_v4 }
 0x3e6   :  { %v5486_v44 = vld [vmem:[#allocation3 + $0x318] sm:$0xff]  ;;  %v4176_v0 = vpop.permute.xlu1 %4175 }
 0x3e7   :  { %5487 = vst [vmem:[%s10060_s8 + $0x318] sm:$0xff] %v5486_v44  ;;  %v5488_v58 = vld [vmem:[#allocation3 + $0x320] sm:$0xff]  ;;  %4456 = vst.msk [vmem:[#allocation3 + $0x338] sm:$0xff] %vm3712_vm2, %v4176_v0  ;;  %v4178_v40 = vpop.permute.xlu0 %4177 }
 0x3e8   :  { %5489 = vst [vmem:[%s10060_s8 + $0x320] sm:$0xff] %v5488_v58  ;;  %4457 = vst.msk [vmem:[#allocation3 + $0x340] sm:$0xff] %vm3712_vm2, %v4178_v40 }
 0x3ea   :  { %v5490_v62 = vld [vmem:[#allocation3 + $0x328] sm:$0xff]  ;;  %v4180_v30 = vpop.permute.xlu1 %4179 }
 0x3eb   :  { %5491 = vst [vmem:[%s10060_s8 + $0x328] sm:$0xff] %v5490_v62  ;;  %v5492_v16 = vld [vmem:[#allocation3 + $0x330] sm:$0xff]  ;;  %4458 = vst.msk [vmem:[#allocation3 + $0x348] sm:$0xff] %vm3712_vm2, %v4180_v30  ;;  %v4182_v11 = vpop.permute.xlu0 %4181 }
 0x3ec   :  { %5493 = vst [vmem:[%s10060_s8 + $0x330] sm:$0xff] %v5492_v16  ;;  %4459 = vst.msk [vmem:[#allocation3 + $0x350] sm:$0xff] %vm3712_vm2, %v4182_v11 }
 0x3ee   :  { %v5494_v34 = vld [vmem:[#allocation3 + $0x338] sm:$0xff]  ;;  %v4184_v5 = vpop.permute.xlu1 %4183 }
 0x3ef   :  { %5495 = vst [vmem:[%s10060_s8 + $0x338] sm:$0xff] %v5494_v34  ;;  %v5496_v54 = vld [vmem:[#allocation3 + $0x340] sm:$0xff]  ;;  %4460 = vst.msk [vmem:[#allocation3 + $0x358] sm:$0xff] %vm3712_vm2, %v4184_v5  ;;  %v4186_v27 = vpop.permute.xlu0 %4185 }
 0x3f0   :  { %5497 = vst [vmem:[%s10060_s8 + $0x340] sm:$0xff] %v5496_v54  ;;  %4461 = vst.msk [vmem:[#allocation3 + $0x360] sm:$0xff] %vm3712_vm2, %v4186_v27 }
 0x3f2   :  { %v5498_v49 = vld [vmem:[#allocation3 + $0x348] sm:$0xff]  ;;  %v4188_v23 = vpop.permute.xlu1 %4187 }
 0x3f3   :  { %5499 = vst [vmem:[%s10060_s8 + $0x348] sm:$0xff] %v5498_v49  ;;  %v5500_v2 = vld [vmem:[#allocation3 + $0x350] sm:$0xff]  ;;  %4462 = vst.msk [vmem:[#allocation3 + $0x368] sm:$0xff] %vm3712_vm2, %v4188_v23  ;;  %v4190_v46 = vpop.permute.xlu0 %4189 }
 0x3f4   :  { %5501 = vst [vmem:[%s10060_s8 + $0x350] sm:$0xff] %v5500_v2  ;;  %4463 = vst.msk [vmem:[#allocation3 + $0x370] sm:$0xff] %vm3712_vm2, %v4190_v46 }
 0x3f6   :  { %v5502_v41 = vld [vmem:[#allocation3 + $0x358] sm:$0xff]  ;;  %v4192_v36 = vpop.permute.xlu1 %4191 }
 0x3f7   :  { %5503 = vst [vmem:[%s10060_s8 + $0x358] sm:$0xff] %v5502_v41  ;;  %v5504_v37 = vld [vmem:[#allocation3 + $0x360] sm:$0xff]  ;;  %4464 = vst.msk [vmem:[#allocation3 + $0x378] sm:$0xff] %vm3712_vm2, %v4192_v36  ;;  %v4194_v29 = vpop.permute.xlu0 %4193 }
 0x3f8   :  { %5505 = vst [vmem:[%s10060_s8 + $0x360] sm:$0xff] %v5504_v37  ;;  %4465 = vst.msk [vmem:[#allocation3 + $0x380] sm:$0xff] %vm3712_vm2, %v4194_v29 }
 0x3fa   :  { %v5506_v14 = vld [vmem:[#allocation3 + $0x368] sm:$0xff]  ;;  %v4196_v52 = vpop.permute.xlu1 %4195 }
 0x3fb   :  { %5507 = vst [vmem:[%s10060_s8 + $0x368] sm:$0xff] %v5506_v14  ;;  %v5508_v55 = vld [vmem:[#allocation3 + $0x370] sm:$0xff]  ;;  %4466 = vst.msk [vmem:[#allocation3 + $0x388] sm:$0xff] %vm3712_vm2, %v4196_v52  ;;  %v4198_v10 = vpop.permute.xlu0 %4197 }
 0x3fc   :  { %5509 = vst [vmem:[%s10060_s8 + $0x370] sm:$0xff] %v5508_v55  ;;  %4467 = vst.msk [vmem:[#allocation3 + $0x390] sm:$0xff] %vm3712_vm2, %v4198_v10 }
 0x3fe   :  { %v5510_v6 = vld [vmem:[#allocation3 + $0x378] sm:$0xff]  ;;  %v4200_v45 = vpop.permute.xlu1 %4199 }
 0x3ff   :  { %5511 = vst [vmem:[%s10060_s8 + $0x378] sm:$0xff] %v5510_v6  ;;  %v5512_v60 = vld [vmem:[#allocation3 + $0x380] sm:$0xff]  ;;  %4468 = vst.msk [vmem:[#allocation3 + $0x398] sm:$0xff] %vm3712_vm2, %v4200_v45  ;;  %v4202_v12 = vpop.permute.xlu0 %4201 }
 0x400   :  { %5513 = vst [vmem:[%s10060_s8 + $0x380] sm:$0xff] %v5512_v60  ;;  %4469 = vst.msk [vmem:[#allocation3 + $0x3a0] sm:$0xff] %vm3712_vm2, %v4202_v12 }
 0x402   :  { %v5514_v63 = vld [vmem:[#allocation3 + $0x388] sm:$0xff]  ;;  %v4204_v22 = vpop.permute.xlu1 %4203 }
 0x403   :  { %5515 = vst [vmem:[%s10060_s8 + $0x388] sm:$0xff] %v5514_v63  ;;  %v5516_v20 = vld [vmem:[#allocation3 + $0x390] sm:$0xff]  ;;  %4470 = vst.msk [vmem:[#allocation3 + $0x3a8] sm:$0xff] %vm3712_vm2, %v4204_v22  ;;  %v4206_v15 = vpop.permute.xlu0 %4205 }
 0x404   :  { %5517 = vst [vmem:[%s10060_s8 + $0x390] sm:$0xff] %v5516_v20  ;;  %4471 = vst.msk [vmem:[#allocation3 + $0x3b0] sm:$0xff] %vm3712_vm2, %v4206_v15 }
 0x406   :  { %v5518_v19 = vld [vmem:[#allocation3 + $0x398] sm:$0xff]  ;;  %v4208_v42 = vpop.permute.xlu1 %4207 }
 0x407   :  { %5519 = vst [vmem:[%s10060_s8 + $0x398] sm:$0xff] %v5518_v19  ;;  %v5520_v38 = vld [vmem:[#allocation3 + $0x3a0] sm:$0xff]  ;;  %4472 = vst.msk [vmem:[#allocation3 + $0x3b8] sm:$0xff] %vm3712_vm2, %v4208_v42  ;;  %v4210_v31 = vpop.permute.xlu0 %4209 }
 0x408   :  { %5521 = vst [vmem:[%s10060_s8 + $0x3a0] sm:$0xff] %v5520_v38  ;;  %4473 = vst.msk [vmem:[#allocation3 + $0x3c0] sm:$0xff] %vm3712_vm2, %v4210_v31 }
 0x40a   :  { %v5522_v35 = vld [vmem:[#allocation3 + $0x3a8] sm:$0xff]  ;;  %v4212_v32 = vpop.permute.xlu1 %4211 }
 0x40b   :  { %5523 = vst [vmem:[%s10060_s8 + $0x3a8] sm:$0xff] %v5522_v35  ;;  %v5524_v56 = vld [vmem:[#allocation3 + $0x3b0] sm:$0xff]  ;;  %4474 = vst.msk [vmem:[#allocation3 + $0x3c8] sm:$0xff] %vm3712_vm2, %v4212_v32  ;;  %v4214_v48 = vpop.permute.xlu0 %4213 }
 0x40c   :  { %5525 = vst [vmem:[%s10060_s8 + $0x3b0] sm:$0xff] %v5524_v56  ;;  %4475 = vst.msk [vmem:[#allocation3 + $0x3d0] sm:$0xff] %vm3712_vm2, %v4214_v48 }
 0x40e   :  { %v5526_v1 = vld [vmem:[#allocation3 + $0x3b8] sm:$0xff]  ;;  %v4216_v28 = vpop.permute.xlu1 %4215 }
 0x40f   :  { %5527 = vst [vmem:[%s10060_s8 + $0x3b8] sm:$0xff] %v5526_v1  ;;  %v5528_v21 = vld [vmem:[#allocation3 + $0x3c0] sm:$0xff]  ;;  %4476 = vst.msk [vmem:[#allocation3 + $0x3d8] sm:$0xff] %vm3712_vm2, %v4216_v28  ;;  %v4218_v9 = vpop.permute.xlu0 %4217 }
 0x410   :  { %5529 = vst [vmem:[%s10060_s8 + $0x3c0] sm:$0xff] %v5528_v21  ;;  %4477 = vst.msk [vmem:[#allocation3 + $0x3e0] sm:$0xff] %vm3712_vm2, %v4218_v9 }
 0x412   :  { %v5530_v3 = vld [vmem:[#allocation3 + $0x3c8] sm:$0xff]  ;;  %v4220_v7 = vpop.permute.xlu1 %4219 }
 0x413   :  { %5531 = vst [vmem:[%s10060_s8 + $0x3c8] sm:$0xff] %v5530_v3  ;;  %v5532_v53 = vld [vmem:[#allocation3 + $0x3d0] sm:$0xff]  ;;  %v4222_v43 = vpop.permute.xlu0 %4221 }
 0x414   :  { %5533 = vst [vmem:[%s10060_s8 + $0x3d0] sm:$0xff] %v5532_v53 }
 0x416   :  { %v5534_v33 = vld [vmem:[#allocation3 + $0x3d8] sm:$0xff]  ;;  %v4224_v13 = vpop.permute.xlu1 %4223 }
 0x417   :  { %5535 = vst [vmem:[%s10060_s8 + $0x3d8] sm:$0xff] %v5534_v33  ;;  %v5536_v24 = vld [vmem:[#allocation3 + $0x3e0] sm:$0xff] }
 0x418   :  { %5537 = vst [vmem:[%s10060_s8 + $0x3e0] sm:$0xff] %v5536_v24 }

</bundles_post_ra>
